<compile_context>
chip_gen: v7x
topology: tpu7x:2x2x1
jax: 0.10.0
libtpu: 0.0.40
codegen_flags: <defaults>
</compile_context>

<pallas_src>
import math

import jax
import jax.numpy as jnp
from jax.experimental import pallas as pl
from jax.experimental.pallas import tpu as pltpu

# ----------------------------------------------------------------------------
# Shape constants (28x28 single-channel input, as the module implies).
# ----------------------------------------------------------------------------
IMG = 28
KH = KW = 5
C1, C2 = 64, 50            # real conv output channels
C1P = C2P = 128            # lane-padded channel widths
OH1 = IMG - KH + 1         # 24 : conv1 spatial
PH1 = OH1 // 2             # 12 : pool1 spatial
QROWS = PH1 * PH1          # 144: rows per pooling quadrant (conv1)
ROWS1 = 4 * QROWS          # 576: quadrant-ordered conv1 output rows
OH2 = PH1 - KH + 1         # 8  : conv2 spatial
PH2 = OH2 // 2             # 4  : pool2 spatial
HW2 = PH2 * PH2            # 16 : flattened pooled spatial
FEAT_PAD = HW2 * C2P       # 2048 (real feature size = 50*4*4 = 800)
BN_EPS = 1e-5
VMEM_LIMIT = 32 * 1024 * 1024


# ----------------------------------------------------------------------------
# Kernels
# ----------------------------------------------------------------------------

def conv1_pool_kernel(p_ref, w_ref, scale_ref, shift_ref, o_ref):
    """im2col-matmul conv1 + bias/BN (folded) + MaxPool(2,2) + ReLU.

    p_ref : (1, 576, 25) bf16  quadrant-ordered patches for one image
    w_ref : (25, 128)    bf16  conv1 weights (Cout padded 64->128)
    o_ref : (1, 144, 128) f32  pooled+ReLU'd output (rows = po*12+pw)
    """
    y = jnp.dot(p_ref[0], w_ref[...], preferred_element_type=jnp.float32)
    y = y * scale_ref[...] + shift_ref[...]          # BN + conv bias (f32)
    m = jnp.maximum(jnp.maximum(y[0 * QROWS:1 * QROWS], y[1 * QROWS:2 * QROWS]),
                    jnp.maximum(y[2 * QROWS:3 * QROWS], y[3 * QROWS:4 * QROWS]))
    o_ref[0] = jnp.maximum(m, 0.0)                   # MaxPool then ReLU


def conv2_bn_kernel(x_ref, w_ref, scale_ref, shift_ref, o_ref):
    """conv2 via implicit im2col (25 tap matmuls) + bias/BN (folded).

    x_ref : (1, 12, 12, 128) f32  pool1 output for one image (channels padded)
    w_ref : (25, 128, 128)   bf16 per-tap (Cin_pad, Cout_pad) weights
    o_ref : (1, 64, 128)     f32  BN'd conv2 output, rows = oh*8+ow
    """
    acc = jnp.zeros((OH2 * OH2, C2P), jnp.float32)
    for t in range(KH * KW):                         # static, fully unrolled
        ih, iw = divmod(t, KW)
        xs = x_ref[0, ih:ih + OH2, iw:iw + OH2, :]   # (8, 8, 128) f32
        xs = xs.reshape(OH2 * OH2, C1P).astype(jnp.bfloat16)
        acc = acc + jnp.dot(xs, w_ref[t], preferred_element_type=jnp.float32)
    o_ref[0] = acc * scale_ref[...] + shift_ref[...]


def heads_kernel(q0_ref, q1_ref, q2_ref, q3_ref,
                 w1y_ref, b1y_ref, w2y_ref, b2y_ref, w3y_ref, b3y_ref,
                 w4y_ref, b4y_ref, w1d_ref, b1d_ref, w2d_ref, b2d_ref,
                 reg_ref, dom_ref):
    """Fused MaxPool(2,2)+ReLU+flatten + Gy head + Gd head (+LogSoftmax).

    q*_ref : (N, 2048) f32 — the four pool2 quadrants of the conv2 output,
             already flattened lane-dense as (po*4+pw)*128 + c.
    Everything after the pool stays in VMEM/vregs; matmuls run in bf16 with
    f32 accumulation, epilogues in f32.
    """
    pooled = jnp.maximum(jnp.maximum(q0_ref[...], q1_ref[...]),
                         jnp.maximum(q2_ref[...], q3_ref[...]))
    feat = jnp.maximum(pooled, 0.0).astype(jnp.bfloat16)      # (N, 2048)

    def lin(x, w_ref, b_ref):
        return jnp.dot(x, w_ref[...],
                       preferred_element_type=jnp.float32) + b_ref[...]

    # Gy: fc(128)+relu -> drop(id) -> fc(64)+relu -> fc(32)+relu -> fc(1)
    h = jnp.maximum(lin(feat, w1y_ref, b1y_ref), 0.0).astype(jnp.bfloat16)
    h = jnp.maximum(lin(h, w2y_ref, b2y_ref), 0.0).astype(jnp.bfloat16)
    h = jnp.maximum(lin(h, w3y_ref, b3y_ref), 0.0).astype(jnp.bfloat16)
    reg_ref[...] = lin(h, w4y_ref, b4y_ref)

    # Gd: fc(128)+relu -> fc(2) + LogSoftmax(dim=1)
    d = jnp.maximum(lin(feat, w1d_ref, b1d_ref), 0.0).astype(jnp.bfloat16)
    logits = lin(d, w2d_ref, b2d_ref)                          # (N, 2) f32
    m = jnp.max(logits, axis=-1, keepdims=True)
    lse = m + jnp.log(jnp.sum(jnp.exp(logits - m), axis=-1, keepdims=True))
    dom_ref[...] = logits - lse


# ----------------------------------------------------------------------------
# pallas_call wrappers
# ----------------------------------------------------------------------------

def _conv1_pool(patches, w_mat, scale, shift):
    n = patches.shape[0]
    return pl.pallas_call(
        conv1_pool_kernel,
        out_shape=jax.ShapeDtypeStruct((n, QROWS, C1P), jnp.float32),
        grid=(n,),
        in_specs=[
            pl.BlockSpec((1, ROWS1, KH * KW), lambda i: (i, 0, 0)),
            pl.BlockSpec((KH * KW, C1P), lambda i: (0, 0)),
            pl.BlockSpec((1, C1P), lambda i: (0, 0)),
            pl.BlockSpec((1, C1P), lambda i: (0, 0)),
        ],
        out_specs=pl.BlockSpec((1, QROWS, C1P), lambda i: (i, 0, 0)),
        compiler_params=pltpu.CompilerParams(
            dimension_semantics=("parallel",),
            vmem_limit_bytes=VMEM_LIMIT),
    )(patches, w_mat, scale, shift)


def _conv2_bn(h1, w_mat, scale, shift):
    n = h1.shape[0]
    return pl.pallas_call(
        conv2_bn_kernel,
        out_shape=jax.ShapeDtypeStruct((n, OH2 * OH2, C2P), jnp.float32),
        grid=(n,),
        in_specs=[
            pl.BlockSpec((1, PH1, PH1, C1P), lambda i: (i, 0, 0, 0)),
            pl.BlockSpec((KH * KW, C1P, C2P), lambda i: (0, 0, 0)),
            pl.BlockSpec((1, C2P), lambda i: (0, 0)),
            pl.BlockSpec((1, C2P), lambda i: (0, 0)),
        ],
        out_specs=pl.BlockSpec((1, OH2 * OH2, C2P), lambda i: (i, 0, 0)),
        compiler_params=pltpu.CompilerParams(
            dimension_semantics=("parallel",),
            vmem_limit_bytes=VMEM_LIMIT),
    )(h1, w_mat, scale, shift)


def _heads(q0, q1, q2, q3, head_params):
    n = q0.shape[0]
    # Single launch, whole arrays resident in VMEM (< ~1.5 MiB total).
    return pl.pallas_call(
        heads_kernel,
        out_shape=(jax.ShapeDtypeStruct((n, 1), jnp.float32),
                   jax.ShapeDtypeStruct((n, 2), jnp.float32)),
    )(q0, q1, q2, q3, *head_params)


# ----------------------------------------------------------------------------
# Parameter initialization (deterministic, PyTorch-default-style uniform init)
# ----------------------------------------------------------------------------

def _bn_fold(key, cout):
    k1, k2, k3, k4 = jax.random.split(key, 4)
    gamma = jax.random.uniform(k1, (cout,), jnp.float32, 0.5, 1.5)
    beta = 0.1 * jax.random.normal(k2, (cout,), jnp.float32)
    mean = 0.1 * jax.random.normal(k3, (cout,), jnp.float32)
    var = jax.random.uniform(k4, (cout,), jnp.float32, 0.5, 1.5)
    scale = gamma / jnp.sqrt(var + BN_EPS)
    return scale, beta, mean


def init_params(key):
    ks = jax.random.split(key, 18)
    p = {}

    # conv1 (1 -> 64, padded to 128) + BN1
    bound = 1.0 / math.sqrt(1 * KH * KW)
    w1 = jax.random.uniform(ks[0], (C1, 1, KH, KW), jnp.float32, -bound, bound)
    b1 = jax.random.uniform(ks[1], (C1,), jnp.float32, -bound, bound)
    s1, beta1, mean1 = _bn_fold(ks[2], C1)
    w1_mat = jnp.transpose(w1, (2, 3, 1, 0)).reshape(KH * KW, C1)
    w1_mat = jnp.zeros((KH * KW, C1P), jnp.float32).at[:, :C1].set(w1_mat)
    scale1 = jnp.zeros((1, C1P), jnp.float32).at[0, :C1].set(s1)
    shift1 = jnp.zeros((1, C1P), jnp.float32).at[0, :C1].set(
        (b1 - mean1) * s1 + beta1)
    p["conv1"] = (w1_mat.astype(jnp.bfloat16), scale1, shift1)

    # conv2 (64 -> 50, padded 128 -> 128) + BN2
    bound = 1.0 / math.sqrt(C1 * KH * KW)
    w2 = jax.random.uniform(ks[3], (C2, C1, KH, KW), jnp.float32, -bound, bound)
    b2 = jax.random.uniform(ks[4], (C2,), jnp.float32, -bound, bound)
    s2, beta2, mean2 = _bn_fold(ks[5], C2)
    w2_t = jnp.transpose(w2, (2, 3, 1, 0)).reshape(KH * KW, C1, C2)
    w2_mat = jnp.zeros((KH * KW, C1P, C2P), jnp.float32).at[:, :C1, :C2].set(w2_t)
    scale2 = jnp.zeros((1, C2P), jnp.float32).at[0, :C2].set(s2)
    shift2 = jnp.zeros((1, C2P), jnp.float32).at[0, :C2].set(
        (b2 - mean2) * s2 + beta2)
    p["conv2"] = (w2_mat.astype(jnp.bfloat16), scale2, shift2)

    # Heads. True flatten size = C2 * HW2 = 800 (see header note on 50*47*3171).
    def linear_params(kw_key, kb_key, fin, fout):
        bound = 1.0 / math.sqrt(fin)
        w = jax.random.uniform(kw_key, (fout, fin), jnp.float32, -bound, bound)
        b = jax.random.uniform(kb_key, (fout,), jnp.float32, -bound, bound)
        return w, b

    def permute_fc_in(w_torch):
        # torch fc weight (out, C2*HW2) with in-index = c*HW2 + s  (NCHW flatten)
        # -> (HW2*C2P, out) with row-index = s*C2P + c (our padded NHWC flatten)
        out = w_torch.shape[0]
        w = w_torch.reshape(out, C2, HW2)
        w = jnp.transpose(w, (2, 1, 0))                       # (HW2, C2, out)
        wp = jnp.zeros((HW2, C2P, out), jnp.float32).at[:, :C2, :].set(w)
        return wp.reshape(HW2 * C2P, out)

    feat_in = C2 * HW2
    wy1, by1 = linear_params(ks[6], ks[7], feat_in, 128)
    wy2, by2 = linear_params(ks[8], ks[9], 128, 64)
    wy3, by3 = linear_params(ks[10], ks[11], 64, 32)
    wy4, by4 = linear_params(ks[12], ks[13], 32, 1)
    wd1, bd1 = linear_params(ks[14], ks[15], feat_in, 128)
    wd2, bd2 = linear_params(ks[16], ks[17], 128, 2)

    p["heads"] = (
        permute_fc_in(wy1).astype(jnp.bfloat16), by1.reshape(1, -1),
        wy2.T.astype(jnp.bfloat16), by2.reshape(1, -1),
        wy3.T.astype(jnp.bfloat16), by3.reshape(1, -1),
        wy4.T.astype(jnp.bfloat16), by4.reshape(1, -1),
        permute_fc_in(wd1).astype(jnp.bfloat16), bd1.reshape(1, -1),
        wd2.T.astype(jnp.bfloat16), bd2.reshape(1, -1),
    )
    return p


# ----------------------------------------------------------------------------
# Full forward pass (equivalent of DANNConv2d.forward, eval mode)
# ----------------------------------------------------------------------------

@jax.jit
def dann_conv2d_forward(x_nchw, lamb, params):
    del lamb  # GradientReverse.forward is identity; lamb only affects backward.
    n = x_nchw.shape[0]
    x = x_nchw[:, 0].astype(jnp.float32)                       # (N, 28, 28), Cin=1

    # Quadrant-ordered im2col for conv1 (Cin=1 -> ~50 KB total; conv2's im2col,
    # which would be 25x64-wide, is done implicitly inside its kernel instead).
    taps = [x[:, ih:ih + OH1, iw:iw + OH1]
            for ih in range(KH) for iw in range(KW)]
    t = jnp.stack(taps, axis=-1)                               # (N, 24, 24, 25)
    quads = [t[:, eo::2, ew::2, :] for eo in (0, 1) for ew in (0, 1)]
    patches = jnp.stack(quads, axis=1).reshape(n, ROWS1, KH * KW)
    patches = patches.astype(jnp.bfloat16)

    # Gf: conv1 -> bn1 -> pool1 -> relu1   (fused, one launch)
    h1 = _conv1_pool(patches, *params["conv1"])                # (N, 144, 128) f32
    h1 = h1.reshape(n, PH1, PH1, C1P)                          # (N, 12, 12, 128)

    # Gf: conv2 -> bn2 -> drop(identity)   (fused, one launch; pool2 is below)
    h2 = _conv2_bn(h1, *params["conv2"])                       # (N, 64, 128) f32
    h2 = h2.reshape(n, OH2, OH2, C2P)
    q = [h2[:, eo::2, ew::2, :].reshape(n, FEAT_PAD)
         for eo in (0, 1) for ew in (0, 1)]                    # 4 x (N, 2048)

    # pool2 + relu2 + flatten + Gy head + Gd head (+LogSoftmax) — one launch.
    # `reverse = feature` (gradient reversal is identity in the forward pass).
    regression, domain_classification = _heads(q[0], q[1], q[2], q[3],
                                               params["heads"])
    return regression, domain_classification


# ----------------------------------------------------------------------------
# Pure-JAX reference (f32) for correctness checking
# ----------------------------------------------------------------------------

@jax.jit
def _reference_forward(x_nchw, params):
    w1, s1, t1 = params["conv1"]
    w2, s2, t2 = params["conv2"]
    hp = [p.astype(jnp.float32) for p in params["heads"]]
    x = x_nchw[:, 0].astype(jnp.float32)
    n = x.shape[0]

    cols = jnp.stack([x[:, ih:ih + OH1, iw:iw + OH1]
                      for ih in range(KH) for iw in range(KW)], axis=-1)
    y1 = jnp.einsum("nhwk,kc->nhwc", cols, w1.astype(jnp.float32))
    y1 = y1 * s1[0] + t1[0]
    y1 = jnp.max(y1.reshape(n, PH1, 2, PH1, 2, C1P), axis=(2, 4))
    y1 = jnp.maximum(y1, 0.0)                                  # (N, 12, 12, 128)

    cols2 = jnp.stack([y1[:, ih:ih + OH2, iw:iw + OH2, :]
                       for ih in range(KH) for iw in range(KW)], axis=-2)
    y2 = jnp.einsum("nhwkc,kcd->nhwd", cols2, w2.astype(jnp.float32))
    y2 = y2 * s2[0] + t2[0]
    y2 = jnp.max(y2.reshape(n, PH2, 2, PH2, 2, C2P), axis=(2, 4))
    y2 = jnp.maximum(y2, 0.0)                                  # (N, 4, 4, 128)
    feat = y2.reshape(n, FEAT_PAD)

    w1y, b1y, w2y, b2y, w3y, b3y, w4y, b4y, w1d, b1d, w2d, b2d = hp
    r = jnp.maximum(feat @ w1y + b1y, 0.0)
    r = jnp.maximum(r @ w2y + b2y, 0.0)
    r = jnp.maximum(r @ w3y + b3y, 0.0)
    reg = r @ w4y + b4y
    d = jnp.maximum(feat @ w1d + b1d, 0.0)
    logits = d @ w2d + b2d
    m = jnp.max(logits, axis=-1, keepdims=True)
    dom = logits - (m + jnp.log(jnp.sum(jnp.exp(logits - m), axis=-1,
                                        keepdims=True)))
    return reg, dom


if __name__ == "__main__":
    key = jax.random.PRNGKey(0)
    kx, kp = jax.random.split(key)

    # Small synthetic input: batch=2, channels=1 (required by f_conv1), 28x28.
    x = jax.random.normal(kx, (2, 1, IMG, IMG), jnp.float32)
    params = init_params(kp)

    regression, domain = dann_conv2d_forward(x, 1.0, params)
    jax.block_until_ready((regression, domain))

    assert regression.shape == (2, 1), regression.shape
    assert domain.shape == (2, 2), domain.shape
    # LogSoftmax rows must exp-sum to 1.
    assert bool(jnp.allclose(jnp.sum(jnp.exp(domain), axis=1), 1.0, atol=1e-5))

    # Compare against the pure-JAX f32 reference (bf16 matmuls -> loose tol).
    reg_want, dom_want = _reference_forward(x, params)
    assert bool(jnp.allclose(regression, reg_want, atol=0.1, rtol=0.1)), (
        regression, reg_want)
    assert bool(jnp.allclose(domain, dom_want, atol=0.1, rtol=0.1)), (
        domain, dom_want)

    print("KERNEL_OK")
</pallas_src>

<mosaic_0001>
module attributes {stable_mosaic.version = 11 : i64} {
  func.func @conv1_pool_kernel(%arg0: i32, %arg1: memref<1x576x25xbf16, #tpu.memory_space<vmem>>, %arg2: memref<25x128xbf16, #tpu.memory_space<vmem>>, %arg3: memref<1x128xf32, #tpu.memory_space<vmem>>, %arg4: memref<1x128xf32, #tpu.memory_space<vmem>>, %arg5: memref<1x144x128xf32, #tpu.memory_space<vmem>>) attributes {dimension_semantics = [#tpu.dimension_semantics<parallel>], iteration_bounds = array<i64: 2>, scalar_prefetch = 0 : i64, scratch_operands = 0 : i64, tpu.core_type = #tpu.core_type<tc>, window_params = [{transform_indices = @transform_0, window_bounds = array<i64: 1, 576, 25>}, {pipeline_mode = #tpu.pipeline_mode<synchronous>, transform_indices = @transform_1, window_bounds = array<i64: 25, 128>}, {pipeline_mode = #tpu.pipeline_mode<synchronous>, transform_indices = @transform_2, window_bounds = array<i64: 1, 128>}, {pipeline_mode = #tpu.pipeline_mode<synchronous>, transform_indices = @transform_3, window_bounds = array<i64: 1, 128>}, {transform_indices = @transform_4, window_bounds = array<i64: 1, 144, 128>}]} {
    %c0 = arith.constant 0 : index
    %c0_0 = arith.constant 0 : index
    %c0_1 = arith.constant 0 : index
    %0 = vector.load %arg1[%c0, %c0_0, %c0_1] : memref<1x576x25xbf16, #tpu.memory_space<vmem>>, vector<1x576x25xbf16>
    %1 = vector.shape_cast %0 : vector<1x576x25xbf16> to vector<576x25xbf16>
    %c0_2 = arith.constant 0 : index
    %c0_3 = arith.constant 0 : index
    %2 = vector.load %arg2[%c0_2, %c0_3] : memref<25x128xbf16, #tpu.memory_space<vmem>>, vector<25x128xbf16>
    %cst = arith.constant dense<0.000000e+00> : vector<576x128xf32>
    %3 = tpu.matmul %1, %2, %cst {dimension_numbers = #tpu.dot_dimension_numbers<[1], [0], [0], [1], [0, 0, 1, 1], [], []>} : vector<576x25xbf16>, vector<25x128xbf16>, vector<576x128xf32> -> vector<576x128xf32>
    %c0_4 = arith.constant 0 : index
    %c0_5 = arith.constant 0 : index
    %4 = vector.load %arg3[%c0_4, %c0_5] : memref<1x128xf32, #tpu.memory_space<vmem>>, vector<1x128xf32>
    %5 = vector.broadcast %4 : vector<1x128xf32> to vector<576x128xf32>
    %6 = arith.mulf %3, %5 : vector<576x128xf32>
    %c0_6 = arith.constant 0 : index
    %c0_7 = arith.constant 0 : index
    %7 = vector.load %arg4[%c0_6, %c0_7] : memref<1x128xf32, #tpu.memory_space<vmem>>, vector<1x128xf32>
    %8 = vector.broadcast %7 : vector<1x128xf32> to vector<576x128xf32>
    %9 = arith.addf %6, %8 : vector<576x128xf32>
    %10 = vector.extract_strided_slice %9 {offsets = [0, 0], sizes = [144, 128], strides = [1, 1]} : vector<576x128xf32> to vector<144x128xf32>
    %11 = vector.extract_strided_slice %9 {offsets = [144, 0], sizes = [144, 128], strides = [1, 1]} : vector<576x128xf32> to vector<144x128xf32>
    %12 = arith.maximumf %10, %11 : vector<144x128xf32>
    %13 = vector.extract_strided_slice %9 {offsets = [288, 0], sizes = [144, 128], strides = [1, 1]} : vector<576x128xf32> to vector<144x128xf32>
    %14 = vector.extract_strided_slice %9 {offsets = [432, 0], sizes = [144, 128], strides = [1, 1]} : vector<576x128xf32> to vector<144x128xf32>
    %15 = arith.maximumf %13, %14 : vector<144x128xf32>
    %16 = arith.maximumf %12, %15 : vector<144x128xf32>
    %cst_8 = arith.constant 0.000000e+00 : f32
    %17 = vector.broadcast %cst_8 : f32 to vector<144x128xf32>
    %18 = arith.maximumf %16, %17 : vector<144x128xf32>
    %c0_9 = arith.constant 0 : index
    %c0_10 = arith.constant 0 : index
    %c0_11 = arith.constant 0 : index
    %19 = vector.load %arg5[%c0_9, %c0_10, %c0_11] : memref<1x144x128xf32, #tpu.memory_space<vmem>>, vector<1x144x128xf32>
    %20 = vector.shape_cast %19 : vector<1x144x128xf32> to vector<144x128xf32>
    %21 = vector.shape_cast %18 : vector<144x128xf32> to vector<1x144x128xf32>
    tpu.vector_store %arg5[%c0_9, %c0_10, %c0_11], %21 {strides = array<i32>} : memref<1x144x128xf32, #tpu.memory_space<vmem>>, vector<1x144x128xf32>,
    return
  }
  func.func @transform_0(%arg0: i32) -> (i32, i32, i32) {
    %c0_i32 = arith.constant 0 : i32
    %c0_i32_0 = arith.constant 0 : i32
    %c0_i32_1 = arith.constant 0 : i32
    return %arg0, %c0_i32, %c0_i32_0 : i32, i32, i32
  }
  func.func @transform_1(%arg0: i32) -> (i32, i32) {
    %c0_i32 = arith.constant 0 : i32
    %c0_i32_0 = arith.constant 0 : i32
    %c0_i32_1 = arith.constant 0 : i32
    return %c0_i32, %c0_i32_0 : i32, i32
  }
  func.func @transform_2(%arg0: i32) -> (i32, i32) {
    %c0_i32 = arith.constant 0 : i32
    %c0_i32_0 = arith.constant 0 : i32
    %c0_i32_1 = arith.constant 0 : i32
    return %c0_i32, %c0_i32_0 : i32, i32
  }
  func.func @transform_3(%arg0: i32) -> (i32, i32) {
    %c0_i32 = arith.constant 0 : i32
    %c0_i32_0 = arith.constant 0 : i32
    %c0_i32_1 = arith.constant 0 : i32
    return %c0_i32, %c0_i32_0 : i32, i32
  }
  func.func @transform_4(%arg0: i32) -> (i32, i32, i32) {
    %c0_i32 = arith.constant 0 : i32
    %c0_i32_0 = arith.constant 0 : i32
    %c0_i32_1 = arith.constant 0 : i32
    return %arg0, %c0_i32, %c0_i32_0 : i32, i32, i32
  }
}

module attributes {stable_mosaic.version = 11 : i64} {
  func.func @conv2_bn_kernel(%arg0: i32, %arg1: memref<1x12x12x128xf32, #tpu.memory_space<vmem>>, %arg2: memref<25x128x128xbf16, #tpu.memory_space<vmem>>, %arg3: memref<1x128xf32, #tpu.memory_space<vmem>>, %arg4: memref<1x128xf32, #tpu.memory_space<vmem>>, %arg5: memref<1x64x128xf32, #tpu.memory_space<vmem>>) attributes {dimension_semantics = [#tpu.dimension_semantics<parallel>], iteration_bounds = array<i64: 2>, scalar_prefetch = 0 : i64, scratch_operands = 0 : i64, tpu.core_type = #tpu.core_type<tc>, window_params = [{transform_indices = @transform_0, window_bounds = array<i64: 1, 12, 12, 128>}, {pipeline_mode = #tpu.pipeline_mode<synchronous>, transform_indices = @transform_1, window_bounds = array<i64: 25, 128, 128>}, {pipeline_mode = #tpu.pipeline_mode<synchronous>, transform_indices = @transform_2, window_bounds = array<i64: 1, 128>}, {pipeline_mode = #tpu.pipeline_mode<synchronous>, transform_indices = @transform_3, window_bounds = array<i64: 1, 128>}, {transform_indices = @transform_4, window_bounds = array<i64: 1, 64, 128>}]} {
    %cst = arith.constant 0.000000e+00 : f32
    %0 = vector.broadcast %cst : f32 to vector<64x128xf32>
    %c0 = arith.constant 0 : index
    %c0_0 = arith.constant 0 : index
    %c0_1 = arith.constant 0 : index
    %c0_2 = arith.constant 0 : index
    %1 = vector.load %arg1[%c0, %c0_0, %c0_1, %c0_2] : memref<1x12x12x128xf32, #tpu.memory_space<vmem>>, vector<1x8x8x128xf32>
    %2 = vector.shape_cast %1 : vector<1x8x8x128xf32> to vector<8x8x128xf32>
    %3 = vector.shape_cast %2 : vector<8x8x128xf32> to vector<64x128xf32>
    %4 = arith.truncf %3 : vector<64x128xf32> to vector<64x128xbf16>
    %c0_3 = arith.constant 0 : index
    %c0_4 = arith.constant 0 : index
    %c0_5 = arith.constant 0 : index
    %5 = vector.load %arg2[%c0_3, %c0_4, %c0_5] : memref<25x128x128xbf16, #tpu.memory_space<vmem>>, vector<1x128x128xbf16>
    %6 = vector.shape_cast %5 : vector<1x128x128xbf16> to vector<128x128xbf16>
    %cst_6 = arith.constant dense<0.000000e+00> : vector<64x128xf32>
    %7 = tpu.matmul %4, %6, %cst_6 {dimension_numbers = #tpu.dot_dimension_numbers<[1], [0], [0], [1], [0, 0, 1, 1], [], []>} : vector<64x128xbf16>, vector<128x128xbf16>, vector<64x128xf32> -> vector<64x128xf32>
    %8 = arith.addf %0, %7 : vector<64x128xf32>
    %c0_7 = arith.constant 0 : index
    %c0_8 = arith.constant 0 : index
    %c1 = arith.constant 1 : index
    %c0_9 = arith.constant 0 : index
    %9 = vector.load %arg1[%c0_7, %c0_8, %c1, %c0_9] : memref<1x12x12x128xf32, #tpu.memory_space<vmem>>, vector<1x8x8x128xf32>
    %10 = vector.shape_cast %9 : vector<1x8x8x128xf32> to vector<8x8x128xf32>
    %11 = vector.shape_cast %10 : vector<8x8x128xf32> to vector<64x128xf32>
    %12 = arith.truncf %11 : vector<64x128xf32> to vector<64x128xbf16>
    %c1_10 = arith.constant 1 : index
    %c0_11 = arith.constant 0 : index
    %c0_12 = arith.constant 0 : index
    %13 = vector.load %arg2[%c1_10, %c0_11, %c0_12] : memref<25x128x128xbf16, #tpu.memory_space<vmem>>, vector<1x128x128xbf16>
    %14 = vector.shape_cast %13 : vector<1x128x128xbf16> to vector<128x128xbf16>
    %cst_13 = arith.constant dense<0.000000e+00> : vector<64x128xf32>
    %15 = tpu.matmul %12, %14, %cst_13 {dimension_numbers = #tpu.dot_dimension_numbers<[1], [0], [0], [1], [0, 0, 1, 1], [], []>} : vector<64x128xbf16>, vector<128x128xbf16>, vector<64x128xf32> -> vector<64x128xf32>
    %16 = arith.addf %8, %15 : vector<64x128xf32>
    %c0_14 = arith.constant 0 : index
    %c0_15 = arith.constant 0 : index
    %c2 = arith.constant 2 : index
    %c0_16 = arith.constant 0 : index
    %17 = vector.load %arg1[%c0_14, %c0_15, %c2, %c0_16] : memref<1x12x12x128xf32, #tpu.memory_space<vmem>>, vector<1x8x8x128xf32>
    %18 = vector.shape_cast %17 : vector<1x8x8x128xf32> to vector<8x8x128xf32>
    %19 = vector.shape_cast %18 : vector<8x8x128xf32> to vector<64x128xf32>
    %20 = arith.truncf %19 : vector<64x128xf32> to vector<64x128xbf16>
    %c2_17 = arith.constant 2 : index
    %c0_18 = arith.constant 0 : index
    %c0_19 = arith.constant 0 : index
    %21 = vector.load %arg2[%c2_17, %c0_18, %c0_19] : memref<25x128x128xbf16, #tpu.memory_space<vmem>>, vector<1x128x128xbf16>
    %22 = vector.shape_cast %21 : vector<1x128x128xbf16> to vector<128x128xbf16>
    %cst_20 = arith.constant dense<0.000000e+00> : vector<64x128xf32>
    %23 = tpu.matmul %20, %22, %cst_20 {dimension_numbers = #tpu.dot_dimension_numbers<[1], [0], [0], [1], [0, 0, 1, 1], [], []>} : vector<64x128xbf16>, vector<128x128xbf16>, vector<64x128xf32> -> vector<64x128xf32>
    %24 = arith.addf %16, %23 : vector<64x128xf32>
    %c0_21 = arith.constant 0 : index
    %c0_22 = arith.constant 0 : index
    %c3 = arith.constant 3 : index
    %c0_23 = arith.constant 0 : index
    %25 = vector.load %arg1[%c0_21, %c0_22, %c3, %c0_23] : memref<1x12x12x128xf32, #tpu.memory_space<vmem>>, vector<1x8x8x128xf32>
    %26 = vector.shape_cast %25 : vector<1x8x8x128xf32> to vector<8x8x128xf32>
    %27 = vector.shape_cast %26 : vector<8x8x128xf32> to vector<64x128xf32>
    %28 = arith.truncf %27 : vector<64x128xf32> to vector<64x128xbf16>
    %c3_24 = arith.constant 3 : index
    %c0_25 = arith.constant 0 : index
    %c0_26 = arith.constant 0 : index
    %29 = vector.load %arg2[%c3_24, %c0_25, %c0_26] : memref<25x128x128xbf16, #tpu.memory_space<vmem>>, vector<1x128x128xbf16>
    %30 = vector.shape_cast %29 : vector<1x128x128xbf16> to vector<128x128xbf16>
    %cst_27 = arith.constant dense<0.000000e+00> : vector<64x128xf32>
    %31 = tpu.matmul %28, %30, %cst_27 {dimension_numbers = #tpu.dot_dimension_numbers<[1], [0], [0], [1], [0, 0, 1, 1], [], []>} : vector<64x128xbf16>, vector<128x128xbf16>, vector<64x128xf32> -> vector<64x128xf32>
    %32 = arith.addf %24, %31 : vector<64x128xf32>
    %c0_28 = arith.constant 0 : index
    %c0_29 = arith.constant 0 : index
    %c4 = arith.constant 4 : index
    %c0_30 = arith.constant 0 : index
    %33 = vector.load %arg1[%c0_28, %c0_29, %c4, %c0_30] : memref<1x12x12x128xf32, #tpu.memory_space<vmem>>, vector<1x8x8x128xf32>
    %34 = vector.shape_cast %33 : vector<1x8x8x128xf32> to vector<8x8x128xf32>
    %35 = vector.shape_cast %34 : vector<8x8x128xf32> to vector<64x128xf32>
    %36 = arith.truncf %35 : vector<64x128xf32> to vector<64x128xbf16>
    %c4_31 = arith.constant 4 : index
    %c0_32 = arith.constant 0 : index
    %c0_33 = arith.constant 0 : index
    %37 = vector.load %arg2[%c4_31, %c0_32, %c0_33] : memref<25x128x128xbf16, #tpu.memory_space<vmem>>, vector<1x128x128xbf16>
    %38 = vector.shape_cast %37 : vector<1x128x128xbf16> to vector<128x128xbf16>
    %cst_34 = arith.constant dense<0.000000e+00> : vector<64x128xf32>
    %39 = tpu.matmul %36, %38, %cst_34 {dimension_numbers = #tpu.dot_dimension_numbers<[1], [0], [0], [1], [0, 0, 1, 1], [], []>} : vector<64x128xbf16>, vector<128x128xbf16>, vector<64x128xf32> -> vector<64x128xf32>
    %40 = arith.addf %32, %39 : vector<64x128xf32>
    %c0_35 = arith.constant 0 : index
    %c1_36 = arith.constant 1 : index
    %c0_37 = arith.constant 0 : index
    %c0_38 = arith.constant 0 : index
    %41 = vector.load %arg1[%c0_35, %c1_36, %c0_37, %c0_38] : memref<1x12x12x128xf32, #tpu.memory_space<vmem>>, vector<1x8x8x128xf32>
    %42 = vector.shape_cast %41 : vector<1x8x8x128xf32> to vector<8x8x128xf32>
    %43 = vector.shape_cast %42 : vector<8x8x128xf32> to vector<64x128xf32>
    %44 = arith.truncf %43 : vector<64x128xf32> to vector<64x128xbf16>
    %c5 = arith.constant 5 : index
    %c0_39 = arith.constant 0 : index
    %c0_40 = arith.constant 0 : index
    %45 = vector.load %arg2[%c5, %c0_39, %c0_40] : memref<25x128x128xbf16, #tpu.memory_space<vmem>>, vector<1x128x128xbf16>
    %46 = vector.shape_cast %45 : vector<1x128x128xbf16> to vector<128x128xbf16>
    %cst_41 = arith.constant dense<0.000000e+00> : vector<64x128xf32>
    %47 = tpu.matmul %44, %46, %cst_41 {dimension_numbers = #tpu.dot_dimension_numbers<[1], [0], [0], [1], [0, 0, 1, 1], [], []>} : vector<64x128xbf16>, vector<128x128xbf16>, vector<64x128xf32> -> vector<64x128xf32>
    %48 = arith.addf %40, %47 : vector<64x128xf32>
    %c0_42 = arith.constant 0 : index
    %c1_43 = arith.constant 1 : index
    %c1_44 = arith.constant 1 : index
    %c0_45 = arith.constant 0 : index
    %49 = vector.load %arg1[%c0_42, %c1_43, %c1_44, %c0_45] : memref<1x12x12x128xf32, #tpu.memory_space<vmem>>, vector<1x8x8x128xf32>
    %50 = vector.shape_cast %49 : vector<1x8x8x128xf32> to vector<8x8x128xf32>
    %51 = vector.shape_cast %50 : vector<8x8x128xf32> to vector<64x128xf32>
    %52 = arith.truncf %51 : vector<64x128xf32> to vector<64x128xbf16>
    %c6 = arith.constant 6 : index
    %c0_46 = arith.constant 0 : index
    %c0_47 = arith.constant 0 : index
    %53 = vector.load %arg2[%c6, %c0_46, %c0_47] : memref<25x128x128xbf16, #tpu.memory_space<vmem>>, vector<1x128x128xbf16>
    %54 = vector.shape_cast %53 : vector<1x128x128xbf16> to vector<128x128xbf16>
    %cst_48 = arith.constant dense<0.000000e+00> : vector<64x128xf32>
    %55 = tpu.matmul %52, %54, %cst_48 {dimension_numbers = #tpu.dot_dimension_numbers<[1], [0], [0], [1], [0, 0, 1, 1], [], []>} : vector<64x128xbf16>, vector<128x128xbf16>, vector<64x128xf32> -> vector<64x128xf32>
    %56 = arith.addf %48, %55 : vector<64x128xf32>
    %c0_49 = arith.constant 0 : index
    %c1_50 = arith.constant 1 : index
    %c2_51 = arith.constant 2 : index
    %c0_52 = arith.constant 0 : index
    %57 = vector.load %arg1[%c0_49, %c1_50, %c2_51, %c0_52] : memref<1x12x12x128xf32, #tpu.memory_space<vmem>>, vector<1x8x8x128xf32>
    %58 = vector.shape_cast %57 : vector<1x8x8x128xf32> to vector<8x8x128xf32>
    %59 = vector.shape_cast %58 : vector<8x8x128xf32> to vector<64x128xf32>
    %60 = arith.truncf %59 : vector<64x128xf32> to vector<64x128xbf16>
    %c7 = arith.constant 7 : index
    %c0_53 = arith.constant 0 : index
    %c0_54 = arith.constant 0 : index
    %61 = vector.load %arg2[%c7, %c0_53, %c0_54] : memref<25x128x128xbf16, #tpu.memory_space<vmem>>, vector<1x128x128xbf16>
    %62 = vector.shape_cast %61 : vector<1x128x128xbf16> to vector<128x128xbf16>
    %cst_55 = arith.constant dense<0.000000e+00> : vector<64x128xf32>
    %63 = tpu.matmul %60, %62, %cst_55 {dimension_numbers = #tpu.dot_dimension_numbers<[1], [0], [0], [1], [0, 0, 1, 1], [], []>} : vector<64x128xbf16>, vector<128x128xbf16>, vector<64x128xf32> -> vector<64x128xf32>
    %64 = arith.addf %56, %63 : vector<64x128xf32>
    %c0_56 = arith.constant 0 : index
    %c1_57 = arith.constant 1 : index
    %c3_58 = arith.constant 3 : index
    %c0_59 = arith.constant 0 : index
    %65 = vector.load %arg1[%c0_56, %c1_57, %c3_58, %c0_59] : memref<1x12x12x128xf32, #tpu.memory_space<vmem>>, vector<1x8x8x128xf32>
    %66 = vector.shape_cast %65 : vector<1x8x8x128xf32> to vector<8x8x128xf32>
    %67 = vector.shape_cast %66 : vector<8x8x128xf32> to vector<64x128xf32>
    %68 = arith.truncf %67 : vector<64x128xf32> to vector<64x128xbf16>
    %c8 = arith.constant 8 : index
    %c0_60 = arith.constant 0 : index
    %c0_61 = arith.constant 0 : index
    %69 = vector.load %arg2[%c8, %c0_60, %c0_61] : memref<25x128x128xbf16, #tpu.memory_space<vmem>>, vector<1x128x128xbf16>
    %70 = vector.shape_cast %69 : vector<1x128x128xbf16> to vector<128x128xbf16>
    %cst_62 = arith.constant dense<0.000000e+00> : vector<64x128xf32>
    %71 = tpu.matmul %68, %70, %cst_62 {dimension_numbers = #tpu.dot_dimension_numbers<[1], [0], [0], [1], [0, 0, 1, 1], [], []>} : vector<64x128xbf16>, vector<128x128xbf16>, vector<64x128xf32> -> vector<64x128xf32>
    %72 = arith.addf %64, %71 : vector<64x128xf32>
    %c0_63 = arith.constant 0 : index
    %c1_64 = arith.constant 1 : index
    %c4_65 = arith.constant 4 : index
    %c0_66 = arith.constant 0 : index
    %73 = vector.load %arg1[%c0_63, %c1_64, %c4_65, %c0_66] : memref<1x12x12x128xf32, #tpu.memory_space<vmem>>, vector<1x8x8x128xf32>
    %74 = vector.shape_cast %73 : vector<1x8x8x128xf32> to vector<8x8x128xf32>
    %75 = vector.shape_cast %74 : vector<8x8x128xf32> to vector<64x128xf32>
    %76 = arith.truncf %75 : vector<64x128xf32> to vector<64x128xbf16>
    %c9 = arith.constant 9 : index
    %c0_67 = arith.constant 0 : index
    %c0_68 = arith.constant 0 : index
    %77 = vector.load %arg2[%c9, %c0_67, %c0_68] : memref<25x128x128xbf16, #tpu.memory_space<vmem>>, vector<1x128x128xbf16>
    %78 = vector.shape_cast %77 : vector<1x128x128xbf16> to vector<128x128xbf16>
    %cst_69 = arith.constant dense<0.000000e+00> : vector<64x128xf32>
    %79 = tpu.matmul %76, %78, %cst_69 {dimension_numbers = #tpu.dot_dimension_numbers<[1], [0], [0], [1], [0, 0, 1, 1], [], []>} : vector<64x128xbf16>, vector<128x128xbf16>, vector<64x128xf32> -> vector<64x128xf32>
    %80 = arith.addf %72, %79 : vector<64x128xf32>
    %c0_70 = arith.constant 0 : index
    %c2_71 = arith.constant 2 : index
    %c0_72 = arith.constant 0 : index
    %c0_73 = arith.constant 0 : index
    %81 = vector.load %arg1[%c0_70, %c2_71, %c0_72, %c0_73] : memref<1x12x12x128xf32, #tpu.memory_space<vmem>>, vector<1x8x8x128xf32>
    %82 = vector.shape_cast %81 : vector<1x8x8x128xf32> to vector<8x8x128xf32>
    %83 = vector.shape_cast %82 : vector<8x8x128xf32> to vector<64x128xf32>
    %84 = arith.truncf %83 : vector<64x128xf32> to vector<64x128xbf16>
    %c10 = arith.constant 10 : index
    %c0_74 = arith.constant 0 : index
    %c0_75 = arith.constant 0 : index
    %85 = vector.load %arg2[%c10, %c0_74, %c0_75] : memref<25x128x128xbf16, #tpu.memory_space<vmem>>, vector<1x128x128xbf16>
    %86 = vector.shape_cast %85 : vector<1x128x128xbf16> to vector<128x128xbf16>
    %cst_76 = arith.constant dense<0.000000e+00> : vector<64x128xf32>
    %87 = tpu.matmul %84, %86, %cst_76 {dimension_numbers = #tpu.dot_dimension_numbers<[1], [0], [0], [1], [0, 0, 1, 1], [], []>} : vector<64x128xbf16>, vector<128x128xbf16>, vector<64x128xf32> -> vector<64x128xf32>
    %88 = arith.addf %80, %87 : vector<64x128xf32>
    %c0_77 = arith.constant 0 : index
    %c2_78 = arith.constant 2 : index
    %c1_79 = arith.constant 1 : index
    %c0_80 = arith.constant 0 : index
    %89 = vector.load %arg1[%c0_77, %c2_78, %c1_79, %c0_80] : memref<1x12x12x128xf32, #tpu.memory_space<vmem>>, vector<1x8x8x128xf32>
    %90 = vector.shape_cast %89 : vector<1x8x8x128xf32> to vector<8x8x128xf32>
    %91 = vector.shape_cast %90 : vector<8x8x128xf32> to vector<64x128xf32>
    %92 = arith.truncf %91 : vector<64x128xf32> to vector<64x128xbf16>
    %c11 = arith.constant 11 : index
    %c0_81 = arith.constant 0 : index
    %c0_82 = arith.constant 0 : index
    %93 = vector.load %arg2[%c11, %c0_81, %c0_82] : memref<25x128x128xbf16, #tpu.memory_space<vmem>>, vector<1x128x128xbf16>
    %94 = vector.shape_cast %93 : vector<1x128x128xbf16> to vector<128x128xbf16>
    %cst_83 = arith.constant dense<0.000000e+00> : vector<64x128xf32>
    %95 = tpu.matmul %92, %94, %cst_83 {dimension_numbers = #tpu.dot_dimension_numbers<[1], [0], [0], [1], [0, 0, 1, 1], [], []>} : vector<64x128xbf16>, vector<128x128xbf16>, vector<64x128xf32> -> vector<64x128xf32>
    %96 = arith.addf %88, %95 : vector<64x128xf32>
    %c0_84 = arith.constant 0 : index
    %c2_85 = arith.constant 2 : index
    %c2_86 = arith.constant 2 : index
    %c0_87 = arith.constant 0 : index
    %97 = vector.load %arg1[%c0_84, %c2_85, %c2_86, %c0_87] : memref<1x12x12x128xf32, #tpu.memory_space<vmem>>, vector<1x8x8x128xf32>
    %98 = vector.shape_cast %97 : vector<1x8x8x128xf32> to vector<8x8x128xf32>
    %99 = vector.shape_cast %98 : vector<8x8x128xf32> to vector<64x128xf32>
    %100 = arith.truncf %99 : vector<64x128xf32> to vector<64x128xbf16>
    %c12 = arith.constant 12 : index
    %c0_88 = arith.constant 0 : index
    %c0_89 = arith.constant 0 : index
    %101 = vector.load %arg2[%c12, %c0_88, %c0_89] : memref<25x128x128xbf16, #tpu.memory_space<vmem>>, vector<1x128x128xbf16>
    %102 = vector.shape_cast %101 : vector<1x128x128xbf16> to vector<128x128xbf16>
    %cst_90 = arith.constant dense<0.000000e+00> : vector<64x128xf32>
    %103 = tpu.matmul %100, %102, %cst_90 {dimension_numbers = #tpu.dot_dimension_numbers<[1], [0], [0], [1], [0, 0, 1, 1], [], []>} : vector<64x128xbf16>, vector<128x128xbf16>, vector<64x128xf32> -> vector<64x128xf32>
    %104 = arith.addf %96, %103 : vector<64x128xf32>
    %c0_91 = arith.constant 0 : index
    %c2_92 = arith.constant 2 : index
    %c3_93 = arith.constant 3 : index
    %c0_94 = arith.constant 0 : index
    %105 = vector.load %arg1[%c0_91, %c2_92, %c3_93, %c0_94] : memref<1x12x12x128xf32, #tpu.memory_space<vmem>>, vector<1x8x8x128xf32>
    %106 = vector.shape_cast %105 : vector<1x8x8x128xf32> to vector<8x8x128xf32>
    %107 = vector.shape_cast %106 : vector<8x8x128xf32> to vector<64x128xf32>
    %108 = arith.truncf %107 : vector<64x128xf32> to vector<64x128xbf16>
    %c13 = arith.constant 13 : index
    %c0_95 = arith.constant 0 : index
    %c0_96 = arith.constant 0 : index
    %109 = vector.load %arg2[%c13, %c0_95, %c0_96] : memref<25x128x128xbf16, #tpu.memory_space<vmem>>, vector<1x128x128xbf16>
    %110 = vector.shape_cast %109 : vector<1x128x128xbf16> to vector<128x128xbf16>
    %cst_97 = arith.constant dense<0.000000e+00> : vector<64x128xf32>
    %111 = tpu.matmul %108, %110, %cst_97 {dimension_numbers = #tpu.dot_dimension_numbers<[1], [0], [0], [1], [0, 0, 1, 1], [], []>} : vector<64x128xbf16>, vector<128x128xbf16>, vector<64x128xf32> -> vector<64x128xf32>
    %112 = arith.addf %104, %111 : vector<64x128xf32>
    %c0_98 = arith.constant 0 : index
    %c2_99 = arith.constant 2 : index
    %c4_100 = arith.constant 4 : index
    %c0_101 = arith.constant 0 : index
    %113 = vector.load %arg1[%c0_98, %c2_99, %c4_100, %c0_101] : memref<1x12x12x128xf32, #tpu.memory_space<vmem>>, vector<1x8x8x128xf32>
    %114 = vector.shape_cast %113 : vector<1x8x8x128xf32> to vector<8x8x128xf32>
    %115 = vector.shape_cast %114 : vector<8x8x128xf32> to vector<64x128xf32>
    %116 = arith.truncf %115 : vector<64x128xf32> to vector<64x128xbf16>
    %c14 = arith.constant 14 : index
    %c0_102 = arith.constant 0 : index
    %c0_103 = arith.constant 0 : index
    %117 = vector.load %arg2[%c14, %c0_102, %c0_103] : memref<25x128x128xbf16, #tpu.memory_space<vmem>>, vector<1x128x128xbf16>
    %118 = vector.shape_cast %117 : vector<1x128x128xbf16> to vector<128x128xbf16>
    %cst_104 = arith.constant dense<0.000000e+00> : vector<64x128xf32>
    %119 = tpu.matmul %116, %118, %cst_104 {dimension_numbers = #tpu.dot_dimension_numbers<[1], [0], [0], [1], [0, 0, 1, 1], [], []>} : vector<64x128xbf16>, vector<128x128xbf16>, vector<64x128xf32> -> vector<64x128xf32>
    %120 = arith.addf %112, %119 : vector<64x128xf32>
    %c0_105 = arith.constant 0 : index
    %c3_106 = arith.constant 3 : index
    %c0_107 = arith.constant 0 : index
    %c0_108 = arith.constant 0 : index
    %121 = vector.load %arg1[%c0_105, %c3_106, %c0_107, %c0_108] : memref<1x12x12x128xf32, #tpu.memory_space<vmem>>, vector<1x8x8x128xf32>
    %122 = vector.shape_cast %121 : vector<1x8x8x128xf32> to vector<8x8x128xf32>
    %123 = vector.shape_cast %122 : vector<8x8x128xf32> to vector<64x128xf32>
    %124 = arith.truncf %123 : vector<64x128xf32> to vector<64x128xbf16>
    %c15 = arith.constant 15 : index
    %c0_109 = arith.constant 0 : index
    %c0_110 = arith.constant 0 : index
    %125 = vector.load %arg2[%c15, %c0_109, %c0_110] : memref<25x128x128xbf16, #tpu.memory_space<vmem>>, vector<1x128x128xbf16>
    %126 = vector.shape_cast %125 : vector<1x128x128xbf16> to vector<128x128xbf16>
    %cst_111 = arith.constant dense<0.000000e+00> : vector<64x128xf32>
    %127 = tpu.matmul %124, %126, %cst_111 {dimension_numbers = #tpu.dot_dimension_numbers<[1], [0], [0], [1], [0, 0, 1, 1], [], []>} : vector<64x128xbf16>, vector<128x128xbf16>, vector<64x128xf32> -> vector<64x128xf32>
    %128 = arith.addf %120, %127 : vector<64x128xf32>
    %c0_112 = arith.constant 0 : index
    %c3_113 = arith.constant 3 : index
    %c1_114 = arith.constant 1 : index
    %c0_115 = arith.constant 0 : index
    %129 = vector.load %arg1[%c0_112, %c3_113, %c1_114, %c0_115] : memref<1x12x12x128xf32, #tpu.memory_space<vmem>>, vector<1x8x8x128xf32>
    %130 = vector.shape_cast %129 : vector<1x8x8x128xf32> to vector<8x8x128xf32>
    %131 = vector.shape_cast %130 : vector<8x8x128xf32> to vector<64x128xf32>
    %132 = arith.truncf %131 : vector<64x128xf32> to vector<64x128xbf16>
    %c16 = arith.constant 16 : index
    %c0_116 = arith.constant 0 : index
    %c0_117 = arith.constant 0 : index
    %133 = vector.load %arg2[%c16, %c0_116, %c0_117] : memref<25x128x128xbf16, #tpu.memory_space<vmem>>, vector<1x128x128xbf16>
    %134 = vector.shape_cast %133 : vector<1x128x128xbf16> to vector<128x128xbf16>
    %cst_118 = arith.constant dense<0.000000e+00> : vector<64x128xf32>
    %135 = tpu.matmul %132, %134, %cst_118 {dimension_numbers = #tpu.dot_dimension_numbers<[1], [0], [0], [1], [0, 0, 1, 1], [], []>} : vector<64x128xbf16>, vector<128x128xbf16>, vector<64x128xf32> -> vector<64x128xf32>
    %136 = arith.addf %128, %135 : vector<64x128xf32>
    %c0_119 = arith.constant 0 : index
    %c3_120 = arith.constant 3 : index
    %c2_121 = arith.constant 2 : index
    %c0_122 = arith.constant 0 : index
    %137 = vector.load %arg1[%c0_119, %c3_120, %c2_121, %c0_122] : memref<1x12x12x128xf32, #tpu.memory_space<vmem>>, vector<1x8x8x128xf32>
    %138 = vector.shape_cast %137 : vector<1x8x8x128xf32> to vector<8x8x128xf32>
    %139 = vector.shape_cast %138 : vector<8x8x128xf32> to vector<64x128xf32>
    %140 = arith.truncf %139 : vector<64x128xf32> to vector<64x128xbf16>
    %c17 = arith.constant 17 : index
    %c0_123 = arith.constant 0 : index
    %c0_124 = arith.constant 0 : index
    %141 = vector.load %arg2[%c17, %c0_123, %c0_124] : memref<25x128x128xbf16, #tpu.memory_space<vmem>>, vector<1x128x128xbf16>
    %142 = vector.shape_cast %141 : vector<1x128x128xbf16> to vector<128x128xbf16>
    %cst_125 = arith.constant dense<0.000000e+00> : vector<64x128xf32>
    %143 = tpu.matmul %140, %142, %cst_125 {dimension_numbers = #tpu.dot_dimension_numbers<[1], [0], [0], [1], [0, 0, 1, 1], [], []>} : vector<64x128xbf16>, vector<128x128xbf16>, vector<64x128xf32> -> vector<64x128xf32>
    %144 = arith.addf %136, %143 : vector<64x128xf32>
    %c0_126 = arith.constant 0 : index
    %c3_127 = arith.constant 3 : index
    %c3_128 = arith.constant 3 : index
    %c0_129 = arith.constant 0 : index
    %145 = vector.load %arg1[%c0_126, %c3_127, %c3_128, %c0_129] : memref<1x12x12x128xf32, #tpu.memory_space<vmem>>, vector<1x8x8x128xf32>
    %146 = vector.shape_cast %145 : vector<1x8x8x128xf32> to vector<8x8x128xf32>
    %147 = vector.shape_cast %146 : vector<8x8x128xf32> to vector<64x128xf32>
    %148 = arith.truncf %147 : vector<64x128xf32> to vector<64x128xbf16>
    %c18 = arith.constant 18 : index
    %c0_130 = arith.constant 0 : index
    %c0_131 = arith.constant 0 : index
    %149 = vector.load %arg2[%c18, %c0_130, %c0_131] : memref<25x128x128xbf16, #tpu.memory_space<vmem>>, vector<1x128x128xbf16>
    %150 = vector.shape_cast %149 : vector<1x128x128xbf16> to vector<128x128xbf16>
    %cst_132 = arith.constant dense<0.000000e+00> : vector<64x128xf32>
    %151 = tpu.matmul %148, %150, %cst_132 {dimension_numbers = #tpu.dot_dimension_numbers<[1], [0], [0], [1], [0, 0, 1, 1], [], []>} : vector<64x128xbf16>, vector<128x128xbf16>, vector<64x128xf32> -> vector<64x128xf32>
    %152 = arith.addf %144, %151 : vector<64x128xf32>
    %c0_133 = arith.constant 0 : index
    %c3_134 = arith.constant 3 : index
    %c4_135 = arith.constant 4 : index
    %c0_136 = arith.constant 0 : index
    %153 = vector.load %arg1[%c0_133, %c3_134, %c4_135, %c0_136] : memref<1x12x12x128xf32, #tpu.memory_space<vmem>>, vector<1x8x8x128xf32>
    %154 = vector.shape_cast %153 : vector<1x8x8x128xf32> to vector<8x8x128xf32>
    %155 = vector.shape_cast %154 : vector<8x8x128xf32> to vector<64x128xf32>
    %156 = arith.truncf %155 : vector<64x128xf32> to vector<64x128xbf16>
    %c19 = arith.constant 19 : index
    %c0_137 = arith.constant 0 : index
    %c0_138 = arith.constant 0 : index
    %157 = vector.load %arg2[%c19, %c0_137, %c0_138] : memref<25x128x128xbf16, #tpu.memory_space<vmem>>, vector<1x128x128xbf16>
    %158 = vector.shape_cast %157 : vector<1x128x128xbf16> to vector<128x128xbf16>
    %cst_139 = arith.constant dense<0.000000e+00> : vector<64x128xf32>
    %159 = tpu.matmul %156, %158, %cst_139 {dimension_numbers = #tpu.dot_dimension_numbers<[1], [0], [0], [1], [0, 0, 1, 1], [], []>} : vector<64x128xbf16>, vector<128x128xbf16>, vector<64x128xf32> -> vector<64x128xf32>
    %160 = arith.addf %152, %159 : vector<64x128xf32>
    %c0_140 = arith.constant 0 : index
    %c4_141 = arith.constant 4 : index
    %c0_142 = arith.constant 0 : index
    %c0_143 = arith.constant 0 : index
    %161 = vector.load %arg1[%c0_140, %c4_141, %c0_142, %c0_143] : memref<1x12x12x128xf32, #tpu.memory_space<vmem>>, vector<1x8x8x128xf32>
    %162 = vector.shape_cast %161 : vector<1x8x8x128xf32> to vector<8x8x128xf32>
    %163 = vector.shape_cast %162 : vector<8x8x128xf32> to vector<64x128xf32>
    %164 = arith.truncf %163 : vector<64x128xf32> to vector<64x128xbf16>
    %c20 = arith.constant 20 : index
    %c0_144 = arith.constant 0 : index
    %c0_145 = arith.constant 0 : index
    %165 = vector.load %arg2[%c20, %c0_144, %c0_145] : memref<25x128x128xbf16, #tpu.memory_space<vmem>>, vector<1x128x128xbf16>
    %166 = vector.shape_cast %165 : vector<1x128x128xbf16> to vector<128x128xbf16>
    %cst_146 = arith.constant dense<0.000000e+00> : vector<64x128xf32>
    %167 = tpu.matmul %164, %166, %cst_146 {dimension_numbers = #tpu.dot_dimension_numbers<[1], [0], [0], [1], [0, 0, 1, 1], [], []>} : vector<64x128xbf16>, vector<128x128xbf16>, vector<64x128xf32> -> vector<64x128xf32>
    %168 = arith.addf %160, %167 : vector<64x128xf32>
    %c0_147 = arith.constant 0 : index
    %c4_148 = arith.constant 4 : index
    %c1_149 = arith.constant 1 : index
    %c0_150 = arith.constant 0 : index
    %169 = vector.load %arg1[%c0_147, %c4_148, %c1_149, %c0_150] : memref<1x12x12x128xf32, #tpu.memory_space<vmem>>, vector<1x8x8x128xf32>
    %170 = vector.shape_cast %169 : vector<1x8x8x128xf32> to vector<8x8x128xf32>
    %171 = vector.shape_cast %170 : vector<8x8x128xf32> to vector<64x128xf32>
    %172 = arith.truncf %171 : vector<64x128xf32> to vector<64x128xbf16>
    %c21 = arith.constant 21 : index
    %c0_151 = arith.constant 0 : index
    %c0_152 = arith.constant 0 : index
    %173 = vector.load %arg2[%c21, %c0_151, %c0_152] : memref<25x128x128xbf16, #tpu.memory_space<vmem>>, vector<1x128x128xbf16>
    %174 = vector.shape_cast %173 : vector<1x128x128xbf16> to vector<128x128xbf16>
    %cst_153 = arith.constant dense<0.000000e+00> : vector<64x128xf32>
    %175 = tpu.matmul %172, %174, %cst_153 {dimension_numbers = #tpu.dot_dimension_numbers<[1], [0], [0], [1], [0, 0, 1, 1], [], []>} : vector<64x128xbf16>, vector<128x128xbf16>, vector<64x128xf32> -> vector<64x128xf32>
    %176 = arith.addf %168, %175 : vector<64x128xf32>
    %c0_154 = arith.constant 0 : index
    %c4_155 = arith.constant 4 : index
    %c2_156 = arith.constant 2 : index
    %c0_157 = arith.constant 0 : index
    %177 = vector.load %arg1[%c0_154, %c4_155, %c2_156, %c0_157] : memref<1x12x12x128xf32, #tpu.memory_space<vmem>>, vector<1x8x8x128xf32>
    %178 = vector.shape_cast %177 : vector<1x8x8x128xf32> to vector<8x8x128xf32>
    %179 = vector.shape_cast %178 : vector<8x8x128xf32> to vector<64x128xf32>
    %180 = arith.truncf %179 : vector<64x128xf32> to vector<64x128xbf16>
    %c22 = arith.constant 22 : index
    %c0_158 = arith.constant 0 : index
    %c0_159 = arith.constant 0 : index
    %181 = vector.load %arg2[%c22, %c0_158, %c0_159] : memref<25x128x128xbf16, #tpu.memory_space<vmem>>, vector<1x128x128xbf16>
    %182 = vector.shape_cast %181 : vector<1x128x128xbf16> to vector<128x128xbf16>
    %cst_160 = arith.constant dense<0.000000e+00> : vector<64x128xf32>
    %183 = tpu.matmul %180, %182, %cst_160 {dimension_numbers = #tpu.dot_dimension_numbers<[1], [0], [0], [1], [0, 0, 1, 1], [], []>} : vector<64x128xbf16>, vector<128x128xbf16>, vector<64x128xf32> -> vector<64x128xf32>
    %184 = arith.addf %176, %183 : vector<64x128xf32>
    %c0_161 = arith.constant 0 : index
    %c4_162 = arith.constant 4 : index
    %c3_163 = arith.constant 3 : index
    %c0_164 = arith.constant 0 : index
    %185 = vector.load %arg1[%c0_161, %c4_162, %c3_163, %c0_164] : memref<1x12x12x128xf32, #tpu.memory_space<vmem>>, vector<1x8x8x128xf32>
    %186 = vector.shape_cast %185 : vector<1x8x8x128xf32> to vector<8x8x128xf32>
    %187 = vector.shape_cast %186 : vector<8x8x128xf32> to vector<64x128xf32>
    %188 = arith.truncf %187 : vector<64x128xf32> to vector<64x128xbf16>
    %c23 = arith.constant 23 : index
    %c0_165 = arith.constant 0 : index
    %c0_166 = arith.constant 0 : index
    %189 = vector.load %arg2[%c23, %c0_165, %c0_166] : memref<25x128x128xbf16, #tpu.memory_space<vmem>>, vector<1x128x128xbf16>
    %190 = vector.shape_cast %189 : vector<1x128x128xbf16> to vector<128x128xbf16>
    %cst_167 = arith.constant dense<0.000000e+00> : vector<64x128xf32>
    %191 = tpu.matmul %188, %190, %cst_167 {dimension_numbers = #tpu.dot_dimension_numbers<[1], [0], [0], [1], [0, 0, 1, 1], [], []>} : vector<64x128xbf16>, vector<128x128xbf16>, vector<64x128xf32> -> vector<64x128xf32>
    %192 = arith.addf %184, %191 : vector<64x128xf32>
    %c0_168 = arith.constant 0 : index
    %c4_169 = arith.constant 4 : index
    %c4_170 = arith.constant 4 : index
    %c0_171 = arith.constant 0 : index
    %193 = vector.load %arg1[%c0_168, %c4_169, %c4_170, %c0_171] : memref<1x12x12x128xf32, #tpu.memory_space<vmem>>, vector<1x8x8x128xf32>
    %194 = vector.shape_cast %193 : vector<1x8x8x128xf32> to vector<8x8x128xf32>
    %195 = vector.shape_cast %194 : vector<8x8x128xf32> to vector<64x128xf32>
    %196 = arith.truncf %195 : vector<64x128xf32> to vector<64x128xbf16>
    %c24 = arith.constant 24 : index
    %c0_172 = arith.constant 0 : index
    %c0_173 = arith.constant 0 : index
    %197 = vector.load %arg2[%c24, %c0_172, %c0_173] : memref<25x128x128xbf16, #tpu.memory_space<vmem>>, vector<1x128x128xbf16>
    %198 = vector.shape_cast %197 : vector<1x128x128xbf16> to vector<128x128xbf16>
    %cst_174 = arith.constant dense<0.000000e+00> : vector<64x128xf32>
    %199 = tpu.matmul %196, %198, %cst_174 {dimension_numbers = #tpu.dot_dimension_numbers<[1], [0], [0], [1], [0, 0, 1, 1], [], []>} : vector<64x128xbf16>, vector<128x128xbf16>, vector<64x128xf32> -> vector<64x128xf32>
    %200 = arith.addf %192, %199 : vector<64x128xf32>
    %c0_175 = arith.constant 0 : index
    %c0_176 = arith.constant 0 : index
    %201 = vector.load %arg3[%c0_175, %c0_176] : memref<1x128xf32, #tpu.memory_space<vmem>>, vector<1x128xf32>
    %202 = vector.broadcast %201 : vector<1x128xf32> to vector<64x128xf32>
    %203 = arith.mulf %200, %202 : vector<64x128xf32>
    %c0_177 = arith.constant 0 : index
    %c0_178 = arith.constant 0 : index
    %204 = vector.load %arg4[%c0_177, %c0_178] : memref<1x128xf32, #tpu.memory_space<vmem>>, vector<1x128xf32>
    %205 = vector.broadcast %204 : vector<1x128xf32> to vector<64x128xf32>
    %206 = arith.addf %203, %205 : vector<64x128xf32>
    %c0_179 = arith.constant 0 : index
    %c0_180 = arith.constant 0 : index
    %c0_181 = arith.constant 0 : index
    %207 = vector.load %arg5[%c0_179, %c0_180, %c0_181] : memref<1x64x128xf32, #tpu.memory_space<vmem>>, vector<1x64x128xf32>
    %208 = vector.shape_cast %207 : vector<1x64x128xf32> to vector<64x128xf32>
    %209 = vector.shape_cast %206 : vector<64x128xf32> to vector<1x64x128xf32>
    tpu.vector_store %arg5[%c0_179, %c0_180, %c0_181], %209 {strides = array<i32>} : memref<1x64x128xf32, #tpu.memory_space<vmem>>, vector<1x64x128xf32>,
    return
  }
  func.func @transform_0(%arg0: i32) -> (i32, i32, i32, i32) {
    %c0_i32 = arith.constant 0 : i32
    %c0_i32_0 = arith.constant 0 : i32
    %c0_i32_1 = arith.constant 0 : i32
    %c0_i32_2 = arith.constant 0 : i32
    return %arg0, %c0_i32, %c0_i32_0, %c0_i32_1 : i32, i32, i32, i32
  }
  func.func @transform_1(%arg0: i32) -> (i32, i32, i32) {
    %c0_i32 = arith.constant 0 : i32
    %c0_i32_0 = arith.constant 0 : i32
    %c0_i32_1 = arith.constant 0 : i32
    %c0_i32_2 = arith.constant 0 : i32
    return %c0_i32, %c0_i32_0, %c0_i32_1 : i32, i32, i32
  }
  func.func @transform_2(%arg0: i32) -> (i32, i32) {
    %c0_i32 = arith.constant 0 : i32
    %c0_i32_0 = arith.constant 0 : i32
    %c0_i32_1 = arith.constant 0 : i32
    return %c0_i32, %c0_i32_0 : i32, i32
  }
  func.func @transform_3(%arg0: i32) -> (i32, i32) {
    %c0_i32 = arith.constant 0 : i32
    %c0_i32_0 = arith.constant 0 : i32
    %c0_i32_1 = arith.constant 0 : i32
    return %c0_i32, %c0_i32_0 : i32, i32
  }
  func.func @transform_4(%arg0: i32) -> (i32, i32, i32) {
    %c0_i32 = arith.constant 0 : i32
    %c0_i32_0 = arith.constant 0 : i32
    %c0_i32_1 = arith.constant 0 : i32
    return %arg0, %c0_i32, %c0_i32_0 : i32, i32, i32
  }
}

module attributes {stable_mosaic.version = 11 : i64} {
  func.func @heads_kernel(%arg0: memref<2x2048xf32, #tpu.memory_space<vmem>>, %arg1: memref<2x2048xf32, #tpu.memory_space<vmem>>, %arg2: memref<2x2048xf32, #tpu.memory_space<vmem>>, %arg3: memref<2x2048xf32, #tpu.memory_space<vmem>>, %arg4: memref<2048x128xbf16, #tpu.memory_space<vmem>>, %arg5: memref<1x128xf32, #tpu.memory_space<vmem>>, %arg6: memref<128x64xbf16, #tpu.memory_space<vmem>>, %arg7: memref<1x64xf32, #tpu.memory_space<vmem>>, %arg8: memref<64x32xbf16, #tpu.memory_space<vmem>>, %arg9: memref<1x32xf32, #tpu.memory_space<vmem>>, %arg10: memref<32x1xbf16, #tpu.memory_space<vmem>>, %arg11: memref<1x1xf32, #tpu.memory_space<vmem>>, %arg12: memref<2048x128xbf16, #tpu.memory_space<vmem>>, %arg13: memref<1x128xf32, #tpu.memory_space<vmem>>, %arg14: memref<128x2xbf16, #tpu.memory_space<vmem>>, %arg15: memref<1x2xf32, #tpu.memory_space<vmem>>, %arg16: memref<2x1xf32, #tpu.memory_space<vmem>>, %arg17: memref<2x2xf32, #tpu.memory_space<vmem>>) attributes {dimension_semantics = [], scalar_prefetch = 0 : i64, scratch_operands = 0 : i64, tpu.core_type = #tpu.core_type<tc>} {
    %c0 = arith.constant 0 : index
    %c0_0 = arith.constant 0 : index
    %0 = vector.load %arg0[%c0, %c0_0] : memref<2x2048xf32, #tpu.memory_space<vmem>>, vector<2x2048xf32>
    %c0_1 = arith.constant 0 : index
    %c0_2 = arith.constant 0 : index
    %1 = vector.load %arg1[%c0_1, %c0_2] : memref<2x2048xf32, #tpu.memory_space<vmem>>, vector<2x2048xf32>
    %2 = arith.maximumf %0, %1 : vector<2x2048xf32>
    %c0_3 = arith.constant 0 : index
    %c0_4 = arith.constant 0 : index
    %3 = vector.load %arg2[%c0_3, %c0_4] : memref<2x2048xf32, #tpu.memory_space<vmem>>, vector<2x2048xf32>
    %c0_5 = arith.constant 0 : index
    %c0_6 = arith.constant 0 : index
    %4 = vector.load %arg3[%c0_5, %c0_6] : memref<2x2048xf32, #tpu.memory_space<vmem>>, vector<2x2048xf32>
    %5 = arith.maximumf %3, %4 : vector<2x2048xf32>
    %6 = arith.maximumf %2, %5 : vector<2x2048xf32>
    %cst = arith.constant 0.000000e+00 : f32
    %7 = vector.broadcast %cst : f32 to vector<2x2048xf32>
    %8 = arith.maximumf %6, %7 : vector<2x2048xf32>
    %9 = arith.truncf %8 : vector<2x2048xf32> to vector<2x2048xbf16>
    %c0_7 = arith.constant 0 : index
    %c0_8 = arith.constant 0 : index
    %10 = vector.load %arg4[%c0_7, %c0_8] : memref<2048x128xbf16, #tpu.memory_space<vmem>>, vector<2048x128xbf16>
    %cst_9 = arith.constant dense<0.000000e+00> : vector<2x128xf32>
    %11 = tpu.matmul %9, %10, %cst_9 {dimension_numbers = #tpu.dot_dimension_numbers<[1], [0], [0], [1], [0, 0, 1, 1], [], []>} : vector<2x2048xbf16>, vector<2048x128xbf16>, vector<2x128xf32> -> vector<2x128xf32>
    %c0_10 = arith.constant 0 : index
    %c0_11 = arith.constant 0 : index
    %12 = vector.load %arg5[%c0_10, %c0_11] : memref<1x128xf32, #tpu.memory_space<vmem>>, vector<1x128xf32>
    %13 = vector.broadcast %12 : vector<1x128xf32> to vector<2x128xf32>
    %14 = arith.addf %11, %13 : vector<2x128xf32>
    %cst_12 = arith.constant 0.000000e+00 : f32
    %15 = vector.broadcast %cst_12 : f32 to vector<2x128xf32>
    %16 = arith.maximumf %14, %15 : vector<2x128xf32>
    %17 = arith.truncf %16 : vector<2x128xf32> to vector<2x128xbf16>
    %c0_13 = arith.constant 0 : index
    %c0_14 = arith.constant 0 : index
    %18 = vector.load %arg6[%c0_13, %c0_14] : memref<128x64xbf16, #tpu.memory_space<vmem>>, vector<128x64xbf16>
    %cst_15 = arith.constant dense<0.000000e+00> : vector<2x64xf32>
    %19 = tpu.matmul %17, %18, %cst_15 {dimension_numbers = #tpu.dot_dimension_numbers<[1], [0], [0], [1], [0, 0, 1, 1], [], []>} : vector<2x128xbf16>, vector<128x64xbf16>, vector<2x64xf32> -> vector<2x64xf32>
    %c0_16 = arith.constant 0 : index
    %c0_17 = arith.constant 0 : index
    %20 = vector.load %arg7[%c0_16, %c0_17] : memref<1x64xf32, #tpu.memory_space<vmem>>, vector<1x64xf32>
    %21 = vector.broadcast %20 : vector<1x64xf32> to vector<2x64xf32>
    %22 = arith.addf %19, %21 : vector<2x64xf32>
    %cst_18 = arith.constant 0.000000e+00 : f32
    %23 = vector.broadcast %cst_18 : f32 to vector<2x64xf32>
    %24 = arith.maximumf %22, %23 : vector<2x64xf32>
    %25 = arith.truncf %24 : vector<2x64xf32> to vector<2x64xbf16>
    %c0_19 = arith.constant 0 : index
    %c0_20 = arith.constant 0 : index
    %26 = vector.load %arg8[%c0_19, %c0_20] : memref<64x32xbf16, #tpu.memory_space<vmem>>, vector<64x32xbf16>
    %cst_21 = arith.constant dense<0.000000e+00> : vector<2x32xf32>
    %27 = tpu.matmul %25, %26, %cst_21 {dimension_numbers = #tpu.dot_dimension_numbers<[1], [0], [0], [1], [0, 0, 1, 1], [], []>} : vector<2x64xbf16>, vector<64x32xbf16>, vector<2x32xf32> -> vector<2x32xf32>
    %c0_22 = arith.constant 0 : index
    %c0_23 = arith.constant 0 : index
    %28 = vector.load %arg9[%c0_22, %c0_23] : memref<1x32xf32, #tpu.memory_space<vmem>>, vector<1x32xf32>
    %29 = vector.broadcast %28 : vector<1x32xf32> to vector<2x32xf32>
    %30 = arith.addf %27, %29 : vector<2x32xf32>
    %cst_24 = arith.constant 0.000000e+00 : f32
    %31 = vector.broadcast %cst_24 : f32 to vector<2x32xf32>
    %32 = arith.maximumf %30, %31 : vector<2x32xf32>
    %33 = arith.truncf %32 : vector<2x32xf32> to vector<2x32xbf16>
    %c0_25 = arith.constant 0 : index
    %c0_26 = arith.constant 0 : index
    %34 = vector.load %arg10[%c0_25, %c0_26] : memref<32x1xbf16, #tpu.memory_space<vmem>>, vector<32x1xbf16>
    %cst_27 = arith.constant dense<0.000000e+00> : vector<2x1xf32>
    %35 = tpu.matmul %33, %34, %cst_27 {dimension_numbers = #tpu.dot_dimension_numbers<[1], [0], [0], [1], [0, 0, 1, 1], [], []>} : vector<2x32xbf16>, vector<32x1xbf16>, vector<2x1xf32> -> vector<2x1xf32>
    %c0_28 = arith.constant 0 : index
    %c0_29 = arith.constant 0 : index
    %36 = vector.load %arg11[%c0_28, %c0_29] : memref<1x1xf32, #tpu.memory_space<vmem>>, vector<1x1xf32>
    %37 = vector.broadcast %36 : vector<1x1xf32> to vector<2x1xf32>
    %38 = arith.addf %35, %37 : vector<2x1xf32>
    %c0_30 = arith.constant 0 : index
    %c0_31 = arith.constant 0 : index
    %39 = vector.load %arg16[%c0_30, %c0_31] : memref<2x1xf32, #tpu.memory_space<vmem>>, vector<2x1xf32>
    tpu.vector_store %arg16[%c0_30, %c0_31], %38 {strides = array<i32>} : memref<2x1xf32, #tpu.memory_space<vmem>>, vector<2x1xf32>,
    %c0_32 = arith.constant 0 : index
    %c0_33 = arith.constant 0 : index
    %40 = vector.load %arg12[%c0_32, %c0_33] : memref<2048x128xbf16, #tpu.memory_space<vmem>>, vector<2048x128xbf16>
    %cst_34 = arith.constant dense<0.000000e+00> : vector<2x128xf32>
    %41 = tpu.matmul %9, %40, %cst_34 {dimension_numbers = #tpu.dot_dimension_numbers<[1], [0], [0], [1], [0, 0, 1, 1], [], []>} : vector<2x2048xbf16>, vector<2048x128xbf16>, vector<2x128xf32> -> vector<2x128xf32>
    %c0_35 = arith.constant 0 : index
    %c0_36 = arith.constant 0 : index
    %42 = vector.load %arg13[%c0_35, %c0_36] : memref<1x128xf32, #tpu.memory_space<vmem>>, vector<1x128xf32>
    %43 = vector.broadcast %42 : vector<1x128xf32> to vector<2x128xf32>
    %44 = arith.addf %41, %43 : vector<2x128xf32>
    %cst_37 = arith.constant 0.000000e+00 : f32
    %45 = vector.broadcast %cst_37 : f32 to vector<2x128xf32>
    %46 = arith.maximumf %44, %45 : vector<2x128xf32>
    %47 = arith.truncf %46 : vector<2x128xf32> to vector<2x128xbf16>
    %c0_38 = arith.constant 0 : index
    %c0_39 = arith.constant 0 : index
    %48 = vector.load %arg14[%c0_38, %c0_39] : memref<128x2xbf16, #tpu.memory_space<vmem>>, vector<128x2xbf16>
    %cst_40 = arith.constant dense<0.000000e+00> : vector<2x2xf32>
    %49 = tpu.matmul %47, %48, %cst_40 {dimension_numbers = #tpu.dot_dimension_numbers<[1], [0], [0], [1], [0, 0, 1, 1], [], []>} : vector<2x128xbf16>, vector<128x2xbf16>, vector<2x2xf32> -> vector<2x2xf32>
    %c0_41 = arith.constant 0 : index
    %c0_42 = arith.constant 0 : index
    %50 = vector.load %arg15[%c0_41, %c0_42] : memref<1x2xf32, #tpu.memory_space<vmem>>, vector<1x2xf32>
    %51 = vector.broadcast %50 : vector<1x2xf32> to vector<2x2xf32>
    %52 = arith.addf %49, %51 : vector<2x2xf32>
    %cst_43 = arith.constant dense<0xFF800000> : vector<2xf32>
    %53 = vector.multi_reduction <maximumf>, %52, %cst_43 [1] : vector<2x2xf32> to vector<2xf32>
    %54 = vector.shape_cast %53 : vector<2xf32> to vector<2x1xf32>
    %55 = vector.broadcast %54 : vector<2x1xf32> to vector<2x2xf32>
    %56 = arith.subf %52, %55 : vector<2x2xf32>
    %57 = math.exp %56 : vector<2x2xf32>
    %cst_44 = arith.constant dense<0.000000e+00> : vector<2xf32>
    %58 = vector.multi_reduction <add>, %57, %cst_44 [1] : vector<2x2xf32> to vector<2xf32>
    %59 = vector.shape_cast %58 : vector<2xf32> to vector<2x1xf32>
    %60 = math.log %59 : vector<2x1xf32>
    %61 = arith.addf %54, %60 : vector<2x1xf32>
    %62 = vector.broadcast %61 : vector<2x1xf32> to vector<2x2xf32>
    %63 = arith.subf %52, %62 : vector<2x2xf32>
    %c0_45 = arith.constant 0 : index
    %c0_46 = arith.constant 0 : index
    %64 = vector.load %arg17[%c0_45, %c0_46] : memref<2x2xf32, #tpu.memory_space<vmem>>, vector<2x2xf32>
    tpu.vector_store %arg17[%c0_45, %c0_46], %63 {strides = array<i32>} : memref<2x2xf32, #tpu.memory_space<vmem>>, vector<2x2xf32>,
    return
  }
}

</mosaic_0001>

<bundles_post_ra>
// kernel: dann_conv2d_forward.3
= control target key start
LH: loop header
LB: loop body
LE: loop exit
PB: predicated region body
PF: predicated region fallthrough
CT: control target
= control target key end

     0   :  { %s1492_s15 = smov 0   ;;  %s1878_s0 = inlined_call_operand.vmem [shape: bf16[2,576,25], index: 0, kind: input, shape index: {}]   ;;  %s1879_s1 = inlined_call_operand.vmem [shape: bf16[25,128], index: 1, kind: input, shape index: {}]   ;;  %s1880_s2 = inlined_call_operand.vmem [shape: f32[1,128], index: 2, kind: input, shape index: {}]   ;;  %s1881_s3 = inlined_call_operand.vmem [shape: f32[1,128], index: 3, kind: input, shape index: {}]   ;;  %s1882_s4 = inlined_call_operand.vmem [shape: f32[2,144,128], index: 4, kind: output, shape index: {}]  }
   0x1 LB: > { %s1206_s16 = sadd.s32 4294967295, %s1464_s15   ;;  %p1210_p0 = scmp.ge.s32.totalorder %s1464_s15, 1  ;;  %s1464_s15 = sphi %s1492_s15, %s14_s15  }
   0x2   : > { %p162_p1 = scmp.lt.s32.totalorder %s1464_s15, 3 }
   0x4   : > { %p163_p2 = pnand %p1210_p0, %p162_p1 }
   0x5   : > { %v1420_v0 = vld [vmem:[%s1879_s1] sm:$0xff] (!%p163_p2)   ;;  %vm575_vm0 = vcmask (!%p163_p2), 1043456   ;;  %v1421_v1 = vld [vmem:[%s1879_s1 + $0x8] sm:$0x1f] (!%p163_p2)   ;;  %vm576_vm1 = vcmask (!%p163_p2), 1044480   ;;  %p188_p3 = scmp.lt.s32.totalorder (!%p163_p2), %s1206_s16, 1 }
   0x6   : > { %166 = sbr.rel (%p163_p2) target bundleno = 312 (0x138), region = 36  ;;  %1329 = vmatprep.subr.bf16.mxu0 (!%p163_p2), %v1420_v0  ;;  %1405 = vmatprep.subr.bf16.mxu1 (!%p163_p2), %v1420_v0  ;;  %v1466_v2 = vmov (!%p163_p2), 65535   ;;  %vm466_vm2 = vcmask (!%p163_p2), 203776   ;;  %v1589_v59 = vld [vmem:[%s1880_s2] ss:$0 sm:$0xff] (!%p163_p2) }
   0x7   : > { %1330 = vmatpush3.bf16.msra.mxu0 (!%p163_p2), %v1420_v0  ;;  %1407 = vmatpush3.bf16.msra.mxu1 (!%p163_p2), %v1420_v0  ;;  %v577_v3 = vsel (!%p163_p2), %vm575_vm0, 4294967295, %v1466_v2 }
   0x8   : > { %v578_v4 = vsel (!%p163_p2), %vm576_vm1, %v577_v3, 0 }
   0x9   : > { %v580_v5 = vand.u32 (!%p163_p2), %v1421_v1, %v578_v4 }
   0xb   : > { %1331 = vmatprep.subr.bf16.mxu0 (!%p163_p2), %v580_v5  ;;  %1406 = vmatprep.subr.bf16.mxu1 (!%p163_p2), %v580_v5 }
   0xc   : > { %1332 = vmatpush3.bf16.msra.mxu0 (!%p163_p2), %v580_v5  ;;  %1408 = vmatpush3.bf16.msra.mxu1 (!%p163_p2), %v580_v5 }
   0xd   : > { %s1884_s16 = smov (!%p188_p3, %s1206_s16), 1 }
   0xe   : > { %s1409_s21 = smul.u32 288, %s1884_s16 }
   0xf   : > { %s1410_s29 = smul.u32 144, %s1884_s16 }
  0x10   : > { %s1512_s24 = scalar_lea.vmem %s1878_s0, %s1409_s21 }
  0x11   : > { %v1422_v6 = vld [vmem:[%s1512_s24] sm:$0xff]   ;;  %v1423_v7 = vld [vmem:[%s1512_s24 + $0x90] sm:$0xff]   ;;  %v1424_v8 = vld [vmem:[%s1512_s24 + $0x8] sm:$0xff]   ;;  %s1741_s6 = scalar_lea.vmem %s1882_s4, %s1410_s29 }
  0x12   : > { %1333 = vmatprep.mubr.msk.bf16.mxu0 %vm466_vm2, %v1422_v6  ;;  %1369 = vmatprep.mubr.msk.bf16.mxu1 %vm466_vm2, %v1423_v7  ;;  %v1425_v9 = vld [vmem:[%s1512_s24 + $0x98] sm:$0xff]   ;;  %v1426_v10 = vld [vmem:[%s1512_s24 + $0x10] sm:$0xff]   ;;  %v1427_v11 = vld [vmem:[%s1512_s24 + $0xa0] sm:$0xff]  }
  0x13   : > { %1334 = vmatmul.mubr.msk.bf16.vlgmr.msra.gmra.mrb[0].mxu0 %vm466_vm2, %v1424_v8  ;;  %1370 = vmatmul.mubr.msk.bf16.vlgmr.msra.gmra.mrb[0].mxu1 %vm466_vm2, %v1425_v9  ;;  %v1428_v12 = vld [vmem:[%s1512_s24 + $0x18] sm:$0xff]   ;;  %v1429_v13 = vld [vmem:[%s1512_s24 + $0xa8] sm:$0xff]   ;;  %v1430_v14 = vld [vmem:[%s1512_s24 + $0x20] sm:$0xff]  }
  0x14   : > { %1337 = vmatprep.mubr.msk.bf16.mxu0 %vm466_vm2, %v1426_v10  ;;  %1373 = vmatprep.mubr.msk.bf16.mxu1 %vm466_vm2, %v1427_v11  ;;  %v1431_v15 = vld [vmem:[%s1512_s24 + $0xb0] sm:$0xff]   ;;  %v1432_v16 = vld [vmem:[%s1512_s24 + $0x28] sm:$0xff]   ;;  %v1433_v17 = vld [vmem:[%s1512_s24 + $0xb8] sm:$0xff]  }
  0x15   : > { %v1434_v18 = vld [vmem:[%s1512_s24 + $0x30] sm:$0xff]   ;;  %v1435_v19 = vld [vmem:[%s1512_s24 + $0xc0] sm:$0xff]   ;;  %v1436_v20 = vld [vmem:[%s1512_s24 + $0x38] sm:$0xff]  }
  0x16   : > { %v1437_v21 = vld [vmem:[%s1512_s24 + $0xc8] sm:$0xff]   ;;  %v1438_v22 = vld [vmem:[%s1512_s24 + $0x40] sm:$0xff]   ;;  %v1439_v23 = vld [vmem:[%s1512_s24 + $0xd0] sm:$0xff]  }
  0x17   : > { %v1440_v24 = vld [vmem:[%s1512_s24 + $0x48] sm:$0xff]   ;;  %v1441_v25 = vld [vmem:[%s1512_s24 + $0xd8] sm:$0xff]   ;;  %v1442_v26 = vld [vmem:[%s1512_s24 + $0x50] sm:$0xff]  }
  0x18   : > { %v1443_v27 = vld [vmem:[%s1512_s24 + $0xe0] sm:$0xff]   ;;  %v1444_v28 = vld [vmem:[%s1512_s24 + $0x58] sm:$0xff]   ;;  %v1445_v29 = vld [vmem:[%s1512_s24 + $0xe8] sm:$0xff]  }
  0x19   : > { %v1446_v30 = vld [vmem:[%s1512_s24 + $0x60] sm:$0xff]   ;;  %v1447_v31 = vld [vmem:[%s1512_s24 + $0xf0] sm:$0xff]   ;;  %v1448_v32 = vld [vmem:[%s1512_s24 + $0x68] sm:$0xff]  }
  0x1a   : > { %v1449_v33 = vld [vmem:[%s1512_s24 + $0xf8] sm:$0xff]   ;;  %v1450_v34 = vld [vmem:[%s1512_s24 + $0x70] sm:$0xff]   ;;  %v1451_v35 = vld [vmem:[%s1512_s24 + $0x100] sm:$0xff]  }
  0x1b   : > { %1338 = vmatmul.mubr.msk.bf16.gmra.mrb[4].mxu0 %vm466_vm2, %v1428_v12  ;;  %1374 = vmatmul.mubr.msk.bf16.gmra.mrb[4].mxu1 %vm466_vm2, %v1429_v13  ;;  %v1452_v36 = vld [vmem:[%s1512_s24 + $0x78] sm:$0xff]   ;;  %v1453_v37 = vld [vmem:[%s1512_s24 + $0x108] sm:$0xff]   ;;  %v1454_v38 = vld [vmem:[%s1512_s24 + $0x80] sm:$0xff]  }
  0x1c   : > { %1341 = vmatprep.mubr.msk.bf16.mxu0 %vm466_vm2, %v1430_v14  ;;  %1377 = vmatprep.mubr.msk.bf16.mxu1 %vm466_vm2, %v1431_v15  ;;  %v1455_v39 = vld [vmem:[%s1512_s24 + $0x110] sm:$0xff]   ;;  %v1456_v40 = vld [vmem:[%s1512_s24 + $0x88] sm:$0xff]   ;;  %v1457_v41 = vld [vmem:[%s1512_s24 + $0x118] sm:$0xff]  }
  0x1d   : > { %v1597_v6 = vld [vmem:[%s1881_s3] ss:$0 sm:$0xff] }
  0x23   : > { %1342 = vmatmul.mubr.msk.bf16.gmra.mrb[8].mxu0 %vm466_vm2, %v1432_v16  ;;  %1378 = vmatmul.mubr.msk.bf16.gmra.mrb[8].mxu1 %vm466_vm2, %v1433_v17 }
  0x24   : > { %1345 = vmatprep.mubr.msk.bf16.mxu0 %vm466_vm2, %v1434_v18  ;;  %1381 = vmatprep.mubr.msk.bf16.mxu1 %vm466_vm2, %v1435_v19 }
  0x2b   : > { %1346 = vmatmul.mubr.msk.bf16.gmra.mrb[12].mxu0 %vm466_vm2, %v1436_v20  ;;  %1382 = vmatmul.mubr.msk.bf16.gmra.mrb[12].mxu1 %vm466_vm2, %v1437_v21 }
  0x2c   : > { %1349 = vmatprep.mubr.msk.bf16.mxu0 %vm466_vm2, %v1438_v22  ;;  %1385 = vmatprep.mubr.msk.bf16.mxu1 %vm466_vm2, %v1439_v23 }
  0x33   : > { %1350 = vmatmul.mubr.msk.bf16.gmra.mrb[16].mxu0 %vm466_vm2, %v1440_v24  ;;  %1386 = vmatmul.mubr.msk.bf16.gmra.mrb[16].mxu1 %vm466_vm2, %v1441_v25 }
  0x34   : > { %1353 = vmatprep.mubr.msk.bf16.mxu0 %vm466_vm2, %v1442_v26  ;;  %1389 = vmatprep.mubr.msk.bf16.mxu1 %vm466_vm2, %v1443_v27 }
  0x3b   : > { %1354 = vmatmul.mubr.msk.bf16.gmra.mrb[20].mxu0 %vm466_vm2, %v1444_v28  ;;  %1390 = vmatmul.mubr.msk.bf16.gmra.mrb[20].mxu1 %vm466_vm2, %v1445_v29 }
  0x3c   : > { %1357 = vmatprep.mubr.msk.bf16.mxu0 %vm466_vm2, %v1446_v30  ;;  %1393 = vmatprep.mubr.msk.bf16.mxu1 %vm466_vm2, %v1447_v31 }
  0x43   : > { %1358 = vmatmul.mubr.msk.bf16.gmra.mrb[24].mxu0 %vm466_vm2, %v1448_v32  ;;  %1394 = vmatmul.mubr.msk.bf16.gmra.mrb[24].mxu1 %vm466_vm2, %v1449_v33 }
  0x44   : > { %1361 = vmatprep.mubr.msk.bf16.mxu0 %vm466_vm2, %v1450_v34  ;;  %1397 = vmatprep.mubr.msk.bf16.mxu1 %vm466_vm2, %v1451_v35 }
  0x4b   : > { %1362 = vmatmul.mubr.msk.bf16.gmra.mrb[28].mxu0 %vm466_vm2, %v1452_v36  ;;  %1398 = vmatmul.mubr.msk.bf16.gmra.mrb[28].mxu1 %vm466_vm2, %v1453_v37 }
  0x4c   : > { %1365 = vmatprep.mubr.msk.bf16.mxu0 %vm466_vm2, %v1454_v38  ;;  %1401 = vmatprep.mubr.msk.bf16.mxu1 %vm466_vm2, %v1455_v39 }
  0x53   : > { %1366 = vmatmul.mubr.msk.bf16.gmra.mrb[32].mxu0 %vm466_vm2, %v1456_v40  ;;  %1402 = vmatmul.mubr.msk.bf16.gmra.mrb[32].mxu1 %vm466_vm2, %v1457_v41 }
  0xe6   : > { %v1335_v42 = vpop.f32.mrb[0].mxu0  ;;  %v1371_v43 = vpop.f32.mrb[0].mxu1 }
  0xe7   : > { %v616_v44 = vpop.f32.mrb[1].mxu0  ;;  %v760_v45 = vpop.f32.mrb[1].mxu1  ;;  %v912_v2 = vmul.f32 %v1335_v42, %v1589_v59  ;;  %v948_v3 = vmul.f32 %v1371_v43, %v1589_v59 }
  0xe8   : > { %v1336_v46 = vpop.f32.mrb[2].mxu0  ;;  %v1372_v47 = vpop.f32.mrb[2].mxu1  ;;  %v910_v4 = vmul.f32 %v1589_v59, %v616_v44  ;;  %v946_v7 = vmul.f32 %v1589_v59, %v760_v45 }
  0xe9   : > { %v619_v48 = vpop.f32.mrb[3].mxu0  ;;  %v763_v49 = vpop.f32.mrb[3].mxu1  ;;  %v913_v8 = vmul.f32 %v1336_v46, %v1589_v59  ;;  %v949_v9 = vmul.f32 %v1372_v47, %v1589_v59  ;;  %v1604_v11 = vadd.f32 %v1597_v6, %v912_v2  ;;  %v1607_v12 = vadd.f32 %v1597_v6, %v948_v3 }
  0xea   : > { %v911_v10 = vmul.f32 %v1589_v59, %v619_v48  ;;  %v1610_v13 = vadd.f32 %v1597_v6, %v910_v4  ;;  %v1613_v15 = vadd.f32 %v1597_v6, %v946_v7  ;;  %v947_v17 = vmul.f32 %v1589_v59, %v763_v49 }
  0xeb   : > { %v1616_v16 = vadd.f32 %v1597_v6, %v913_v8  ;;  %v1621_v21 = vadd.f32 %v1597_v6, %v949_v9 }
  0xec   : > { %v1624_v22 = vadd.f32 %v1597_v6, %v911_v10  ;;  %v1637_v38 = vadd.f32 %v1597_v6, %v947_v17 }
  0xee   : > { %v1339_v50 = vpop.f32.mrb[4].mxu0  ;;  %v1375_v51 = vpop.f32.mrb[4].mxu1 }
  0xef   : > { %v632_v52 = vpop.f32.mrb[5].mxu0  ;;  %v776_v53 = vpop.f32.mrb[5].mxu1  ;;  %v916_v18 = vmul.f32 %v1339_v50, %v1589_v59  ;;  %v952_v23 = vmul.f32 %v1375_v51, %v1589_v59 }
  0xf0   : > { %v1340_v54 = vpop.f32.mrb[6].mxu0  ;;  %v1376_v55 = vpop.f32.mrb[6].mxu1  ;;  %v914_v24 = vmul.f32 %v1589_v59, %v632_v52  ;;  %v950_v27 = vmul.f32 %v1589_v59, %v776_v53 }
  0xf1   : > { %v635_v56 = vpop.f32.mrb[7].mxu0  ;;  %v779_v57 = vpop.f32.mrb[7].mxu1  ;;  %v917_v28 = vmul.f32 %v1340_v54, %v1589_v59  ;;  %v953_v29 = vmul.f32 %v1376_v55, %v1589_v59  ;;  %v1640_v39 = vadd.f32 %v1597_v6, %v916_v18  ;;  %v1645_v42 = vadd.f32 %v1597_v6, %v952_v23 }
  0xf2   : > { %v915_v30 = vmul.f32 %v1589_v59, %v635_v56  ;;  %v951_v33 = vmul.f32 %v1589_v59, %v779_v57  ;;  %v1648_v43 = vadd.f32 %v1597_v6, %v914_v24  ;;  %v1653_v46 = vadd.f32 %v1597_v6, %v950_v27 }
  0xf3   : > { %v1656_v47 = vadd.f32 %v1597_v6, %v917_v28  ;;  %v1659_v48 = vadd.f32 %v1597_v6, %v953_v29 }
  0xf4   : > { %v1662_v49 = vadd.f32 %v1597_v6, %v915_v30  ;;  %v1665_v50 = vadd.f32 %v1597_v6, %v951_v33 }
  0xf6   : > { %v1343_v58 = vpop.f32.mrb[8].mxu0  ;;  %v1379_v60 = vpop.f32.mrb[8].mxu1 }
  0xf7   : > { %v648_v61 = vpop.f32.mrb[9].mxu0  ;;  %v792_v62 = vpop.f32.mrb[9].mxu1  ;;  %v920_v34 = vmul.f32 %v1343_v58, %v1589_v59  ;;  %v956_v35 = vmul.f32 %v1379_v60, %v1589_v59 }
  0xf8   : > { %v1344_v63 = vpop.f32.mrb[10].mxu0  ;;  %v1380_v0 = vpop.f32.mrb[10].mxu1  ;;  %v918_v36 = vmul.f32 %v1589_v59, %v648_v61  ;;  %v954_v40 = vmul.f32 %v1589_v59, %v792_v62 }
  0xf9   : > { %v651_v1 = vpop.f32.mrb[11].mxu0  ;;  %v795_v5 = vpop.f32.mrb[11].mxu1  ;;  %v921_v41 = vmul.f32 %v1344_v63, %v1589_v59  ;;  %v957_v44 = vmul.f32 %v1380_v0, %v1589_v59  ;;  %v1668_v51 = vadd.f32 %v1597_v6, %v920_v34  ;;  %v1671_v52 = vadd.f32 %v1597_v6, %v956_v35 }
  0xfa   : > { %v919_v45 = vmul.f32 %v1589_v59, %v651_v1  ;;  %v1674_v53 = vadd.f32 %v1597_v6, %v918_v36  ;;  %v1677_v55 = vadd.f32 %v1597_v6, %v954_v40  ;;  %v955_v57 = vmul.f32 %v1589_v59, %v795_v5 }
  0xfb   : > { %v1680_v56 = vadd.f32 %v1597_v6, %v921_v41  ;;  %v1685_v62 = vadd.f32 %v1597_v6, %v957_v44 }
  0xfc   : > { %v1688_v63 = vadd.f32 %v1597_v6, %v919_v45  ;;  %v1708_v29 = vadd.f32 %v1597_v6, %v955_v57 }
  0xfe   : > { %v1347_v14 = vpop.f32.mrb[12].mxu0  ;;  %v1383_v19 = vpop.f32.mrb[12].mxu1 }
  0xff   : > { %v664_v20 = vpop.f32.mrb[13].mxu0  ;;  %v808_v25 = vpop.f32.mrb[13].mxu1  ;;  %v924_v0 = vmul.f32 %v1347_v14, %v1589_v59  ;;  %v960_v4 = vmul.f32 %v1383_v19, %v1589_v59 }
 0x100   : > { %v1348_v26 = vpop.f32.mrb[14].mxu0  ;;  %v1384_v31 = vpop.f32.mrb[14].mxu1  ;;  %v922_v5 = vmul.f32 %v1589_v59, %v664_v20  ;;  %v958_v17 = vmul.f32 %v1589_v59, %v808_v25 }
 0x101   : > { %v667_v32 = vpop.f32.mrb[15].mxu0  ;;  %v811_v37 = vpop.f32.mrb[15].mxu1  ;;  %v925_v18 = vmul.f32 %v1348_v26, %v1589_v59  ;;  %v1711_v25 = vadd.f32 %v1597_v6, %v924_v0  ;;  %v1716_v33 = vadd.f32 %v1597_v6, %v960_v4 }
 0x102   : > { %v923_v19 = vmul.f32 %v1589_v59, %v667_v32  ;;  %v959_v20 = vmul.f32 %v1589_v59, %v811_v37  ;;  %v1719_v32 = vadd.f32 %v1597_v6, %v922_v5  ;;  %v1726_v35 = vadd.f32 %v1597_v6, %v958_v17 }
 0x103   : > { %v1729_v36 = vadd.f32 %v1597_v6, %v925_v18 }
 0x104   : > { %v1733_v41 = vadd.f32 %v1597_v6, %v923_v19  ;;  %v1736_v44 = vadd.f32 %v1597_v6, %v959_v20 }
 0x106   : > { %v1351_v54 = vpop.f32.mrb[16].mxu0  ;;  %v1387_v60 = vpop.f32.mrb[16].mxu1 }
 0x107   : > { %v928_v58 = vmul.f32 %v1351_v54, %v1589_v59  ;;  %v680_v61 = vpop.f32.mrb[17].mxu0  ;;  %v964_v1 = vmul.f32 %v1387_v60, %v1589_v59  ;;  %v824_v2 = vpop.f32.mrb[17].mxu1 }
 0x108   : > { %v1352_v3 = vpop.f32.mrb[18].mxu0  ;;  %v1388_v9 = vpop.f32.mrb[18].mxu1 }
 0x109   : > { %v1007_v7 = vadd.f32 %v1597_v6, %v928_v58  ;;  %v929_v8 = vmul.f32 %v1352_v3, %v1589_v59  ;;  %v683_v10 = vpop.f32.mrb[19].mxu0  ;;  %v1043_v14 = vadd.f32 %v1597_v6, %v964_v1  ;;  %v965_v23 = vmul.f32 %v1388_v9, %v1589_v59  ;;  %v1700_v24 = vpop.f32.mrb[19].mxu1 }
 0x10a   : > { %v962_v3 = vmul.f32 %v1589_v59, %v824_v2 }
 0x10b   : > { %v1061_v27 = vmax.f32 %v1610_v13, %v1007_v7  ;;  %v1008_v28 = vadd.f32 %v1597_v6, %v929_v8  ;;  %v1079_v26 = vmax.f32 %v1613_v15, %v1043_v14  ;;  %v1044_v30 = vadd.f32 %v1597_v6, %v965_v23 }
 0x10c   : > { %v1722_v13 = vmul.f32 %v1384_v31, %v1589_v59 }
 0x10d   : > { %v1062_v34 = vmax.f32 %v1624_v22, %v1008_v28  ;;  %v1097_v15 = vmax.f32 %v1061_v27, %v1079_v26  ;;  %v1080_v37 = vmax.f32 %v1637_v38, %v1044_v30  ;;  %v926_v22 = vmul.f32 %v1589_v59, %v680_v61 }
 0x10e   : > { %v1355_v40 = vpop.f32.mrb[20].mxu0  ;;  %v1391_v45 = vpop.f32.mrb[20].mxu1 }
 0x10f   : > { %v932_v31 = vmul.f32 %v1355_v40, %v1589_v59  ;;  %v696_v54 = vpop.f32.mrb[21].mxu0  ;;  %v1115_v38 = vmax.f32 %v1097_v15, 0.0  ;;  %v1098_v57 = vmax.f32 %v1062_v34, %v1080_v37  ;;  %v968_v58 = vmul.f32 %v1391_v45, %v1589_v59  ;;  %v840_v0 = vpop.f32.mrb[21].mxu1 }
 0x110   : > { %v930_v60 = vmul.f32 %v1589_v59, %v696_v54  ;;  %v1356_v1 = vpop.f32.mrb[22].mxu0  ;;  %v966_v61 = vmul.f32 %v1589_v59, %v840_v0  ;;  %v1392_v7 = vpop.f32.mrb[22].mxu1  ;;  %v1765_v15 = vadd.f32 %v1597_v6, %v926_v22 }
 0x111   : > { %v1011_v4 = vadd.f32 %v1597_v6, %v932_v31  ;;  %v933_v5 = vmul.f32 %v1356_v1, %v1589_v59  ;;  %v699_v8 = vpop.f32.mrb[23].mxu0  ;;  %1133 = vst [vmem:[%s1741_s6] sm:$0xff] %v1115_v38  ;;  %v1116_v9 = vmax.f32 %v1098_v57, 0.0  ;;  %v1047_v17 = vadd.f32 %v1597_v6, %v968_v58  ;;  %v843_v23 = vpop.f32.mrb[23].mxu1 }
 0x112   : > { %v1009_v18 = vadd.f32 %v1597_v6, %v930_v60  ;;  %v969_v14 = vmul.f32 %v1392_v7, %v1589_v59  ;;  %v1045_v19 = vadd.f32 %v1597_v6, %v966_v61  ;;  %v931_v27 = vmul.f32 %v1589_v59, %v699_v8 }
 0x113   : > { %v1065_v2 = vmax.f32 %v1648_v43, %v1011_v4  ;;  %v1012_v20 = vadd.f32 %v1597_v6, %v933_v5  ;;  %1134 = vst [vmem:[%s1741_s6 + $0x8] sm:$0xff] %v1116_v9  ;;  %v1083_v28 = vmax.f32 %v1653_v46, %v1047_v17  ;;  %v967_v34 = vmul.f32 %v1589_v59, %v843_v23 }
 0x114   : > { %v1063_v26 = vmax.f32 %v1604_v11, %v1009_v18  ;;  %v1048_v30 = vadd.f32 %v1597_v6, %v969_v14  ;;  %v1081_v43 = vmax.f32 %v1607_v12, %v1045_v19  ;;  %v1010_v40 = vadd.f32 %v1597_v6, %v931_v27 }
 0x115   : > { %v1066_v37 = vmax.f32 %v1662_v49, %v1012_v20  ;;  %v1771_v31 = vmul.f32 %v1589_v59, %v683_v10  ;;  %v1101_v45 = vmax.f32 %v1065_v2, %v1083_v28  ;;  %v1046_v11 = vadd.f32 %v1597_v6, %v967_v34 }
 0x116   : > { %v1084_v46 = vmax.f32 %v1665_v50, %v1048_v30  ;;  %v1359_v54 = vpop.f32.mrb[24].mxu0  ;;  %v1776_v38 = vadd.f32 %v1597_v6, %v962_v3  ;;  %v1099_v22 = vmax.f32 %v1063_v26, %v1081_v43  ;;  %v1064_v57 = vmax.f32 %v1616_v16, %v1010_v40  ;;  %v1395_v49 = vpop.f32.mrb[24].mxu1 }
 0x117   : > { %v936_v12 = vmul.f32 %v1359_v54, %v1589_v59  ;;  %v712_v58 = vpop.f32.mrb[25].mxu0  ;;  %v1119_v60 = vmax.f32 %v1101_v45, 0.0  ;;  %v1082_v0 = vmax.f32 %v1621_v21, %v1046_v11  ;;  %v972_v50 = vmul.f32 %v1395_v49, %v1589_v59  ;;  %v856_v1 = vpop.f32.mrb[25].mxu1 }
 0x118   : > { %v1102_v10 = vmax.f32 %v1066_v37, %v1084_v46  ;;  %v1360_v4 = vpop.f32.mrb[26].mxu0  ;;  %v1117_v61 = vmax.f32 %v1099_v22, 0.0  ;;  %v934_v16 = vmul.f32 %v1589_v59, %v712_v58  ;;  %v970_v5 = vmul.f32 %v1589_v59, %v856_v1  ;;  %v1396_v7 = vpop.f32.mrb[26].mxu1 }
 0x119   : > { %v1015_v3 = vadd.f32 %v1597_v6, %v936_v12  ;;  %v715_v8 = vpop.f32.mrb[27].mxu0  ;;  %1137 = vst [vmem:[%s1741_s6 + $0x20] sm:$0xff] %v1119_v60  ;;  %v1100_v17 = vmax.f32 %v1064_v57, %v1082_v0  ;;  %v1051_v21 = vadd.f32 %v1597_v6, %v972_v50  ;;  %v937_v18 = vmul.f32 %v1360_v4, %v1589_v59  ;;  %v859_v14 = vpop.f32.mrb[27].mxu1 }
 0x11a   : > { %v1120_v9 = vmax.f32 %v1102_v10, 0.0  ;;  %1135 = vst [vmem:[%s1741_s6 + $0x10] sm:$0xff] %v1117_v61  ;;  %v1013_v2 = vadd.f32 %v1597_v6, %v934_v16  ;;  %v1049_v19 = vadd.f32 %v1597_v6, %v970_v5  ;;  %v973_v20 = vmul.f32 %v1396_v7, %v1589_v59 }
 0x11b   : > { %v1069_v23 = vmax.f32 %v1674_v53, %v1015_v3  ;;  %v1118_v27 = vmax.f32 %v1100_v17, 0.0  ;;  %v1087_v28 = vmax.f32 %v1677_v55, %v1051_v21  ;;  %v1016_v26 = vadd.f32 %v1597_v6, %v937_v18 }
 0x11c   : > { %1138 = vst [vmem:[%s1741_s6 + $0x28] sm:$0xff] %v1120_v9  ;;  %v935_v30 = vmul.f32 %v1589_v59, %v715_v8  ;;  %v1067_v34 = vmax.f32 %v1640_v39, %v1013_v2  ;;  %v1085_v43 = vmax.f32 %v1645_v42, %v1049_v19  ;;  %v1052_v53 = vadd.f32 %v1597_v6, %v973_v20 }
 0x11d   : > { %v971_v37 = vmul.f32 %v1589_v59, %v859_v14  ;;  %v1803_v40 = vmul.f32 %v1589_v59, %v1700_v24  ;;  %1136 = vst [vmem:[%s1741_s6 + $0x18] sm:$0xff] %v1118_v27  ;;  %v1105_v45 = vmax.f32 %v1069_v23, %v1087_v28  ;;  %v1070_v55 = vmax.f32 %v1688_v63, %v1016_v26 }
 0x11e   : > { %v1014_v46 = vadd.f32 %v1597_v6, %v935_v30  ;;  %v1363_v11 = vpop.f32.mrb[28].mxu0  ;;  %v1103_v54 = vmax.f32 %v1067_v34, %v1085_v43  ;;  %v1088_v39 = vmax.f32 %v1708_v29, %v1052_v53  ;;  %v1399_v57 = vpop.f32.mrb[28].mxu1 }
 0x11f   : > { %v1050_v42 = vadd.f32 %v1597_v6, %v971_v37  ;;  %v940_v22 = vmul.f32 %v1363_v11, %v1589_v59  ;;  %v728_v12 = vpop.f32.mrb[29].mxu0  ;;  %v1123_v49 = vmax.f32 %v1105_v45, 0.0  ;;  %v976_v58 = vmul.f32 %v1399_v57, %v1589_v59  ;;  %v872_v60 = vpop.f32.mrb[29].mxu1 }
 0x120   : > { %v1068_v24 = vmax.f32 %v1656_v47, %v1014_v46  ;;  %v938_v63 = vmul.f32 %v1589_v59, %v728_v12  ;;  %v1364_v10 = vpop.f32.mrb[30].mxu0  ;;  %v1121_v0 = vmax.f32 %v1103_v54, 0.0  ;;  %v1106_v50 = vmax.f32 %v1070_v55, %v1088_v39  ;;  %v1400_v4 = vpop.f32.mrb[30].mxu1 }
 0x121   : > { %v1086_v29 = vmax.f32 %v1659_v48, %v1050_v42  ;;  %v1019_v1 = vadd.f32 %v1597_v6, %v940_v22  ;;  %v731_v61 = vpop.f32.mrb[31].mxu0  ;;  %1141 = vst [vmem:[%s1741_s6 + $0x40] sm:$0xff] %v1123_v49  ;;  %v1055_v3 = vadd.f32 %v1597_v6, %v976_v58  ;;  %v974_v16 = vmul.f32 %v1589_v59, %v872_v60  ;;  %v875_v7 = vpop.f32.mrb[31].mxu1 }
 0x122   : > { %v1017_v47 = vadd.f32 %v1597_v6, %v938_v63  ;;  %v941_v5 = vmul.f32 %v1364_v10, %v1589_v59  ;;  %1139 = vst [vmem:[%s1741_s6 + $0x30] sm:$0xff] %v1121_v0  ;;  %v1124_v8 = vmax.f32 %v1106_v50, 0.0  ;;  %v977_v17 = vmul.f32 %v1400_v4, %v1589_v59 }
 0x123   : > { %v1104_v9 = vmax.f32 %v1068_v24, %v1086_v29  ;;  %v1073_v48 = vmax.f32 %v1719_v32, %v1019_v1  ;;  %v1091_v21 = vmax.f32 %v1726_v35, %v1055_v3  ;;  %v1053_v14 = vadd.f32 %v1597_v6, %v974_v16 }
 0x124   : > { %v1071_v18 = vmax.f32 %v1668_v51, %v1017_v47  ;;  %v1020_v23 = vadd.f32 %v1597_v6, %v941_v5  ;;  %1142 = vst [vmem:[%s1741_s6 + $0x48] sm:$0xff] %v1124_v8  ;;  %v1056_v19 = vadd.f32 %v1597_v6, %v977_v17  ;;  %v939_v20 = vmul.f32 %v1589_v59, %v731_v61 }
 0x125   : > { %v1122_v2 = vmax.f32 %v1104_v9, 0.0  ;;  %v975_v27 = vmul.f32 %v1589_v59, %v875_v7  ;;  %v1006_v32 = vadd.f32 %v1597_v6, %v1771_v31  ;;  %v1109_v28 = vmax.f32 %v1073_v48, %v1091_v21 }
 0x126   : > { %v1089_v35 = vmax.f32 %v1671_v52, %v1053_v14  ;;  %v1074_v51 = vmax.f32 %v1733_v41, %v1020_v23  ;;  %v1367_v26 = vpop.f32.mrb[32].mxu0  ;;  %v1092_v30 = vmax.f32 %v1736_v44, %v1056_v19  ;;  %v1018_v34 = vadd.f32 %v1597_v6, %v939_v20  ;;  %v1403_v37 = vpop.f32.mrb[32].mxu1 }
 0x127   : > { %1140 = vst [vmem:[%s1741_s6 + $0x38] sm:$0xff] %v1122_v2  ;;  %v1054_v43 = vadd.f32 %v1597_v6, %v975_v27  ;;  %v944_v53 = vmul.f32 %v1367_v26, %v1589_v59  ;;  %v744_v45 = vpop.f32.mrb[33].mxu0  ;;  %v1127_v55 = vmax.f32 %v1109_v28, 0.0  ;;  %v980_v46 = vmul.f32 %v1403_v37, %v1589_v59  ;;  %v888_v41 = vpop.f32.mrb[33].mxu1 }
 0x128   : > { %v1107_v31 = vmax.f32 %v1071_v18, %v1089_v35  ;;  %v942_v52 = vmul.f32 %v1589_v59, %v744_v45  ;;  %v1368_v11 = vpop.f32.mrb[34].mxu0  ;;  %v1110_v54 = vmax.f32 %v1074_v51, %v1092_v30  ;;  %v1072_v44 = vmax.f32 %v1680_v56, %v1018_v34  ;;  %v1404_v22 = vpop.f32.mrb[34].mxu1 }
 0x129   : > { %v1090_v39 = vmax.f32 %v1685_v62, %v1054_v43  ;;  %v1023_v42 = vadd.f32 %v1597_v6, %v944_v53  ;;  %v747_v57 = vpop.f32.mrb[35].mxu0  ;;  %1145 = vst [vmem:[%s1741_s6 + $0x60] sm:$0xff] %v1127_v55  ;;  %v1059_v49 = vadd.f32 %v1597_v6, %v980_v46  ;;  %v978_v58 = vmul.f32 %v1589_v59, %v888_v41  ;;  %v891_v63 = vpop.f32.mrb[35].mxu1 }
 0x12a   : > { %v1125_v12 = vmax.f32 %v1107_v31, 0.0  ;;  %v1021_v24 = vadd.f32 %v1597_v6, %v942_v52  ;;  %v1128_v60 = vmax.f32 %v1110_v54, 0.0  ;;  %v945_v62 = vmul.f32 %v1368_v11, %v1589_v59 }
 0x12b   : > { %v1108_v10 = vmax.f32 %v1072_v44, %v1090_v39  ;;  %v1077_v56 = vmax.f32 %v1765_v15, %v1023_v42  ;;  %v1095_v0 = vmax.f32 %v1776_v38, %v1059_v49  ;;  %v1057_v29 = vadd.f32 %v1597_v6, %v978_v58 }
 0x12c   : > { %1143 = vst [vmem:[%s1741_s6 + $0x50] sm:$0xff] %v1125_v12  ;;  %v1075_v50 = vmax.f32 %v1711_v25, %v1021_v24  ;;  %v981_v1 = vmul.f32 %v1404_v22, %v1589_v59  ;;  %1146 = vst [vmem:[%s1741_s6 + $0x68] sm:$0xff] %v1128_v60  ;;  %v1024_v61 = vadd.f32 %v1597_v6, %v945_v62 }
 0x12d   : > { %v1126_v4 = vmax.f32 %v1108_v10, 0.0  ;;  %v943_v3 = vmul.f32 %v1589_v59, %v747_v57  ;;  %v979_v15 = vmul.f32 %v1589_v59, %v891_v63  ;;  %v1042_v47 = vadd.f32 %v1597_v6, %v1803_v40 }
 0x12e   : > { %v1113_v16 = vmax.f32 %v1077_v56, %v1095_v0  ;;  %v1093_v38 = vmax.f32 %v1716_v33, %v1057_v29  ;;  %v1060_v25 = vadd.f32 %v1597_v6, %v981_v1  ;;  %v1040_v5 = vadd.f32 %v1597_v6, %v1722_v13 }
 0x12f   : > { %1144 = vst [vmem:[%s1741_s6 + $0x58] sm:$0xff] %v1126_v4  ;;  %v1078_v7 = vmax.f32 %v1006_v32, %v1024_v61  ;;  %v1022_v8 = vadd.f32 %v1597_v6, %v943_v3  ;;  %v1058_v59 = vadd.f32 %v1597_v6, %v979_v15 }
 0x130   : > { %v1131_v9 = vmax.f32 %v1113_v16, 0.0  ;;  %v1111_v48 = vmax.f32 %v1075_v50, %v1093_v38  ;;  %v1096_v40 = vmax.f32 %v1042_v47, %v1060_v25 }
 0x131   : > { %v1076_v17 = vmax.f32 %v1729_v36, %v1022_v8  ;;  %v1094_v33 = vmax.f32 %v1040_v5, %v1058_v59 }
 0x132   : > { %1149 = vst [vmem:[%s1741_s6 + $0x80] sm:$0xff] %v1131_v9  ;;  %v1129_v21 = vmax.f32 %v1111_v48, 0.0  ;;  %v1114_v18 = vmax.f32 %v1078_v7, %v1096_v40 }
 0x133   : > { %v1112_v14 = vmax.f32 %v1076_v17, %v1094_v33 }
 0x134   : > { %1147 = vst [vmem:[%s1741_s6 + $0x70] sm:$0xff] %v1129_v21  ;;  %v1132_v13 = vmax.f32 %v1114_v18, 0.0 }
 0x135   : > { %v1130_v23 = vmax.f32 %v1112_v14, 0.0 }
 0x136   : > { %1150 = vst [vmem:[%s1741_s6 + $0x88] sm:$0xff] %v1132_v13 }
 0x137   : > { %1148 = vst [vmem:[%s1741_s6 + $0x78] sm:$0xff] %v1130_v23 }
 0x138 PF: > { %s14_s15 = sadd.s32 1, %s1464_s15  }
 0x139   : > { %p11_p4 = scmp.ge.s32.totalorder %s14_s15, 4  }
 0x13b   :  { %13 = sbr.rel (!%p11_p4) target bundleno = 1 (0x1), region = 66 }

// kernel: dann_conv2d_forward.4
= control target key start
LH: loop header
LB: loop body
LE: loop exit
PB: predicated region body
PF: predicated region fallthrough
CT: control target
= control target key end

     0   :  { %s6139_s15 = smov 0   ;;  %s7117_s0 = inlined_call_operand.vmem [shape: f32[2,12,12,128], index: 0, kind: input, shape index: {}]   ;;  %s7118_s1 = inlined_call_operand.vmem [shape: bf16[25,128,128], index: 1, kind: input, shape index: {}]   ;;  %s7119_s2 = inlined_call_operand.vmem [shape: f32[1,128], index: 2, kind: input, shape index: {}]   ;;  %s7120_s3 = inlined_call_operand.vmem [shape: f32[1,128], index: 3, kind: input, shape index: {}]   ;;  %s7121_s4 = inlined_call_operand.vmem [shape: f32[2,64,128], index: 4, kind: output, shape index: {}]  }
   0x1 LB: > { %s4029_s16 = sadd.s32 4294967295, %s6112_s15   ;;  %p4033_p0 = scmp.ge.s32.totalorder %s6112_s15, 1  ;;  %s6112_s15 = sphi %s6139_s15, %s14_s15  }
   0x2   : > { %p162_p1 = scmp.lt.s32.totalorder %s6112_s15, 3 }
   0x4   : > { %p163_p2 = pnand %p4033_p0, %p162_p1 }
   0x5   : > { %v5903_v0 = vld [vmem:[%s7118_s1 + $0x40] sm:$0xff] (!%p163_p2)   ;;  %p188_p3 = scmp.lt.s32.totalorder (!%p163_p2), %s4029_s16, 1  ;;  %v5905_v2 = vld [vmem:[%s7118_s1 + $0x48] sm:$0xff] (!%p163_p2)   ;;  %v5907_v4 = vld [vmem:[%s7118_s1 + $0x50] sm:$0xff] (!%p163_p2)  }
   0x6   : > { %166 = sbr.rel (%p163_p2) target bundleno = 645 (0x285), region = 36  ;;  %v5904_v1 = vld [vmem:[%s7118_s1 + $0x300] sm:$0xff] (!%p163_p2)   ;;  %5086 = vmatprep.subr.bf16.mxu1 (!%p163_p2), %v5903_v0  ;;  %v5906_v3 = vld [vmem:[%s7118_s1 + $0x308] sm:$0xff] (!%p163_p2)   ;;  %v5908_v5 = vld [vmem:[%s7118_s1 + $0x310] sm:$0xff] (!%p163_p2)  }
   0x7   : > { %5374 = vmatprep.subr.bf16.mxu0 (!%p163_p2), %v5904_v1  ;;  %5087 = vmatpush3.bf16.msra.mxu1 (!%p163_p2), %v5903_v0  ;;  %v5909_v6 = vld [vmem:[%s7118_s1 + $0x58] sm:$0xff] (!%p163_p2)   ;;  %v5911_v8 = vld [vmem:[%s7118_s1 + $0x60] sm:$0xff] (!%p163_p2)   ;;  %v5913_v10 = vld [vmem:[%s7118_s1 + $0x68] sm:$0xff] (!%p163_p2)  }
   0x8   : > { %5375 = vmatpush3.bf16.msra.mxu0 (!%p163_p2), %v5904_v1  ;;  %5088 = vmatprep.subr.bf16.mxu1 (!%p163_p2), %v5905_v2  ;;  %v5910_v7 = vld [vmem:[%s7118_s1 + $0x318] sm:$0xff] (!%p163_p2)   ;;  %v5912_v9 = vld [vmem:[%s7118_s1 + $0x320] sm:$0xff] (!%p163_p2)   ;;  %v5914_v13 = vld [vmem:[%s7118_s1 + $0x328] sm:$0xff] (!%p163_p2)  }
   0x9   : > { %5376 = vmatprep.subr.bf16.mxu0 (!%p163_p2), %v5906_v3  ;;  %v5915_v18 = vld [vmem:[%s7118_s1 + $0x70] sm:$0xff] (!%p163_p2)   ;;  %v5917_v20 = vld [vmem:[%s7118_s1 + $0x78] sm:$0xff] (!%p163_p2)   ;;  %v5919_v23 = vld [vmem:[%s7118_s1] sm:$0xff] (!%p163_p2)  }
   0xa   : > { %v5916_v19 = vld [vmem:[%s7118_s1 + $0x330] sm:$0xff] (!%p163_p2)   ;;  %v5918_v21 = vld [vmem:[%s7118_s1 + $0x338] sm:$0xff] (!%p163_p2)   ;;  %v5920_v27 = vld [vmem:[%s7118_s1 + $0x340] sm:$0xff] (!%p163_p2)  }
   0xb   : > { %5089 = vmatpush3.bf16.msra.mxu1 (!%p163_p2), %v5905_v2  ;;  %v5921_v32 = vld [vmem:[%s7118_s1 + $0x8] sm:$0xff] (!%p163_p2)   ;;  %v5923_v38 = vld [vmem:[%s7118_s1 + $0x10] sm:$0xff] (!%p163_p2)   ;;  %v5925_v52 = vld [vmem:[%s7118_s1 + $0x18] sm:$0xff] (!%p163_p2)  }
   0xc   : > { %5377 = vmatpush3.bf16.msra.mxu0 (!%p163_p2), %v5906_v3  ;;  %5090 = vmatprep.subr.bf16.mxu1 (!%p163_p2), %v5907_v4  ;;  %v5922_v36 = vld [vmem:[%s7118_s1 + $0x348] sm:$0xff] (!%p163_p2)   ;;  %v5924_v45 = vld [vmem:[%s7118_s1 + $0x350] sm:$0xff] (!%p163_p2)   ;;  %v5926_v53 = vld [vmem:[%s7118_s1 + $0x358] sm:$0xff] (!%p163_p2)  }
   0xd   : > { %s7123_s16 = smov (!%p188_p3, %s4029_s16), 1  ;;  %5378 = vmatprep.subr.bf16.mxu0 %v5908_v5  ;;  %v5927_v56 = vld [vmem:[%s7118_s1 + $0x20] sm:$0xff]   ;;  %v5929_v58 = vld [vmem:[%s7118_s1 + $0x28] sm:$0xff]   ;;  %v5931_v60 = vld [vmem:[%s7118_s1 + $0x30] sm:$0xff]  }
   0xe   : > { %s5894_s7 = smul.u32 192, %s7123_s16  ;;  %v5928_v57 = vld [vmem:[%s7118_s1 + $0x360] sm:$0xff]   ;;  %v5930_v59 = vld [vmem:[%s7118_s1 + $0x368] sm:$0xff]   ;;  %v5932_v61 = vld [vmem:[%s7118_s1 + $0x370] sm:$0xff]   ;;  %s4785_s30 = sshll.u32 %s7123_s16, 6 }
   0xf   : > { %5091 = vmatpush3.bf16.msra.mxu1 %v5907_v4  ;;  %v5933_v62 = vld [vmem:[%s7118_s1 + $0x38] sm:$0xff]   ;;  %v5935_v0 = vld [vmem:[%s7118_s1 + $0x80] sm:$0xff]   ;;  %s197_s16 = scalar_lea.vmem %s7121_s4, %s4785_s30 }
  0x10   : > { %5379 = vmatpush3.bf16.msra.mxu0 %v5908_v5  ;;  %5092 = vmatprep.subr.bf16.mxu1 %v5909_v6  ;;  %s6183_s14 = scalar_lea.vmem %s7117_s0, %s5894_s7  ;;  %v5934_v63 = vld [vmem:[%s7118_s1 + $0x378] sm:$0xff]   ;;  %v5936_v3 = vld [vmem:[%s7118_s1 + $0x380] sm:$0xff]  }
  0x11   : > { %5380 = vmatprep.subr.bf16.mxu0 %v5910_v7  ;;  %v227_v11 = vld [vmem:[%s6183_s14 + $0x1] sm:$0xff]  ;;  %v228_v12 = vld [vmem:[%s6183_s14 + $0x11] sm:$0xff] }
  0x12   : > { %v235_v14 = vpack.c.bf16 %v228_v12, %v227_v11  ;;  %v4365_v15 = vld [vmem:[%s6183_s14 + $0x22] sm:$0xff]  ;;  %v4366_v16 = vld [vmem:[%s6183_s14 + $0x32] sm:$0xff] }
  0x13   : > { %5093 = vmatpush3.bf16.msra.mxu1 %v5909_v6  ;;  %v6195_v17 = vpack.c.bf16 %v4366_v16, %v4365_v15  ;;  %v229_v22 = vld [vmem:[%s6183_s14 + $0x21] sm:$0xff]  ;;  %v6215_v24 = vld [vmem:[%s6183_s14 + $0x31] sm:$0xff] }
  0x14   : > { %5381 = vmatpush3.bf16.msra.mxu0 %v5910_v7  ;;  %5094 = vmatprep.subr.bf16.mxu1 %v5911_v8  ;;  %v4367_v25 = vld [vmem:[%s6183_s14 + $0x42] sm:$0xff]  ;;  %v4368_v26 = vld [vmem:[%s6183_s14 + $0x52] sm:$0xff]  ;;  %v236_v28 = vpack.c.bf16 %v6215_v24, %v229_v22 }
  0x15   : > { %5382 = vmatprep.subr.bf16.mxu0 %v5912_v9  ;;  %5102 = vmatprep.mubr.bf16.mxu1 %v235_v14  ;;  %v6224_v29 = vld [vmem:[%s6183_s14 + $0x41] sm:$0xff]  ;;  %v6226_v30 = vpack.c.bf16 %v4368_v26, %v4367_v25  ;;  %v6229_v31 = vld [vmem:[%s6183_s14 + $0x51] sm:$0xff] }
  0x16   : > { %5390 = vmatprep.mubr.bf16.mxu0 %v6195_v17  ;;  %v4369_v33 = vld [vmem:[%s6183_s14 + $0x62] sm:$0xff]  ;;  %v4370_v34 = vld [vmem:[%s6183_s14 + $0x72] sm:$0xff]  ;;  %v2593_v35 = vpack.c.bf16 %v6224_v29, %v6215_v24  ;;  %v237_v37 = vpack.c.bf16 %v6229_v31, %v6224_v29 }
  0x17   : > { %5095 = vmatpush3.bf16.msra.mxu1 %v5911_v8  ;;  %v6246_v39 = vpack.c.bf16 %v4370_v34, %v4369_v33  ;;  %v6249_v40 = vld [vmem:[%s6183_s14 + $0x61] sm:$0xff]  ;;  %v6252_v41 = vld [vmem:[%s6183_s14 + $0x71] sm:$0xff] }
  0x18   : > { %5383 = vmatpush3.bf16.msra.mxu0 %v5912_v9  ;;  %5096 = vmatprep.subr.bf16.mxu1 %v5913_v10  ;;  %v4371_v42 = vld [vmem:[%s6183_s14 + $0x82] sm:$0xff]  ;;  %v2594_v43 = vpack.c.bf16 %v6249_v40, %v6229_v31  ;;  %v4372_v44 = vld [vmem:[%s6183_s14 + $0x92] sm:$0xff]  ;;  %v238_v47 = vpack.c.bf16 %v6252_v41, %v6249_v40 }
  0x19   : > { %5384 = vmatprep.subr.bf16.mxu0 %v5914_v13  ;;  %v199_v46 = vld [vmem:[%s6183_s14] sm:$0xff]  ;;  %v6267_v48 = vld [vmem:[%s6183_s14 + $0x10] sm:$0xff]  ;;  %v1995_v49 = vpack.c.bf16 %v4372_v44, %v4371_v42  ;;  %v5937_v8 = vld [vmem:[%s7118_s1 + $0x88] sm:$0xff]  }
  0x1a   : > { %v4397_v50 = vld [vmem:[%s6183_s14 + $0x23] sm:$0xff]  ;;  %v4398_v51 = vld [vmem:[%s6183_s14 + $0x33] sm:$0xff]  ;;  %v207_v54 = vpack.c.bf16 %v6267_v48, %v199_v46 }
  0x1b   : > { %5097 = vmatpush3.bf16.msra.mxu1 %v5913_v10  ;;  %v6278_v55 = vpack.c.bf16 %v4398_v51, %v4397_v50  ;;  %v6309_v1 = vld [vmem:[%s6183_s14 + $0x20] sm:$0xff]  ;;  %v6312_v2 = vld [vmem:[%s6183_s14 + $0x30] sm:$0xff]  ;;  %v5941_v34 = vld [vmem:[%s7118_s1 + $0x98] sm:$0xff]  }
  0x1c   : > { %5385 = vmatpush3.bf16.msra.mxu0 %v5914_v13  ;;  %5098 = vmatprep.subr.bf16.mxu1 %v5915_v18  ;;  %v4399_v4 = vld [vmem:[%s6183_s14 + $0x43] sm:$0xff]  ;;  %v4400_v5 = vld [vmem:[%s6183_s14 + $0x53] sm:$0xff]  ;;  %v208_v7 = vpack.c.bf16 %v6312_v2, %v6309_v1  ;;  %v941_v14 = vpack.c.bf16 %v6309_v1, %v6267_v48 }
  0x1d   : > { %5386 = vmatprep.subr.bf16.mxu0 %v5916_v19  ;;  %v6320_v6 = vld [vmem:[%s6183_s14 + $0x40] sm:$0xff]  ;;  %v6328_v9 = vld [vmem:[%s6183_s14 + $0x50] sm:$0xff]  ;;  %v6331_v11 = vpack.c.bf16 %v4400_v5, %v4399_v4  ;;  %v5938_v13 = vld [vmem:[%s7118_s1 + $0x388] sm:$0xff]  }
  0x1e   : > { %v4401_v10 = vld [vmem:[%s6183_s14 + $0x63] sm:$0xff]  ;;  %v4402_v12 = vld [vmem:[%s6183_s14 + $0x73] sm:$0xff]  ;;  %v209_v15 = vpack.c.bf16 %v6328_v9, %v6320_v6 }
  0x1f   : > { %5099 = vmatpush3.bf16.msra.mxu1 %v5915_v18  ;;  %v6342_v16 = vld [vmem:[%s6183_s14 + $0x60] sm:$0xff]  ;;  %v6345_v18 = vld [vmem:[%s6183_s14 + $0x70] sm:$0xff]  ;;  %v5946_v46 = vld [vmem:[%s7118_s1 + $0x3a8] sm:$0xff]  }
  0x20   : > { %5387 = vmatpush3.bf16.msra.mxu0 %v5916_v19  ;;  %5100 = vmatprep.subr.bf16.mxu1 %v5917_v20  ;;  %v5939_v19 = vld [vmem:[%s7118_s1 + $0x90] sm:$0xff]   ;;  %v482_v25 = vld [vmem:[%s6183_s14 + $0x2] sm:$0xff]  ;;  %v5949_v50 = vld [vmem:[%s7118_s1 + $0xb8] sm:$0xff]  }
  0x21   : > { %5388 = vmatprep.subr.bf16.mxu0 %v5918_v21  ;;  %v5940_v22 = vld [vmem:[%s7118_s1 + $0x390] sm:$0xff]   ;;  %v5943_v42 = vld [vmem:[%s7118_s1 + $0xa0] sm:$0xff]   ;;  %v5950_v51 = vld [vmem:[%s7118_s1 + $0x3b8] sm:$0xff]  }
  0x22   : > { %v483_v26 = vld [vmem:[%s6183_s14 + $0x12] sm:$0xff]  ;;  %v5944_v44 = vld [vmem:[%s7118_s1 + $0x3a0] sm:$0xff]  }
  0x23   : > { %5101 = vmatpush3.bf16.msra.mxu1 %v5917_v20  ;;  %v6350_v20 = vpack.c.bf16 %v4402_v12, %v4401_v10  ;;  %v4430_v33 = vld [vmem:[%s6183_s14 + $0x34] sm:$0xff] }
  0x24   : > { %5389 = vmatpush3.bf16.msra.mxu0 %v5918_v21  ;;  %5110 = vmatprep.subr.bf16.mxu1 %v5919_v23  ;;  %v4403_v21 = vld [vmem:[%s6183_s14 + $0x83] sm:$0xff]  ;;  %v4436_v4 = vld [vmem:[%s6183_s14 + $0x94] sm:$0xff] }
  0x25   : > { %5398 = vmatprep.subr.bf16.mxu0 %v5920_v27  ;;  %v633_v5 = vld [vmem:[%s6183_s14 + $0x13] sm:$0xff] }
  0x26   : > { %5103 = vmatmul.mubr.bf16.vlgmr.msra.gmra.mrb[0].mxu1 %v236_v28  ;;  %v4429_v28 = vld [vmem:[%s6183_s14 + $0x24] sm:$0xff]  ;;  %v5958_v10 = vld [vmem:[%s7118_s1 + $0x3d8] sm:$0xff]   ;;  %v5979_v24 = vld [vmem:[%s7118_s1 + $0x130] sm:$0xff]  }
  0x27   : > { %5111 = vmatpush3.bf16.msra.mxu1 %v5919_v23  ;;  %5391 = vmatmul.mubr.bf16.vlgmr.msra.gmra.mrb[0].mxu0 %v6226_v30  ;;  %v4404_v23 = vld [vmem:[%s6183_s14 + $0x93] sm:$0xff] }
  0x28   : > { %5399 = vmatpush3.bf16.msra.mxu0 %v5920_v27  ;;  %5112 = vmatprep.subr.bf16.mxu1 %v5921_v32  ;;  %v210_v27 = vpack.c.bf16 %v6345_v18, %v6342_v16  ;;  %v5980_v29 = vld [vmem:[%s7118_s1 + $0x430] sm:$0xff]   ;;  %v5989_v31 = vld [vmem:[%s7118_s1 + $0x158] sm:$0xff]  }
  0x29   : > { %5400 = vmatprep.subr.bf16.mxu0 %v5922_v36  ;;  %5106 = vmatprep.mubr.bf16.mxu1 %v237_v37  ;;  %v490_v37 = vpack.c.bf16 %v483_v26, %v482_v25  ;;  %v5968_v25 = vld [vmem:[%s7118_s1 + $0x400] sm:$0xff]   ;;  %v6476_v26 = vpack.c.bf16 %v6342_v16, %v6328_v9  ;;  %v5971_v9 = vld [vmem:[%s7118_s1 + $0x110] sm:$0xff]   ;;  %v5990_v40 = vld [vmem:[%s7118_s1 + $0x458] sm:$0xff]  }
  0x2a   : > { %5394 = vmatprep.mubr.bf16.mxu0 %v6246_v39  ;;  %v4467_v16 = vld [vmem:[%s6183_s14 + $0x90] sm:$0xff] }
  0x2b   : > { %5113 = vmatpush3.bf16.msra.mxu1 %v5921_v32  ;;  %v2145_v32 = vpack.c.bf16 %v4404_v23, %v4403_v21  ;;  %v5965_v21 = vld [vmem:[%s7118_s1 + $0xf8] sm:$0xff]   ;;  %v5967_v23 = vld [vmem:[%s7118_s1 + $0x100] sm:$0xff]   ;;  %v5995_v48 = vld [vmem:[%s7118_s1 + $0x170] sm:$0xff]  }
  0x2c   : > { %5401 = vmatpush3.bf16.msra.mxu0 %v5922_v36  ;;  %5114 = vmatprep.subr.bf16.mxu1 %v5923_v38  ;;  %v5942_v36 = vld [vmem:[%s7118_s1 + $0x398] sm:$0xff]   ;;  %v5996_v1 = vld [vmem:[%s7118_s1 + $0x470] sm:$0xff]  }
  0x2d   : > { %5402 = vmatprep.subr.bf16.mxu0 %v5924_v45 }
  0x2e   : > { %5107 = vmatmul.mubr.bf16.gmra.mrb[4].mxu1 %v238_v47  ;;  %v5947_v47 = vld [vmem:[%s7118_s1 + $0xb0] sm:$0xff]  }
  0x2f   : > { %5115 = vmatpush3.bf16.msra.mxu1 %v5923_v38  ;;  %5395 = vmatmul.mubr.bf16.gmra.mrb[4].mxu0 %v1995_v49  ;;  %v6371_v38 = vpack.c.bf16 %v4430_v33, %v4429_v28  ;;  %v5948_v49 = vld [vmem:[%s7118_s1 + $0x3b0] sm:$0xff]   ;;  %v5969_v28 = vld [vmem:[%s7118_s1 + $0x108] sm:$0xff]  }
  0x30   : > { %5403 = vmatpush3.bf16.msra.mxu0 %v5924_v45  ;;  %5116 = vmatprep.subr.bf16.mxu1 %v5925_v52  ;;  %v5945_v45 = vld [vmem:[%s7118_s1 + $0xa8] sm:$0xff]  }
  0x31   : > { %5404 = vmatprep.subr.bf16.mxu0 %v5926_v53  ;;  %5126 = vmatprep.mubr.bf16.mxu1 %v207_v54  ;;  %v4432_v54 = vld [vmem:[%s6183_s14 + $0x54] sm:$0xff] }
  0x32   : > { %5414 = vmatprep.mubr.bf16.mxu0 %v6278_v55 }
  0x33   : > { %5117 = vmatpush3.bf16.msra.mxu1 %v5925_v52  ;;  %v5951_v52 = vld [vmem:[%s7118_s1 + $0xc0] sm:$0xff]  }
  0x34   : > { %5405 = vmatpush3.bf16.msra.mxu0 %v5926_v53  ;;  %5118 = vmatprep.subr.bf16.mxu1 %v5927_v56  ;;  %v4431_v53 = vld [vmem:[%s6183_s14 + $0x44] sm:$0xff] }
  0x35   : > { %5406 = vmatprep.subr.bf16.mxu0 %v5928_v57 }
  0x37   : > { %5119 = vmatpush3.bf16.msra.mxu1 %v5927_v56  ;;  %v5952_v56 = vld [vmem:[%s7118_s1 + $0x3c0] sm:$0xff]  }
  0x38   : > { %5407 = vmatpush3.bf16.msra.mxu0 %v5928_v57  ;;  %5120 = vmatprep.subr.bf16.mxu1 %v5929_v58  ;;  %v6406_v57 = vpack.c.bf16 %v4432_v54, %v4431_v53  ;;  %v5985_v53 = vld [vmem:[%s7118_s1 + $0x148] sm:$0xff]  }
  0x39   : > { %5408 = vmatprep.subr.bf16.mxu0 %v5930_v59  ;;  %v5986_v54 = vld [vmem:[%s7118_s1 + $0x448] sm:$0xff]  }
  0x3b   : > { %5121 = vmatpush3.bf16.msra.mxu1 %v5929_v58  ;;  %v4433_v58 = vld [vmem:[%s6183_s14 + $0x64] sm:$0xff] }
  0x3c   : > { %5409 = vmatpush3.bf16.msra.mxu0 %v5930_v59  ;;  %5122 = vmatprep.subr.bf16.mxu1 %v5931_v60  ;;  %v4434_v59 = vld [vmem:[%s6183_s14 + $0x74] sm:$0xff] }
  0x3d   : > { %5410 = vmatprep.subr.bf16.mxu0 %v5932_v61 }
  0x3f   : > { %5123 = vmatpush3.bf16.msra.mxu1 %v5931_v60  ;;  %v5953_v60 = vld [vmem:[%s7118_s1 + $0xc8] sm:$0xff]  }
  0x40   : > { %5411 = vmatpush3.bf16.msra.mxu0 %v5932_v61  ;;  %5124 = vmatprep.subr.bf16.mxu1 %v5933_v62  ;;  %v5954_v61 = vld [vmem:[%s7118_s1 + $0x3c8] sm:$0xff]  }
  0x41   : > { %5412 = vmatprep.subr.bf16.mxu0 %v5934_v63 }
  0x43   : > { %5125 = vmatpush3.bf16.msra.mxu1 %v5933_v62  ;;  %v5955_v62 = vld [vmem:[%s7118_s1 + $0xd0] sm:$0xff]  }
  0x44   : > { %5413 = vmatpush3.bf16.msra.mxu0 %v5934_v63  ;;  %5134 = vmatprep.subr.bf16.mxu1 %v5935_v0  ;;  %v6420_v63 = vpack.c.bf16 %v4434_v59, %v4433_v58  ;;  %v4499_v59 = vld [vmem:[%s6183_s14 + $0x91] sm:$0xff] }
  0x45   : > { %5422 = vmatprep.subr.bf16.mxu0 %v5936_v3 }
  0x46   : > { %5127 = vmatmul.mubr.bf16.vlgmr.msra.gmra.mrb[0].mxu1 %v208_v7 }
  0x47   : > { %5135 = vmatpush3.bf16.msra.mxu1 %v5935_v0  ;;  %5415 = vmatmul.mubr.bf16.vlgmr.msra.gmra.mrb[0].mxu0 %v6331_v11  ;;  %v5956_v0 = vld [vmem:[%s7118_s1 + $0x3d0] sm:$0xff]  }
  0x48   : > { %5423 = vmatpush3.bf16.msra.mxu0 %v5936_v3  ;;  %5136 = vmatprep.subr.bf16.mxu1 %v5937_v8  ;;  %v4435_v3 = vld [vmem:[%s6183_s14 + $0x84] sm:$0xff] }
  0x49   : > { %5424 = vmatprep.subr.bf16.mxu0 %v5938_v13  ;;  %5130 = vmatprep.mubr.bf16.mxu1 %v209_v15  ;;  %v2295_v7 = vpack.c.bf16 %v4436_v4, %v4435_v3  ;;  %v5960_v15 = vld [vmem:[%s7118_s1 + $0x3e0] sm:$0xff]   ;;  %v5994_v3 = vld [vmem:[%s7118_s1 + $0x468] sm:$0xff]   ;;  %v5998_v4 = vld [vmem:[%s7118_s1 + $0x478] sm:$0xff]  }
  0x4a   : > { %5418 = vmatprep.mubr.bf16.mxu0 %v6350_v20 }
  0x4b   : > { %5137 = vmatpush3.bf16.msra.mxu1 %v5937_v8  ;;  %v5957_v8 = vld [vmem:[%s7118_s1 + $0xd8] sm:$0xff]  }
  0x4c   : > { %5425 = vmatpush3.bf16.msra.mxu0 %v5938_v13  ;;  %5138 = vmatprep.subr.bf16.mxu1 %v5939_v19  ;;  %v5959_v13 = vld [vmem:[%s7118_s1 + $0xe0] sm:$0xff]  }
  0x4d   : > { %5426 = vmatprep.subr.bf16.mxu0 %v5940_v22 }
  0x4e   : > { %5131 = vmatmul.mubr.bf16.gmra.mrb[4].mxu1 %v210_v27  ;;  %v4466_v27 = vld [vmem:[%s6183_s14 + $0x80] sm:$0xff] }
  0x4f   : > { %5139 = vmatpush3.bf16.msra.mxu1 %v5939_v19  ;;  %5419 = vmatmul.mubr.bf16.gmra.mrb[4].mxu0 %v2145_v32  ;;  %v5964_v19 = vld [vmem:[%s7118_s1 + $0x3f0] sm:$0xff]   ;;  %v5970_v32 = vld [vmem:[%s7118_s1 + $0x408] sm:$0xff]   ;;  %v6487_v33 = vpack.c.bf16 %v4466_v27, %v6345_v18 }
  0x50   : > { %5427 = vmatpush3.bf16.msra.mxu0 %v5940_v22  ;;  %5140 = vmatprep.subr.bf16.mxu1 %v5941_v34  ;;  %v5966_v22 = vld [vmem:[%s7118_s1 + $0x3f8] sm:$0xff]   ;;  %v4558_v27 = vld [vmem:[%s6183_s14 + $0x43] sm:$0xff] }
  0x51   : > { %5428 = vmatprep.subr.bf16.mxu0 %v5942_v36  ;;  %5150 = vmatprep.mubr.bf16.mxu1 %v490_v37  ;;  %v783_v18 = vld [vmem:[%s6183_s14 + $0x14] sm:$0xff] }
  0x52   : > { %5438 = vmatprep.mubr.bf16.mxu0 %v6371_v38 }
  0x53   : > { %5141 = vmatpush3.bf16.msra.mxu1 %v5941_v34  ;;  %v4468_v34 = vld [vmem:[%s6183_s14 + $0xa0] sm:$0xff] }
  0x54   : > { %5429 = vmatpush3.bf16.msra.mxu0 %v5942_v36  ;;  %5142 = vmatprep.subr.bf16.mxu1 %v5943_v42  ;;  %v5972_v36 = vld [vmem:[%s7118_s1 + $0x410] sm:$0xff]   ;;  %v2446_v37 = vpack.c.bf16 %v4468_v34, %v4467_v16  ;;  %v6007_v34 = vld [vmem:[%s7118_s1 + $0x1a0] sm:$0xff]  }
  0x55   : > { %5430 = vmatprep.subr.bf16.mxu0 %v5944_v44 }
  0x57   : > { %5143 = vmatpush3.bf16.msra.mxu1 %v5943_v42  ;;  %v5973_v42 = vld [vmem:[%s7118_s1 + $0x118] sm:$0xff]  }
  0x58   : > { %5431 = vmatpush3.bf16.msra.mxu0 %v5944_v44  ;;  %5144 = vmatprep.subr.bf16.mxu1 %v5945_v45  ;;  %v5974_v44 = vld [vmem:[%s7118_s1 + $0x418] sm:$0xff]  }
  0x59   : > { %5432 = vmatprep.subr.bf16.mxu0 %v5946_v46 }
  0x5b   : > { %5145 = vmatpush3.bf16.msra.mxu1 %v5945_v45 }
  0x5c   : > { %5433 = vmatpush3.bf16.msra.mxu0 %v5946_v46  ;;  %5146 = vmatprep.subr.bf16.mxu1 %v5947_v47  ;;  %v5976_v46 = vld [vmem:[%s7118_s1 + $0x420] sm:$0xff]  }
  0x5d   : > { %5434 = vmatprep.subr.bf16.mxu0 %v5948_v49 }
  0x5f   : > { %5147 = vmatpush3.bf16.msra.mxu1 %v5947_v47  ;;  %v5978_v47 = vld [vmem:[%s7118_s1 + $0x428] sm:$0xff]  }
  0x60   : > { %5435 = vmatpush3.bf16.msra.mxu0 %v5948_v49  ;;  %5148 = vmatprep.subr.bf16.mxu1 %v5949_v50  ;;  %v5982_v49 = vld [vmem:[%s7118_s1 + $0x438] sm:$0xff]  }
  0x61   : > { %5436 = vmatprep.subr.bf16.mxu0 %v5950_v51 }
  0x63   : > { %5149 = vmatpush3.bf16.msra.mxu1 %v5949_v50  ;;  %v5983_v50 = vld [vmem:[%s7118_s1 + $0x140] sm:$0xff]  }
  0x64   : > { %5437 = vmatpush3.bf16.msra.mxu0 %v5950_v51  ;;  %5158 = vmatprep.subr.bf16.mxu1 %v5951_v52  ;;  %v5984_v51 = vld [vmem:[%s7118_s1 + $0x440] sm:$0xff]  }
  0x65   : > { %5446 = vmatprep.subr.bf16.mxu0 %v5952_v56 }
  0x66   : > { %5151 = vmatmul.mubr.bf16.vlgmr.msra.gmra.mrb[0].mxu1 %v6195_v17  ;;  %v632_v17 = vld [vmem:[%s6183_s14 + $0x3] sm:$0xff] }
  0x67   : > { %5159 = vmatpush3.bf16.msra.mxu1 %v5951_v52  ;;  %5439 = vmatmul.mubr.bf16.vlgmr.msra.gmra.mrb[0].mxu0 %v6406_v57  ;;  %v640_v12 = vpack.c.bf16 %v633_v5, %v632_v17  ;;  %v6543_v52 = vld [vmem:[%s6183_s14 + $0x81] sm:$0xff]  ;;  %v6609_v5 = vld [vmem:[%s6183_s14 + $0x52] sm:$0xff] }
  0x68   : > { %5447 = vmatpush3.bf16.msra.mxu0 %v5952_v56  ;;  %5160 = vmatprep.subr.bf16.mxu1 %v5953_v60  ;;  %v5987_v56 = vld [vmem:[%s7118_s1 + $0x150] sm:$0xff]   ;;  %v2595_v58 = vpack.c.bf16 %v6543_v52, %v6252_v41  ;;  %v5999_v17 = vld [vmem:[%s7118_s1 + $0x180] sm:$0xff]  }
  0x69   : > { %5448 = vmatprep.subr.bf16.mxu0 %v5954_v61  ;;  %5154 = vmatprep.mubr.bf16.mxu1 %v6226_v30  ;;  %v6441_v30 = vpack.c.bf16 %v6320_v6, %v6312_v2  ;;  %v5962_v2 = vld [vmem:[%s7118_s1 + $0x3e8] sm:$0xff]   ;;  %v5963_v6 = vld [vmem:[%s7118_s1 + $0xf0] sm:$0xff]  }
  0x6a   : > { %5442 = vmatprep.mubr.bf16.mxu0 %v6420_v63  ;;  %v4525_v41 = vld [vmem:[%s6183_s14 + $0x32] sm:$0xff] }
  0x6b   : > { %5161 = vmatpush3.bf16.msra.mxu1 %v5953_v60  ;;  %v4500_v60 = vld [vmem:[%s6183_s14 + $0xa1] sm:$0xff] }
  0x6c   : > { %5449 = vmatpush3.bf16.msra.mxu0 %v5954_v61  ;;  %5162 = vmatprep.subr.bf16.mxu1 %v5955_v62  ;;  %v2596_v61 = vpack.c.bf16 %v4500_v60, %v4499_v59  ;;  %v6719_v60 = vld [vmem:[%s6183_s14 + $0x71] sm:$0xff] }
  0x6d   : > { %5450 = vmatprep.subr.bf16.mxu0 %v5956_v0 }
  0x6e   : > { %5155 = vmatmul.mubr.bf16.gmra.mrb[4].mxu1 %v6246_v39  ;;  %v5961_v39 = vld [vmem:[%s7118_s1 + $0xe8] sm:$0xff]  }
  0x6f   : > { %5163 = vmatpush3.bf16.msra.mxu1 %v5955_v62  ;;  %5443 = vmatmul.mubr.bf16.gmra.mrb[4].mxu0 %v2295_v7  ;;  %v4526_v62 = vld [vmem:[%s6183_s14 + $0x42] sm:$0xff] }
  0x70   : > { %5451 = vmatpush3.bf16.msra.mxu0 %v5956_v0  ;;  %5164 = vmatprep.subr.bf16.mxu1 %v5957_v8  ;;  %v5992_v0 = vld [vmem:[%s7118_s1 + $0x460] sm:$0xff]  }
  0x71   : > { %5452 = vmatprep.subr.bf16.mxu0 %v5958_v10  ;;  %5174 = vmatprep.mubr.bf16.mxu1 %v640_v12  ;;  %v6000_v7 = vld [vmem:[%s7118_s1 + $0x480] sm:$0xff]  }
  0x72   : > { %5462 = vmatprep.mubr.bf16.mxu0 %v6441_v30 }
  0x73   : > { %5165 = vmatpush3.bf16.msra.mxu1 %v5957_v8  ;;  %v6615_v8 = vld [vmem:[%s6183_s14 + $0x72] sm:$0xff] }
  0x74   : > { %5453 = vmatpush3.bf16.msra.mxu0 %v5958_v10  ;;  %5166 = vmatprep.subr.bf16.mxu1 %v5959_v13  ;;  %v6103_v10 = vld [vmem:[%s6183_s14 + $0x62] sm:$0xff] }
  0x75   : > { %5454 = vmatprep.subr.bf16.mxu0 %v5960_v15  ;;  %v2744_v12 = vpack.c.bf16 %v6103_v10, %v6609_v5  ;;  %v6026_v10 = vld [vmem:[%s7118_s1 + $0x4e8] sm:$0xff]  }
  0x77   : > { %5167 = vmatpush3.bf16.msra.mxu1 %v5959_v13  ;;  %v4530_v13 = vld [vmem:[%s6183_s14 + $0x82] sm:$0xff] }
  0x78   : > { %5455 = vmatpush3.bf16.msra.mxu0 %v5960_v15  ;;  %5168 = vmatprep.subr.bf16.mxu1 %v5961_v39  ;;  %v6001_v15 = vld [vmem:[%s7118_s1 + $0x188] sm:$0xff]  }
  0x79   : > { %5456 = vmatprep.subr.bf16.mxu0 %v5962_v2 }
  0x7b   : > { %5169 = vmatpush3.bf16.msra.mxu1 %v5961_v39  ;;  %v6002_v39 = vld [vmem:[%s7118_s1 + $0x488] sm:$0xff]  }
  0x7c   : > { %5457 = vmatpush3.bf16.msra.mxu0 %v5962_v2  ;;  %5170 = vmatprep.subr.bf16.mxu1 %v5963_v6  ;;  %v6003_v2 = vld [vmem:[%s7118_s1 + $0x190] sm:$0xff]  }
  0x7d   : > { %5458 = vmatprep.subr.bf16.mxu0 %v5964_v19 }
  0x7f   : > { %5171 = vmatpush3.bf16.msra.mxu1 %v5963_v6  ;;  %v6631_v6 = vpack.c.bf16 %v4530_v13, %v6615_v8  ;;  %v6028_v13 = vld [vmem:[%s7118_s1 + $0x4f0] sm:$0xff]  }
  0x80   : > { %5459 = vmatpush3.bf16.msra.mxu0 %v5964_v19  ;;  %5172 = vmatprep.subr.bf16.mxu1 %v5965_v21  ;;  %v4531_v19 = vld [vmem:[%s6183_s14 + $0x92] sm:$0xff] }
  0x81   : > { %5460 = vmatprep.subr.bf16.mxu0 %v5966_v22 }
  0x83   : > { %5173 = vmatpush3.bf16.msra.mxu1 %v5965_v21  ;;  %v4532_v21 = vld [vmem:[%s6183_s14 + $0xa2] sm:$0xff] }
  0x84   : > { %5461 = vmatpush3.bf16.msra.mxu0 %v5966_v22  ;;  %5182 = vmatprep.subr.bf16.mxu1 %v5967_v23  ;;  %v6004_v22 = vld [vmem:[%s7118_s1 + $0x490] sm:$0xff]  }
  0x85   : > { %5470 = vmatprep.subr.bf16.mxu0 %v5968_v25 }
  0x86   : > { %5175 = vmatmul.mubr.bf16.vlgmr.msra.gmra.mrb[0].mxu1 %v6278_v55  ;;  %v782_v55 = vld [vmem:[%s6183_s14 + $0x4] sm:$0xff] }
  0x87   : > { %5183 = vmatpush3.bf16.msra.mxu1 %v5967_v23  ;;  %5463 = vmatmul.mubr.bf16.vlgmr.msra.gmra.mrb[0].mxu0 %v6476_v26  ;;  %v790_v45 = vpack.c.bf16 %v783_v18, %v782_v55  ;;  %v4173_v23 = vld [vmem:[%s6183_s14 + $0x11] sm:$0xff]  ;;  %v6010_v55 = vld [vmem:[%s7118_s1 + $0x4a8] sm:$0xff]  }
  0x88   : > { %5471 = vmatpush3.bf16.msra.mxu0 %v5968_v25  ;;  %5184 = vmatprep.subr.bf16.mxu1 %v5969_v28  ;;  %v4174_v25 = vld [vmem:[%s6183_s14 + $0x21] sm:$0xff]  ;;  %v6011_v18 = vld [vmem:[%s7118_s1 + $0x1b0] sm:$0xff]  }
  0x89   : > { %5472 = vmatprep.subr.bf16.mxu0 %v5970_v32  ;;  %5178 = vmatprep.mubr.bf16.mxu1 %v6331_v11  ;;  %v5975_v11 = vld [vmem:[%s7118_s1 + $0x120] sm:$0xff]   ;;  %v1091_v16 = vpack.c.bf16 %v4174_v25, %v4173_v23 }
  0x8a   : > { %5466 = vmatprep.mubr.bf16.mxu0 %v6487_v33  ;;  %v6105_v23 = vld [vmem:[%s6183_s14 + $0x64] sm:$0xff] }
  0x8b   : > { %5185 = vmatpush3.bf16.msra.mxu1 %v5969_v28  ;;  %v2746_v28 = vpack.c.bf16 %v4532_v21, %v4531_v19  ;;  %v6779_v19 = vld [vmem:[%s6183_s14 + $0x54] sm:$0xff]  ;;  %v6032_v21 = vld [vmem:[%s7118_s1 + $0x500] sm:$0xff]  }
  0x8c   : > { %5473 = vmatpush3.bf16.msra.mxu0 %v5970_v32  ;;  %5186 = vmatprep.subr.bf16.mxu1 %v5971_v9  ;;  %v6005_v32 = vld [vmem:[%s7118_s1 + $0x198] sm:$0xff]   ;;  %v3044_v25 = vpack.c.bf16 %v6105_v23, %v6779_v19 }
  0x8d   : > { %5474 = vmatprep.subr.bf16.mxu0 %v5972_v36 }
  0x8e   : > { %5179 = vmatmul.mubr.bf16.gmra.mrb[4].mxu1 %v6350_v20  ;;  %v5977_v20 = vld [vmem:[%s7118_s1 + $0x128] sm:$0xff]  }
  0x8f   : > { %5187 = vmatpush3.bf16.msra.mxu1 %v5971_v9  ;;  %5467 = vmatmul.mubr.bf16.gmra.mrb[4].mxu0 %v2446_v37  ;;  %v6006_v9 = vld [vmem:[%s7118_s1 + $0x498] sm:$0xff]   ;;  %v6012_v37 = vld [vmem:[%s7118_s1 + $0x4b0] sm:$0xff]  }
  0x90   : > { %5475 = vmatpush3.bf16.msra.mxu0 %v5972_v36  ;;  %5188 = vmatprep.subr.bf16.mxu1 %v5973_v42  ;;  %v6008_v36 = vld [vmem:[%s7118_s1 + $0x4a0] sm:$0xff]  }
  0x91   : > { %5476 = vmatprep.subr.bf16.mxu0 %v5974_v44  ;;  %5198 = vmatprep.mubr.bf16.mxu1 %v790_v45  ;;  %v4175_v45 = vld [vmem:[%s6183_s14 + $0x31] sm:$0xff] }
  0x92   : > { %5486 = vmatprep.mubr.bf16.mxu0 %v2593_v35  ;;  %v5981_v35 = vld [vmem:[%s7118_s1 + $0x138] sm:$0xff]  }
  0x93   : > { %5189 = vmatpush3.bf16.msra.mxu1 %v5973_v42  ;;  %v6013_v42 = vld [vmem:[%s7118_s1 + $0x1b8] sm:$0xff]  }
  0x94   : > { %5477 = vmatpush3.bf16.msra.mxu0 %v5974_v44  ;;  %5190 = vmatprep.subr.bf16.mxu1 %v5975_v11  ;;  %v6014_v44 = vld [vmem:[%s7118_s1 + $0x4b8] sm:$0xff]  }
  0x95   : > { %5478 = vmatprep.subr.bf16.mxu0 %v5976_v46 }
  0x97   : > { %5191 = vmatpush3.bf16.msra.mxu1 %v5975_v11  ;;  %v6680_v11 = vld [vmem:[%s6183_s14 + $0x41] sm:$0xff] }
  0x98   : > { %5479 = vmatpush3.bf16.msra.mxu0 %v5976_v46  ;;  %5192 = vmatprep.subr.bf16.mxu1 %v5977_v20  ;;  %v6015_v46 = vld [vmem:[%s7118_s1 + $0x1c0] sm:$0xff]  }
  0x99   : > { %5480 = vmatprep.subr.bf16.mxu0 %v5978_v47 }
  0x9b   : > { %5193 = vmatpush3.bf16.msra.mxu1 %v5977_v20  ;;  %v6686_v20 = vld [vmem:[%s6183_s14 + $0x53] sm:$0xff] }
  0x9c   : > { %5481 = vmatpush3.bf16.msra.mxu0 %v5978_v47  ;;  %5194 = vmatprep.subr.bf16.mxu1 %v5979_v24  ;;  %v6016_v47 = vld [vmem:[%s7118_s1 + $0x4c0] sm:$0xff]  }
  0x9d   : > { %5482 = vmatprep.subr.bf16.mxu0 %v5980_v29 }
  0x9f   : > { %5195 = vmatpush3.bf16.msra.mxu1 %v5979_v24  ;;  %v6692_v24 = vld [vmem:[%s6183_s14 + $0x51] sm:$0xff] }
  0xa0   : > { %5483 = vmatpush3.bf16.msra.mxu0 %v5980_v29  ;;  %5196 = vmatprep.subr.bf16.mxu1 %v5981_v35  ;;  %v6695_v29 = vld [vmem:[%s6183_s14 + $0x61] sm:$0xff]  ;;  %v3344_v23 = vpack.c.bf16 %v6692_v24, %v6680_v11 }
  0xa1   : > { %5484 = vmatprep.subr.bf16.mxu0 %v5982_v49 }
  0xa3   : > { %5197 = vmatpush3.bf16.msra.mxu1 %v5981_v35  ;;  %v6698_v35 = vld [vmem:[%s6183_s14 + $0x73] sm:$0xff] }
  0xa4   : > { %5485 = vmatpush3.bf16.msra.mxu0 %v5982_v49  ;;  %5206 = vmatprep.subr.bf16.mxu1 %v5983_v50  ;;  %v6701_v49 = vld [vmem:[%s6183_s14 + $0x83] sm:$0xff] }
  0xa5   : > { %5494 = vmatprep.subr.bf16.mxu0 %v5984_v51  ;;  %v6716_v59 = vpack.c.bf16 %v6701_v49, %v6698_v35 }
  0xa6   : > { %5199 = vmatmul.mubr.bf16.vlgmr.msra.gmra.mrb[0].mxu1 %v6371_v38  ;;  %v5988_v38 = vld [vmem:[%s7118_s1 + $0x450] sm:$0xff]  }
  0xa7   : > { %5207 = vmatpush3.bf16.msra.mxu1 %v5983_v50  ;;  %5487 = vmatmul.mubr.bf16.vlgmr.msra.gmra.mrb[0].mxu0 %v2594_v43  ;;  %v6575_v43 = vpack.c.bf16 %v4526_v62, %v4525_v41  ;;  %v1092_v50 = vpack.c.bf16 %v6680_v11, %v4175_v45  ;;  %v6728_v41 = vld [vmem:[%s6183_s14 + $0xa3] sm:$0xff]  ;;  %v6020_v62 = vld [vmem:[%s7118_s1 + $0x4d0] sm:$0xff]   ;;  %v6038_v45 = vld [vmem:[%s7118_s1 + $0x518] sm:$0xff]  }
  0xa8   : > { %5495 = vmatpush3.bf16.msra.mxu0 %v5984_v51  ;;  %5208 = vmatprep.subr.bf16.mxu1 %v5985_v53  ;;  %v6104_v51 = vld [vmem:[%s6183_s14 + $0x63] sm:$0xff] }
  0xa9   : > { %5496 = vmatprep.subr.bf16.mxu0 %v5986_v54  ;;  %5202 = vmatprep.mubr.bf16.mxu1 %v6406_v57  ;;  %v5991_v57 = vld [vmem:[%s7118_s1 + $0x160] sm:$0xff]   ;;  %v6057_v11 = vld [vmem:[%s7118_s1 + $0x268] sm:$0xff]  }
  0xaa   : > { %5490 = vmatprep.mubr.bf16.mxu0 %v2595_v58  ;;  %v1093_v58 = vpack.c.bf16 %v6695_v29, %v6692_v24 }
  0xab   : > { %5209 = vmatpush3.bf16.msra.mxu1 %v5985_v53  ;;  %v2894_v53 = vpack.c.bf16 %v6104_v51, %v6686_v20  ;;  %v6040_v51 = vld [vmem:[%s7118_s1 + $0x520] sm:$0xff]  }
  0xac   : > { %5497 = vmatpush3.bf16.msra.mxu0 %v5986_v54  ;;  %5210 = vmatprep.subr.bf16.mxu1 %v5987_v56  ;;  %v6017_v54 = vld [vmem:[%s7118_s1 + $0x1c8] sm:$0xff]  }
  0xad   : > { %5498 = vmatprep.subr.bf16.mxu0 %v5988_v38 }
  0xae   : > { %5203 = vmatmul.mubr.bf16.gmra.mrb[4].mxu1 %v6420_v63  ;;  %v5993_v63 = vld [vmem:[%s7118_s1 + $0x168] sm:$0xff]  }
  0xaf   : > { %5211 = vmatpush3.bf16.msra.mxu1 %v5987_v56  ;;  %5491 = vmatmul.mubr.bf16.gmra.mrb[4].mxu0 %v2596_v61  ;;  %v6018_v56 = vld [vmem:[%s7118_s1 + $0x4c8] sm:$0xff]   ;;  %v6725_v61 = vld [vmem:[%s6183_s14 + $0x93] sm:$0xff] }
  0xb0   : > { %5499 = vmatpush3.bf16.msra.mxu0 %v5988_v38  ;;  %5212 = vmatprep.subr.bf16.mxu1 %v5989_v31  ;;  %v6019_v38 = vld [vmem:[%s7118_s1 + $0x1d0] sm:$0xff]  }
  0xb1   : > { %5500 = vmatprep.subr.bf16.mxu0 %v5990_v40  ;;  %5222 = vmatprep.mubr.bf16.mxu1 %v941_v14  ;;  %v5997_v14 = vld [vmem:[%s7118_s1 + $0x178] sm:$0xff]  }
  0xb2   : > { %5510 = vmatprep.mubr.bf16.mxu0 %v6575_v43 }
  0xb3   : > { %5213 = vmatpush3.bf16.msra.mxu1 %v5989_v31  ;;  %v1094_v31 = vpack.c.bf16 %v6543_v52, %v6719_v60 }
  0xb4   : > { %5501 = vmatpush3.bf16.msra.mxu0 %v5990_v40  ;;  %5214 = vmatprep.subr.bf16.mxu1 %v5991_v57  ;;  %v4205_v40 = vld [vmem:[%s6183_s14 + $0x12] sm:$0xff] }
  0xb5   : > { %5502 = vmatprep.subr.bf16.mxu0 %v5992_v0 }
  0xb7   : > { %5215 = vmatpush3.bf16.msra.mxu1 %v5991_v57  ;;  %v4206_v57 = vld [vmem:[%s6183_s14 + $0x22] sm:$0xff] }
  0xb8   : > { %5503 = vmatpush3.bf16.msra.mxu0 %v5992_v0  ;;  %5216 = vmatprep.subr.bf16.mxu1 %v5993_v63  ;;  %v2896_v0 = vpack.c.bf16 %v6728_v41, %v6725_v61  ;;  %v1241_v52 = vpack.c.bf16 %v4206_v57, %v4205_v40  ;;  %v4624_v40 = vld [vmem:[%s6183_s14 + $0x70] sm:$0xff]  ;;  %v6048_v57 = vld [vmem:[%s7118_s1 + $0x540] sm:$0xff]  }
  0xb9   : > { %5504 = vmatprep.subr.bf16.mxu0 %v5994_v3 }
  0xbb   : > { %5217 = vmatpush3.bf16.msra.mxu1 %v5993_v63  ;;  %v4589_v63 = vld [vmem:[%s6183_s14 + $0x34] sm:$0xff] }
  0xbc   : > { %5505 = vmatpush3.bf16.msra.mxu0 %v5994_v3  ;;  %5218 = vmatprep.subr.bf16.mxu1 %v5995_v48  ;;  %v4590_v3 = vld [vmem:[%s6183_s14 + $0x44] sm:$0xff] }
  0xbd   : > { %5506 = vmatprep.subr.bf16.mxu0 %v5996_v1 }
  0xbf   : > { %5219 = vmatpush3.bf16.msra.mxu1 %v5995_v48  ;;  %v6021_v48 = vld [vmem:[%s7118_s1 + $0x1d8] sm:$0xff]  }
  0xc0   : > { %5507 = vmatpush3.bf16.msra.mxu0 %v5996_v1  ;;  %5220 = vmatprep.subr.bf16.mxu1 %v5997_v14  ;;  %v6022_v1 = vld [vmem:[%s7118_s1 + $0x4d8] sm:$0xff]  }
  0xc1   : > { %5508 = vmatprep.subr.bf16.mxu0 %v5998_v4 }
  0xc3   : > { %5221 = vmatpush3.bf16.msra.mxu1 %v5997_v14  ;;  %v6748_v14 = vpack.c.bf16 %v4590_v3, %v4589_v63  ;;  %v4625_v3 = vld [vmem:[%s6183_s14 + $0x80] sm:$0xff] }
  0xc4   : > { %5509 = vmatpush3.bf16.msra.mxu0 %v5998_v4  ;;  %5230 = vmatprep.subr.bf16.mxu1 %v5999_v17  ;;  %v6023_v4 = vld [vmem:[%s7118_s1 + $0x1e0] sm:$0xff]  }
  0xc5   : > { %5518 = vmatprep.subr.bf16.mxu0 %v6000_v7 }
  0xc6   : > { %5223 = vmatmul.mubr.bf16.vlgmr.msra.gmra.mrb[0].mxu1 %v6441_v30  ;;  %v4557_v30 = vld [vmem:[%s6183_s14 + $0x33] sm:$0xff] }
  0xc7   : > { %5231 = vmatpush3.bf16.msra.mxu1 %v5999_v17  ;;  %5511 = vmatmul.mubr.bf16.vlgmr.msra.gmra.mrb[0].mxu0 %v2744_v12  ;;  %v6024_v17 = vld [vmem:[%s7118_s1 + $0x4e0] sm:$0xff]   ;;  %v6027_v12 = vld [vmem:[%s7118_s1 + $0x1f0] sm:$0xff]  }
  0xc8   : > { %5519 = vmatpush3.bf16.msra.mxu0 %v6000_v7  ;;  %5232 = vmatprep.subr.bf16.mxu1 %v6001_v15  ;;  %v6025_v7 = vld [vmem:[%s7118_s1 + $0x1e8] sm:$0xff]  }
  0xc9   : > { %5520 = vmatprep.subr.bf16.mxu0 %v6002_v39  ;;  %5226 = vmatprep.mubr.bf16.mxu1 %v6476_v26  ;;  %v6651_v26 = vpack.c.bf16 %v4558_v27, %v4557_v30  ;;  %v6790_v30 = vld [vmem:[%s6183_s14 + $0x74] sm:$0xff]  ;;  %v6793_v27 = vld [vmem:[%s6183_s14 + $0x84] sm:$0xff] }
  0xca   : > { %5514 = vmatprep.mubr.bf16.mxu0 %v6631_v6 }
  0xcb   : > { %5233 = vmatpush3.bf16.msra.mxu1 %v6001_v15  ;;  %v6029_v15 = vld [vmem:[%s7118_s1 + $0x1f8] sm:$0xff]  }
  0xcc   : > { %5521 = vmatpush3.bf16.msra.mxu0 %v6002_v39  ;;  %5234 = vmatprep.subr.bf16.mxu1 %v6003_v2  ;;  %v6030_v39 = vld [vmem:[%s7118_s1 + $0x4f8] sm:$0xff]  }
  0xcd   : > { %5522 = vmatprep.subr.bf16.mxu0 %v6004_v22 }
  0xce   : > { %5227 = vmatmul.mubr.bf16.gmra.mrb[4].mxu1 %v6487_v33  ;;  %v6009_v33 = vld [vmem:[%s7118_s1 + $0x1a8] sm:$0xff]  }
  0xcf   : > { %5235 = vmatpush3.bf16.msra.mxu1 %v6003_v2  ;;  %5515 = vmatmul.mubr.bf16.gmra.mrb[4].mxu0 %v2746_v28  ;;  %v6031_v2 = vld [vmem:[%s7118_s1 + $0x200] sm:$0xff]   ;;  %v6033_v28 = vld [vmem:[%s7118_s1 + $0x208] sm:$0xff]  }
  0xd0   : > { %5523 = vmatpush3.bf16.msra.mxu0 %v6004_v22  ;;  %5236 = vmatprep.subr.bf16.mxu1 %v6005_v32  ;;  %v6785_v22 = vld [vmem:[%s6183_s14 + $0x62] sm:$0xff] }
  0xd1   : > { %5524 = vmatprep.subr.bf16.mxu0 %v6006_v9  ;;  %5246 = vmatprep.mubr.bf16.mxu1 %v1091_v16  ;;  %v6806_v16 = vpack.c.bf16 %v6793_v27, %v6790_v30 }
  0xd2   : > { %5534 = vmatprep.mubr.bf16.mxu0 %v6651_v26 }
  0xd3   : > { %5237 = vmatpush3.bf16.msra.mxu1 %v6005_v32  ;;  %v6034_v32 = vld [vmem:[%s7118_s1 + $0x508] sm:$0xff]  }
  0xd4   : > { %5525 = vmatpush3.bf16.msra.mxu0 %v6006_v9  ;;  %5238 = vmatprep.subr.bf16.mxu1 %v6007_v34  ;;  %v1243_v9 = vpack.c.bf16 %v6785_v22, %v6609_v5  ;;  %v4237_v5 = vld [vmem:[%s6183_s14 + $0x13] sm:$0xff] }
  0xd5   : > { %5526 = vmatprep.subr.bf16.mxu0 %v6008_v36 }
  0xd7   : > { %5239 = vmatpush3.bf16.msra.mxu1 %v6007_v34  ;;  %v6035_v34 = vld [vmem:[%s7118_s1 + $0x210] sm:$0xff]  }
  0xd8   : > { %5527 = vmatpush3.bf16.msra.mxu0 %v6008_v36  ;;  %5240 = vmatprep.subr.bf16.mxu1 %v6009_v33  ;;  %v6812_v36 = vld [vmem:[%s6183_s14 + $0x94] sm:$0xff] }
  0xd9   : > { %5528 = vmatprep.subr.bf16.mxu0 %v6010_v55 }
  0xdb   : > { %5241 = vmatpush3.bf16.msra.mxu1 %v6009_v33  ;;  %v6815_v33 = vld [vmem:[%s6183_s14 + $0xa4] sm:$0xff] }
  0xdc   : > { %5529 = vmatpush3.bf16.msra.mxu0 %v6010_v55  ;;  %5242 = vmatprep.subr.bf16.mxu1 %v6011_v18  ;;  %v4238_v55 = vld [vmem:[%s6183_s14 + $0x23] sm:$0xff] }
  0xdd   : > { %5530 = vmatprep.subr.bf16.mxu0 %v6012_v37 }
  0xdf   : > { %5243 = vmatpush3.bf16.msra.mxu1 %v6011_v18  ;;  %v3046_v18 = vpack.c.bf16 %v6815_v33, %v6812_v36 }
  0xe0   : > { %5531 = vmatpush3.bf16.msra.mxu0 %v6012_v37  ;;  %5244 = vmatprep.subr.bf16.mxu1 %v6013_v42  ;;  %v4621_v37 = vld [vmem:[%s6183_s14 + $0x40] sm:$0xff] }
  0xe1   : > { %5532 = vmatprep.subr.bf16.mxu0 %v6014_v44 }
  0xe3   : > { %5245 = vmatpush3.bf16.msra.mxu1 %v6013_v42  ;;  %v4622_v42 = vld [vmem:[%s6183_s14 + $0x50] sm:$0xff] }
  0xe4   : > { %5533 = vmatpush3.bf16.msra.mxu0 %v6014_v44  ;;  %5254 = vmatprep.subr.bf16.mxu1 %v6015_v46  ;;  %v6037_v44 = vld [vmem:[%s7118_s1 + $0x218] sm:$0xff]  }
  0xe5   : > { %5542 = vmatprep.subr.bf16.mxu0 %v6016_v47 }
  0xe6   : > { %5247 = vmatmul.mubr.bf16.vlgmr.msra.gmra.mrb[0].mxu1 %v1092_v50  ;;  %v6039_v50 = vld [vmem:[%s7118_s1 + $0x220] sm:$0xff]  }
  0xe7   : > { %5255 = vmatpush3.bf16.msra.mxu1 %v6015_v46  ;;  %5535 = vmatmul.mubr.bf16.vlgmr.msra.gmra.mrb[0].mxu0 %v2894_v53  ;;  %v1391_v46 = vpack.c.bf16 %v4238_v55, %v4237_v5  ;;  %v6042_v53 = vld [vmem:[%s7118_s1 + $0x528] sm:$0xff]   ;;  %v6063_v5 = vld [vmem:[%s7118_s1 + $0x280] sm:$0xff]  }
  0xe8   : > { %5543 = vmatpush3.bf16.msra.mxu0 %v6016_v47  ;;  %5256 = vmatprep.subr.bf16.mxu1 %v6017_v54  ;;  %v6834_v47 = vpack.c.bf16 %v4622_v42, %v4621_v37  ;;  %v6064_v55 = vld [vmem:[%s7118_s1 + $0x580] sm:$0xff]   ;;  %v3345_v37 = vpack.c.bf16 %v6719_v60, %v6695_v29 }
  0xe9   : > { %5544 = vmatprep.subr.bf16.mxu0 %v6018_v56  ;;  %5250 = vmatprep.mubr.bf16.mxu1 %v1093_v58  ;;  %v6045_v58 = vld [vmem:[%s7118_s1 + $0x238] sm:$0xff]   ;;  %v4657_v42 = vld [vmem:[%s6183_s14 + $0x81] sm:$0xff] }
  0xea   : > { %5538 = vmatprep.mubr.bf16.mxu0 %v6716_v59 }
  0xeb   : > { %5257 = vmatpush3.bf16.msra.mxu1 %v6017_v54  ;;  %v6043_v54 = vld [vmem:[%s7118_s1 + $0x230] sm:$0xff]  }
  0xec   : > { %5545 = vmatpush3.bf16.msra.mxu0 %v6018_v56  ;;  %5258 = vmatprep.subr.bf16.mxu1 %v6019_v38  ;;  %v6044_v56 = vld [vmem:[%s7118_s1 + $0x530] sm:$0xff]  }
  0xed   : > { %5546 = vmatprep.subr.bf16.mxu0 %v6020_v62 }
  0xee   : > { %5251 = vmatmul.mubr.bf16.gmra.mrb[4].mxu1 %v1094_v31  ;;  %v4623_v31 = vld [vmem:[%s6183_s14 + $0x60] sm:$0xff] }
  0xef   : > { %5259 = vmatpush3.bf16.msra.mxu1 %v6019_v38  ;;  %5539 = vmatmul.mubr.bf16.gmra.mrb[4].mxu0 %v2896_v0  ;;  %v6046_v38 = vld [vmem:[%s7118_s1 + $0x538] sm:$0xff]   ;;  %v6870_v0 = vld [vmem:[%s6183_s14 + $0x63] sm:$0xff]  ;;  %v6872_v63 = vpack.c.bf16 %v4624_v40, %v4623_v31 }
  0xf0   : > { %5547 = vmatpush3.bf16.msra.mxu0 %v6020_v62  ;;  %5260 = vmatprep.subr.bf16.mxu1 %v6021_v48  ;;  %v6047_v62 = vld [vmem:[%s7118_s1 + $0x240] sm:$0xff]   ;;  %v6070_v31 = vld [vmem:[%s7118_s1 + $0x598] sm:$0xff]  }
  0xf1   : > { %5548 = vmatprep.subr.bf16.mxu0 %v6022_v1  ;;  %5270 = vmatprep.mubr.bf16.mxu1 %v1241_v52  ;;  %v6050_v52 = vld [vmem:[%s7118_s1 + $0x548] sm:$0xff]  }
  0xf2   : > { %5558 = vmatprep.mubr.bf16.mxu0 %v6748_v14 }
  0xf3   : > { %5261 = vmatpush3.bf16.msra.mxu1 %v6021_v48  ;;  %v4626_v48 = vld [vmem:[%s6183_s14 + $0x90] sm:$0xff] }
  0xf4   : > { %5549 = vmatpush3.bf16.msra.mxu0 %v6022_v1  ;;  %5262 = vmatprep.subr.bf16.mxu1 %v6023_v4  ;;  %v6049_v1 = vld [vmem:[%s7118_s1 + $0x248] sm:$0xff]  }
  0xf5   : > { %5550 = vmatprep.subr.bf16.mxu0 %v6024_v17 }
  0xf7   : > { %5263 = vmatpush3.bf16.msra.mxu1 %v6023_v4  ;;  %v1393_v4 = vpack.c.bf16 %v6870_v0, %v6686_v20  ;;  %v6052_v20 = vld [vmem:[%s7118_s1 + $0x550] sm:$0xff]  }
  0xf8   : > { %5551 = vmatpush3.bf16.msra.mxu0 %v6024_v17  ;;  %5264 = vmatprep.subr.bf16.mxu1 %v6025_v7  ;;  %v6885_v17 = vpack.c.bf16 %v4626_v48, %v4625_v3  ;;  %v6071_v3 = vld [vmem:[%s7118_s1 + $0x2a0] sm:$0xff]  }
  0xf9   : > { %5552 = vmatprep.subr.bf16.mxu0 %v6026_v10  ;;  %v6072_v48 = vld [vmem:[%s7118_s1 + $0x5a0] sm:$0xff]  }
  0xfb   : > { %5265 = vmatpush3.bf16.msra.mxu1 %v6025_v7  ;;  %v6051_v7 = vld [vmem:[%s7118_s1 + $0x250] sm:$0xff]  }
  0xfc   : > { %5553 = vmatpush3.bf16.msra.mxu0 %v6026_v10  ;;  %5266 = vmatprep.subr.bf16.mxu1 %v6027_v12  ;;  %v4627_v10 = vld [vmem:[%s6183_s14 + $0xa0] sm:$0xff] }
  0xfd   : > { %5554 = vmatprep.subr.bf16.mxu0 %v6028_v13 }
  0xff   : > { %5267 = vmatpush3.bf16.msra.mxu1 %v6027_v12  ;;  %v4628_v12 = vld [vmem:[%s6183_s14 + $0xb0] sm:$0xff] }
 0x100   : > { %5555 = vmatpush3.bf16.msra.mxu0 %v6028_v13  ;;  %5268 = vmatprep.subr.bf16.mxu1 %v6029_v15  ;;  %v4270_v13 = vld [vmem:[%s6183_s14 + $0x24] sm:$0xff] }
 0x101   : > { %5556 = vmatprep.subr.bf16.mxu0 %v6030_v39 }
 0x103   : > { %5269 = vmatpush3.bf16.msra.mxu1 %v6029_v15  ;;  %v3197_v15 = vpack.c.bf16 %v4628_v12, %v4627_v10  ;;  %v6078_v10 = vld [vmem:[%s7118_s1 + $0x5b8] sm:$0xff]   ;;  %v6079_v12 = vld [vmem:[%s7118_s1 + $0x2c0] sm:$0xff]  }
 0x104   : > { %5557 = vmatpush3.bf16.msra.mxu0 %v6030_v39  ;;  %5278 = vmatprep.subr.bf16.mxu1 %v6031_v2  ;;  %v6053_v39 = vld [vmem:[%s7118_s1 + $0x258] sm:$0xff]  }
 0x105   : > { %5566 = vmatprep.subr.bf16.mxu0 %v6032_v21 }
 0x106   : > { %5271 = vmatmul.mubr.bf16.vlgmr.msra.gmra.mrb[0].mxu1 %v6575_v43  ;;  %v6036_v43 = vld [vmem:[%s7118_s1 + $0x510] sm:$0xff]  }
 0x107   : > { %5279 = vmatpush3.bf16.msra.mxu1 %v6031_v2  ;;  %5559 = vmatmul.mubr.bf16.vlgmr.msra.gmra.mrb[0].mxu0 %v3044_v25  ;;  %v6054_v2 = vld [vmem:[%s7118_s1 + $0x558] sm:$0xff]   ;;  %v6055_v25 = vld [vmem:[%s7118_s1 + $0x260] sm:$0xff]  }
 0x108   : > { %5567 = vmatpush3.bf16.msra.mxu0 %v6032_v21  ;;  %5280 = vmatprep.subr.bf16.mxu1 %v6033_v28 }
 0x109   : > { %5568 = vmatprep.subr.bf16.mxu0 %v6034_v32  ;;  %5274 = vmatprep.mubr.bf16.mxu1 %v1243_v9  ;;  %v6060_v9 = vld [vmem:[%s7118_s1 + $0x570] sm:$0xff]  }
 0x10a   : > { %5562 = vmatprep.mubr.bf16.mxu0 %v6806_v16 }
 0x10b   : > { %5281 = vmatpush3.bf16.msra.mxu1 %v6033_v28  ;;  %v6056_v28 = vld [vmem:[%s7118_s1 + $0x560] sm:$0xff]  }
 0x10c   : > { %5569 = vmatpush3.bf16.msra.mxu0 %v6034_v32  ;;  %5282 = vmatprep.subr.bf16.mxu1 %v6035_v34  ;;  %v6059_v32 = vld [vmem:[%s7118_s1 + $0x270] sm:$0xff]  }
 0x10d   : > { %5570 = vmatprep.subr.bf16.mxu0 %v6036_v43 }
 0x10e   : > { %5275 = vmatmul.mubr.bf16.gmra.mrb[4].mxu1 %v6631_v6  ;;  %v6041_v6 = vld [vmem:[%s7118_s1 + $0x228] sm:$0xff]  }
 0x10f   : > { %5283 = vmatpush3.bf16.msra.mxu1 %v6035_v34  ;;  %5563 = vmatmul.mubr.bf16.gmra.mrb[4].mxu0 %v3046_v18  ;;  %v6061_v34 = vld [vmem:[%s7118_s1 + $0x278] sm:$0xff]   ;;  %v6939_v18 = vld [vmem:[%s6183_s14 + $0x64] sm:$0xff] }
 0x110   : > { %5571 = vmatpush3.bf16.msra.mxu0 %v6036_v43  ;;  %5284 = vmatprep.subr.bf16.mxu1 %v6037_v44  ;;  %v6062_v43 = vld [vmem:[%s7118_s1 + $0x578] sm:$0xff]   ;;  %v1543_v29 = vpack.c.bf16 %v6939_v18, %v6779_v19  ;;  %v6068_v19 = vld [vmem:[%s7118_s1 + $0x590] sm:$0xff]  }
 0x111   : > { %5572 = vmatprep.subr.bf16.mxu0 %v6038_v45  ;;  %5294 = vmatprep.mubr.bf16.mxu1 %v1391_v46  ;;  %v6066_v46 = vld [vmem:[%s7118_s1 + $0x588] sm:$0xff]  }
 0x112   : > { %5582 = vmatprep.mubr.bf16.mxu0 %v6834_v47 }
 0x113   : > { %5285 = vmatpush3.bf16.msra.mxu1 %v6037_v44  ;;  %v4658_v44 = vld [vmem:[%s6183_s14 + $0x91] sm:$0xff] }
 0x114   : > { %5573 = vmatpush3.bf16.msra.mxu0 %v6038_v45  ;;  %5286 = vmatprep.subr.bf16.mxu1 %v6039_v50  ;;  %v6065_v45 = vld [vmem:[%s7118_s1 + $0x288] sm:$0xff]  }
 0x115   : > { %5574 = vmatprep.subr.bf16.mxu0 %v6040_v51 }
 0x117   : > { %5287 = vmatpush3.bf16.msra.mxu1 %v6039_v50  ;;  %v6954_v50 = vpack.c.bf16 %v4658_v44, %v4657_v42  ;;  %v6091_v42 = vld [vmem:[%s7118_s1 + $0x2f0] sm:$0xff]  }
 0x118   : > { %5575 = vmatpush3.bf16.msra.mxu0 %v6040_v51  ;;  %5288 = vmatprep.subr.bf16.mxu1 %v6041_v6  ;;  %v6067_v51 = vld [vmem:[%s7118_s1 + $0x290] sm:$0xff]  }
 0x119   : > { %5576 = vmatprep.subr.bf16.mxu0 %v6042_v53  ;;  %v6092_v44 = vld [vmem:[%s7118_s1 + $0x5f0] sm:$0xff]  }
 0x11b   : > { %5289 = vmatpush3.bf16.msra.mxu1 %v6041_v6  ;;  %v4659_v6 = vld [vmem:[%s6183_s14 + $0xa1] sm:$0xff] }
 0x11c   : > { %5577 = vmatpush3.bf16.msra.mxu0 %v6042_v53  ;;  %5290 = vmatprep.subr.bf16.mxu1 %v6043_v54  ;;  %v4660_v53 = vld [vmem:[%s6183_s14 + $0xb1] sm:$0xff] }
 0x11d   : > { %5578 = vmatprep.subr.bf16.mxu0 %v6044_v56 }
 0x11f   : > { %5291 = vmatpush3.bf16.msra.mxu1 %v6043_v54  ;;  %v4302_v54 = vld [vmem:[%s6183_s14 + $0x30] sm:$0xff] }
 0x120   : > { %5579 = vmatpush3.bf16.msra.mxu0 %v6044_v56  ;;  %5292 = vmatprep.subr.bf16.mxu1 %v6045_v58  ;;  %v3347_v56 = vpack.c.bf16 %v4660_v53, %v4659_v6  ;;  %v4337_v53 = vld [vmem:[%s6183_s14 + $0x61] sm:$0xff] }
 0x121   : > { %5580 = vmatprep.subr.bf16.mxu0 %v6046_v38 }
 0x123   : > { %5293 = vmatpush3.bf16.msra.mxu1 %v6045_v58  ;;  %v4685_v58 = vld [vmem:[%s6183_s14 + $0x42] sm:$0xff] }
 0x124   : > { %5581 = vmatpush3.bf16.msra.mxu0 %v6046_v38  ;;  %5302 = vmatprep.subr.bf16.mxu1 %v6047_v62  ;;  %v4686_v38 = vld [vmem:[%s6183_s14 + $0x52] sm:$0xff] }
 0x125   : > { %5590 = vmatprep.subr.bf16.mxu0 %v6048_v57 }
 0x126   : > { %5295 = vmatmul.mubr.bf16.vlgmr.msra.gmra.mrb[0].mxu1 %v6651_v26  ;;  %v4269_v26 = vld [vmem:[%s6183_s14 + $0x14] sm:$0xff] }
 0x127   : > { %5303 = vmatpush3.bf16.msra.mxu1 %v6047_v62  ;;  %5583 = vmatmul.mubr.bf16.vlgmr.msra.gmra.mrb[0].mxu0 %v6872_v63  ;;  %v1541_v21 = vpack.c.bf16 %v4270_v13, %v4269_v26  ;;  %v6069_v62 = vld [vmem:[%s7118_s1 + $0x298] sm:$0xff]   ;;  %v3495_v26 = vpack.c.bf16 %v6615_v8, %v6785_v22  ;;  %v4689_v13 = vld [vmem:[%s6183_s14 + $0x82] sm:$0xff]  ;;  %v6083_v8 = vld [vmem:[%s7118_s1 + $0x2d0] sm:$0xff]  }
 0x128   : > { %5591 = vmatpush3.bf16.msra.mxu0 %v6048_v57  ;;  %5304 = vmatprep.subr.bf16.mxu1 %v6049_v1  ;;  %v3494_v57 = vpack.c.bf16 %v4686_v38, %v4685_v58  ;;  %v4691_v22 = vld [vmem:[%s6183_s14 + $0xa2] sm:$0xff]  ;;  %v4750_v58 = vld [vmem:[%s6183_s14 + $0x54] sm:$0xff]  ;;  %v3796_v38 = vpack.c.bf16 %v6812_v36, %v6793_v27 }
 0x129   : > { %5592 = vmatprep.subr.bf16.mxu0 %v6050_v52  ;;  %5298 = vmatprep.mubr.bf16.mxu1 %v1393_v4  ;;  %v6076_v4 = vld [vmem:[%s7118_s1 + $0x5b0] sm:$0xff]   ;;  %v6102_v36 = vld [vmem:[%s7118_s1 + $0x638] sm:$0xff]  }
 0x12a   : > { %5586 = vmatprep.mubr.bf16.mxu0 %v6885_v17  ;;  %v6101_v27 = vld [vmem:[%s7118_s1 + $0x630] sm:$0xff]  }
 0x12b   : > { %5305 = vmatpush3.bf16.msra.mxu1 %v6049_v1  ;;  %v6074_v1 = vld [vmem:[%s7118_s1 + $0x5a8] sm:$0xff]  }
 0x12c   : > { %5593 = vmatpush3.bf16.msra.mxu0 %v6050_v52  ;;  %5306 = vmatprep.subr.bf16.mxu1 %v6051_v7  ;;  %v6075_v52 = vld [vmem:[%s7118_s1 + $0x2b0] sm:$0xff]  }
 0x12d   : > { %5594 = vmatprep.subr.bf16.mxu0 %v6052_v20 }
 0x12e   : > { %5299 = vmatmul.mubr.bf16.gmra.mrb[4].mxu1 %v6716_v59  ;;  %v6058_v59 = vld [vmem:[%s7118_s1 + $0x568] sm:$0xff]  }
 0x12f   : > { %5307 = vmatpush3.bf16.msra.mxu1 %v6051_v7  ;;  %5587 = vmatmul.mubr.bf16.gmra.mrb[4].mxu0 %v3197_v15  ;;  %v6077_v7 = vld [vmem:[%s7118_s1 + $0x2b8] sm:$0xff]  }
 0x130   : > { %5595 = vmatpush3.bf16.msra.mxu0 %v6052_v20  ;;  %5308 = vmatprep.subr.bf16.mxu1 %v6053_v39  ;;  %v6080_v20 = vld [vmem:[%s7118_s1 + $0x5c0] sm:$0xff]   ;;  %v4690_v15 = vld [vmem:[%s6183_s14 + $0x92] sm:$0xff] }
 0x131   : > { %5596 = vmatprep.subr.bf16.mxu0 %v6054_v2  ;;  %5318 = vmatprep.mubr.bf16.mxu1 %v1541_v21  ;;  %v3496_v21 = vpack.c.bf16 %v4690_v15, %v4689_v13 }
 0x132   : > { %5606 = vmatprep.mubr.bf16.mxu0 %v3344_v23  ;;  %v4692_v23 = vld [vmem:[%s6183_s14 + $0xb2] sm:$0xff] }
 0x133   : > { %5309 = vmatpush3.bf16.msra.mxu1 %v6053_v39  ;;  %v6081_v39 = vld [vmem:[%s7118_s1 + $0x2c8] sm:$0xff]  }
 0x134   : > { %5597 = vmatpush3.bf16.msra.mxu0 %v6054_v2  ;;  %5310 = vmatprep.subr.bf16.mxu1 %v6055_v25  ;;  %v6082_v2 = vld [vmem:[%s7118_s1 + $0x5c8] sm:$0xff]  }
 0x135   : > { %5598 = vmatprep.subr.bf16.mxu0 %v6056_v28 }
 0x137   : > { %5311 = vmatpush3.bf16.msra.mxu1 %v6055_v25  ;;  %v6084_v25 = vld [vmem:[%s7118_s1 + $0x5d0] sm:$0xff]  }
 0x138   : > { %5599 = vmatpush3.bf16.msra.mxu0 %v6056_v28  ;;  %5312 = vmatprep.subr.bf16.mxu1 %v6057_v11  ;;  %v4334_v28 = vld [vmem:[%s6183_s14 + $0x31] sm:$0xff] }
 0x139   : > { %5600 = vmatprep.subr.bf16.mxu0 %v6058_v59 }
 0x13b   : > { %5313 = vmatpush3.bf16.msra.mxu1 %v6057_v11  ;;  %v3497_v11 = vpack.c.bf16 %v4692_v23, %v4691_v22  ;;  %v4782_v23 = vld [vmem:[%s7120_s3] ss:$0 sm:$0xff] }
 0x13c   : > { %5601 = vmatpush3.bf16.msra.mxu0 %v6058_v59  ;;  %5314 = vmatprep.subr.bf16.mxu1 %v6059_v32  ;;  %v4717_v59 = vld [vmem:[%s6183_s14 + $0x43] sm:$0xff] }
 0x13d   : > { %5602 = vmatprep.subr.bf16.mxu0 %v6060_v9 }
 0x13f   : > { %5315 = vmatpush3.bf16.msra.mxu1 %v6059_v32  ;;  %v4718_v32 = vld [vmem:[%s6183_s14 + $0x53] sm:$0xff] }
 0x140   : > { %5603 = vmatpush3.bf16.msra.mxu0 %v6060_v9  ;;  %5316 = vmatprep.subr.bf16.mxu1 %v6061_v34  ;;  %v6085_v9 = vld [vmem:[%s7118_s1 + $0x2d8] sm:$0xff]  }
 0x141   : > { %5604 = vmatprep.subr.bf16.mxu0 %v6062_v43 }
 0x143   : > { %5317 = vmatpush3.bf16.msra.mxu1 %v6061_v34  ;;  %v6086_v34 = vld [vmem:[%s7118_s1 + $0x5d8] sm:$0xff]  }
 0x144   : > { %5605 = vmatpush3.bf16.msra.mxu0 %v6062_v43  ;;  %5326 = vmatprep.subr.bf16.mxu1 %v6063_v5 }
 0x145   : > { %5614 = vmatprep.subr.bf16.mxu0 %v6064_v55 }
 0x146   : > { %5319 = vmatmul.mubr.bf16.vlgmr.msra.gmra.mrb[0].mxu1 %v6748_v14  ;;  %v4301_v14 = vld [vmem:[%s6183_s14 + $0x20] sm:$0xff] }
 0x147   : > { %5327 = vmatpush3.bf16.msra.mxu1 %v6063_v5  ;;  %5607 = vmatmul.mubr.bf16.vlgmr.msra.gmra.mrb[0].mxu0 %v3345_v37  ;;  %v1692_v40 = vpack.c.bf16 %v4302_v54, %v4301_v14  ;;  %v6087_v5 = vld [vmem:[%s7118_s1 + $0x2e0] sm:$0xff]   ;;  %v6090_v37 = vld [vmem:[%s7118_s1 + $0x5e8] sm:$0xff]   ;;  %v1844_v54 = vpack.c.bf16 %v6719_v60, %v4337_v53 }
 0x148   : > { %5615 = vmatpush3.bf16.msra.mxu0 %v6064_v55  ;;  %5328 = vmatprep.subr.bf16.mxu1 %v6065_v45  ;;  %v6088_v55 = vld [vmem:[%s7118_s1 + $0x5e0] sm:$0xff]   ;;  %v6096_v14 = vld [vmem:[%s7118_s1 + $0x608] sm:$0xff]  }
 0x149   : > { %5616 = vmatprep.subr.bf16.mxu0 %v6066_v46  ;;  %5322 = vmatprep.mubr.bf16.mxu1 %v1543_v29  ;;  %v4335_v29 = vld [vmem:[%s6183_s14 + $0x41] sm:$0xff] }
 0x14a   : > { %5610 = vmatprep.mubr.bf16.mxu0 %v6954_v50  ;;  %v1843_v6 = vpack.c.bf16 %v6692_v24, %v4335_v29  ;;  %v3646_v24 = vpack.c.bf16 %v6725_v61, %v6701_v49  ;;  %v6098_v49 = vld [vmem:[%s7118_s1 + $0x618] sm:$0xff]  }
 0x14b   : > { %5329 = vmatpush3.bf16.msra.mxu1 %v6065_v45  ;;  %v6093_v45 = vld [vmem:[%s7118_s1 + $0x2f8] sm:$0xff]  }
 0x14c   : > { %5617 = vmatpush3.bf16.msra.mxu0 %v6066_v46  ;;  %5330 = vmatprep.subr.bf16.mxu1 %v6067_v51  ;;  %v6094_v46 = vld [vmem:[%s7118_s1 + $0x5f8] sm:$0xff]  }
 0x14d   : > { %5618 = vmatprep.subr.bf16.mxu0 %v6068_v19 }
 0x14e   : > { %5323 = vmatmul.mubr.bf16.gmra.mrb[4].mxu1 %v6806_v16  ;;  %v6073_v16 = vld [vmem:[%s7118_s1 + $0x2a8] sm:$0xff]  }
 0x14f   : > { %5331 = vmatpush3.bf16.msra.mxu1 %v6067_v51  ;;  %5611 = vmatmul.mubr.bf16.gmra.mrb[4].mxu0 %v3347_v56  ;;  %v6095_v51 = vld [vmem:[%s7118_s1 + $0x600] sm:$0xff]  }
 0x150   : > { %5619 = vmatpush3.bf16.msra.mxu0 %v6068_v19  ;;  %5332 = vmatprep.subr.bf16.mxu1 %v6069_v62  ;;  %v3645_v19 = vpack.c.bf16 %v6698_v35, %v6870_v0  ;;  %v4724_v35 = vld [vmem:[%s6183_s14 + $0xb3] sm:$0xff]  ;;  %v4749_v56 = vld [vmem:[%s6183_s14 + $0x44] sm:$0xff] }
 0x151   : > { %5620 = vmatprep.subr.bf16.mxu0 %v6070_v31  ;;  %5342 = vmatprep.mubr.bf16.mxu1 %v1692_v40  ;;  %v6097_v0 = vld [vmem:[%s7118_s1 + $0x610] sm:$0xff]   ;;  %v3647_v60 = vpack.c.bf16 %v4724_v35, %v6728_v41  ;;  %v3794_v61 = vpack.c.bf16 %v4750_v58, %v4749_v56  ;;  %v6099_v41 = vld [vmem:[%s7118_s1 + $0x620] sm:$0xff]   ;;  %v3795_v40 = vpack.c.bf16 %v6790_v30, %v6939_v18 }
 0x152   : > { %5630 = vmatprep.mubr.bf16.mxu0 %v3494_v57  ;;  %v4781_v18 = vld [vmem:[%s7119_s2] ss:$0 sm:$0xff] }
 0x153   : > { %5333 = vmatpush3.bf16.msra.mxu1 %v6069_v62  ;;  %v4756_v62 = vld [vmem:[%s6183_s14 + $0xb4] sm:$0xff] }
 0x154   : > { %5621 = vmatpush3.bf16.msra.mxu0 %v6070_v31  ;;  %5334 = vmatprep.subr.bf16.mxu1 %v6071_v3  ;;  %v3797_v31 = vpack.c.bf16 %v4756_v62, %v6815_v33 }
 0x155   : > { %5622 = vmatprep.subr.bf16.mxu0 %v6072_v48 }
 0x157   : > { %5335 = vmatpush3.bf16.msra.mxu1 %v6071_v3 }
 0x158   : > { %5623 = vmatpush3.bf16.msra.mxu0 %v6072_v48  ;;  %5336 = vmatprep.subr.bf16.mxu1 %v6073_v16 }
 0x159   : > { %5624 = vmatprep.subr.bf16.mxu0 %v6074_v1 }
 0x15b   : > { %5337 = vmatpush3.bf16.msra.mxu1 %v6073_v16 }
 0x15c   : > { %5625 = vmatpush3.bf16.msra.mxu0 %v6074_v1  ;;  %5338 = vmatprep.subr.bf16.mxu1 %v6075_v52 }
 0x15d   : > { %5626 = vmatprep.subr.bf16.mxu0 %v6076_v4 }
 0x15f   : > { %5339 = vmatpush3.bf16.msra.mxu1 %v6075_v52 }
 0x160   : > { %5627 = vmatpush3.bf16.msra.mxu0 %v6076_v4  ;;  %5340 = vmatprep.subr.bf16.mxu1 %v6077_v7 }
 0x161   : > { %5628 = vmatprep.subr.bf16.mxu0 %v6078_v10 }
 0x163   : > { %5341 = vmatpush3.bf16.msra.mxu1 %v6077_v7 }
 0x164   : > { %5629 = vmatpush3.bf16.msra.mxu0 %v6078_v10  ;;  %5350 = vmatprep.subr.bf16.mxu1 %v6079_v12 }
 0x165   : > { %5638 = vmatprep.subr.bf16.mxu0 %v6080_v20 }
 0x166   : > { %5343 = vmatmul.mubr.bf16.vlgmr.msra.gmra.mrb[0].mxu1 %v6834_v47  ;;  %v4333_v47 = vld [vmem:[%s6183_s14 + $0x21] sm:$0xff] }
 0x167   : > { %5351 = vmatpush3.bf16.msra.mxu1 %v6079_v12  ;;  %5631 = vmatmul.mubr.bf16.vlgmr.msra.gmra.mrb[0].mxu0 %v3495_v26  ;;  %v1842_v43 = vpack.c.bf16 %v4334_v28, %v4333_v47 }
 0x168   : > { %5639 = vmatpush3.bf16.msra.mxu0 %v6080_v20  ;;  %5352 = vmatprep.subr.bf16.mxu1 %v6081_v39 }
 0x169   : > { %5640 = vmatprep.subr.bf16.mxu0 %v6082_v2  ;;  %5346 = vmatprep.mubr.bf16.mxu1 %v6872_v63  ;;  %v3644_v63 = vpack.c.bf16 %v4718_v32, %v4717_v59 }
 0x16a   : > { %5634 = vmatprep.mubr.bf16.mxu0 %v3496_v21 }
 0x16b   : > { %5353 = vmatpush3.bf16.msra.mxu1 %v6081_v39 }
 0x16c   : > { %5641 = vmatpush3.bf16.msra.mxu0 %v6082_v2  ;;  %5354 = vmatprep.subr.bf16.mxu1 %v6083_v8 }
 0x16d   : > { %5642 = vmatprep.subr.bf16.mxu0 %v6084_v25 }
 0x16e   : > { %5347 = vmatmul.mubr.bf16.gmra.mrb[4].mxu1 %v6885_v17  ;;  %v6089_v17 = vld [vmem:[%s7118_s1 + $0x2e8] sm:$0xff]  }
 0x16f   : > { %5355 = vmatpush3.bf16.msra.mxu1 %v6083_v8  ;;  %5635 = vmatmul.mubr.bf16.gmra.mrb[4].mxu0 %v3497_v11 }
 0x170   : > { %5643 = vmatpush3.bf16.msra.mxu0 %v6084_v25  ;;  %5356 = vmatprep.subr.bf16.mxu1 %v6085_v9 }
 0x171   : > { %5644 = vmatprep.subr.bf16.mxu0 %v6086_v34  ;;  %5366 = vmatprep.mubr.bf16.mxu1 %v1842_v43 }
 0x172   : > { %5654 = vmatprep.mubr.bf16.mxu0 %v3644_v63 }
 0x173   : > { %5357 = vmatpush3.bf16.msra.mxu1 %v6085_v9 }
 0x174   : > { %5645 = vmatpush3.bf16.msra.mxu0 %v6086_v34  ;;  %5358 = vmatprep.subr.bf16.mxu1 %v6087_v5 }
 0x175   : > { %5646 = vmatprep.subr.bf16.mxu0 %v6088_v55 }
 0x177   : > { %5359 = vmatpush3.bf16.msra.mxu1 %v6087_v5 }
 0x178   : > { %5647 = vmatpush3.bf16.msra.mxu0 %v6088_v55  ;;  %5360 = vmatprep.subr.bf16.mxu1 %v6089_v17 }
 0x179   : > { %5648 = vmatprep.subr.bf16.mxu0 %v6090_v37 }
 0x17b   : > { %5361 = vmatpush3.bf16.msra.mxu1 %v6089_v17 }
 0x17c   : > { %5649 = vmatpush3.bf16.msra.mxu0 %v6090_v37  ;;  %5362 = vmatprep.subr.bf16.mxu1 %v6091_v42 }
 0x17d   : > { %5650 = vmatprep.subr.bf16.mxu0 %v6092_v44 }
 0x17f   : > { %5363 = vmatpush3.bf16.msra.mxu1 %v6091_v42 }
 0x180   : > { %5651 = vmatpush3.bf16.msra.mxu0 %v6092_v44  ;;  %5364 = vmatprep.subr.bf16.mxu1 %v6093_v45 }
 0x181   : > { %5652 = vmatprep.subr.bf16.mxu0 %v6094_v46 }
 0x183   : > { %5365 = vmatpush3.bf16.msra.mxu1 %v6093_v45 }
 0x184   : > { %5653 = vmatpush3.bf16.msra.mxu0 %v6094_v46  ;;  %5686 = vmatprep.subr.bf16.mxu1 %v6095_v51 }
 0x185   : > { %5662 = vmatprep.subr.bf16.mxu0 %v6095_v51 }
 0x186   : > { %5367 = vmatmul.mubr.bf16.vlgmr.msra.gmra.mrb[0].mxu1 %v1843_v6 }
 0x187   : > { %5655 = vmatmul.mubr.bf16.vlgmr.msra.gmra.mrb[0].mxu0 %v3645_v19  ;;  %5694 = vmatpush3.bf16.msra.mxu1 %v6095_v51 }
 0x188   : > { %5663 = vmatpush3.bf16.msra.mxu0 %v6095_v51  ;;  %5687 = vmatprep.subr.bf16.mxu1 %v6096_v14 }
 0x189   : > { %5664 = vmatprep.subr.bf16.mxu0 %v6096_v14  ;;  %5370 = vmatprep.mubr.bf16.mxu1 %v1844_v54 }
 0x18a   : > { %5658 = vmatprep.mubr.bf16.mxu0 %v3646_v24 }
 0x18b   : > { %5695 = vmatpush3.bf16.msra.mxu1 %v6096_v14 }
 0x18c   : > { %5665 = vmatpush3.bf16.msra.mxu0 %v6096_v14  ;;  %5688 = vmatprep.subr.bf16.mxu1 %v6097_v0 }
 0x18d   : > { %5666 = vmatprep.subr.bf16.mxu0 %v6097_v0 }
 0x18e   : > { %5371 = vmatmul.mubr.bf16.gmra.mrb[4].mxu1 %v6954_v50  ;;  %v6100_v50 = vld [vmem:[%s7118_s1 + $0x628] sm:$0xff]  }
 0x18f   : > { %5659 = vmatmul.mubr.bf16.gmra.mrb[4].mxu0 %v3647_v60  ;;  %5696 = vmatpush3.bf16.msra.mxu1 %v6097_v0 }
 0x190   : > { %5667 = vmatpush3.bf16.msra.mxu0 %v6097_v0  ;;  %5689 = vmatprep.subr.bf16.mxu1 %v6098_v49 }
 0x191   : > { %5668 = vmatprep.subr.bf16.mxu0 %v6098_v49  ;;  %5678 = vmatprep.mubr.bf16.mxu0 %v3794_v61 }
 0x192   : > { %5682 = vmatprep.mubr.bf16.mxu1 %v3796_v38 }
 0x193   : > { %5697 = vmatpush3.bf16.msra.mxu1 %v6098_v49 }
 0x194   : > { %5669 = vmatpush3.bf16.msra.mxu0 %v6098_v49  ;;  %5690 = vmatprep.subr.bf16.mxu1 %v6099_v41 }
 0x195   : > { %5670 = vmatprep.subr.bf16.mxu0 %v6099_v41 }
 0x197   : > { %5698 = vmatpush3.bf16.msra.mxu1 %v6099_v41 }
 0x198   : > { %5671 = vmatpush3.bf16.msra.mxu0 %v6099_v41  ;;  %5691 = vmatprep.subr.bf16.mxu1 %v6100_v50 }
 0x199   : > { %5672 = vmatprep.subr.bf16.mxu0 %v6100_v50 }
 0x19b   : > { %5699 = vmatpush3.bf16.msra.mxu1 %v6100_v50 }
 0x19c   : > { %5673 = vmatpush3.bf16.msra.mxu0 %v6100_v50  ;;  %5692 = vmatprep.subr.bf16.mxu1 %v6101_v27 }
 0x19d   : > { %5674 = vmatprep.subr.bf16.mxu0 %v6101_v27 }
 0x19f   : > { %5700 = vmatpush3.bf16.msra.mxu1 %v6101_v27 }
 0x1a0   : > { %5675 = vmatpush3.bf16.msra.mxu0 %v6101_v27  ;;  %5693 = vmatprep.subr.bf16.mxu1 %v6102_v36 }
 0x1a1   : > { %5676 = vmatprep.subr.bf16.mxu0 %v6102_v36 }
 0x1a3   : > { %5701 = vmatpush3.bf16.msra.mxu1 %v6102_v36 }
 0x1a4   : > { %5677 = vmatpush3.bf16.msra.mxu0 %v6102_v36 }
 0x1a6   : > { %5683 = vmatmul.mubr.bf16.vlgmr.msra.gmra.mrb[8].mxu1 %v3797_v31 }
 0x1a7   : > { %5679 = vmatmul.mubr.bf16.vlgmr.msra.gmra.mrb[0].mxu0 %v3795_v40 }
 0x259   : > { %v5368_v57 = vpop.f32.mrb[0].mxu1 }
 0x25a   : > { %v1945_v3 = vpop.f32.mrb[1].mxu1 }
 0x25b   : > { %v5369_v48 = vpop.f32.mrb[2].mxu1 }
 0x25c   : > { %v1948_v16 = vpop.f32.mrb[3].mxu1 }
 0x261   : > { %v5372_v1 = vpop.f32.mrb[4].mxu1 }
 0x262   : > { %v5660_v52 = vpop.f32.mrb[4].mxu0  ;;  %v1961_v4 = vpop.f32.mrb[5].mxu1 }
 0x263   : > { %v5706_v7 = vadd.f32 %v5660_v52, %v5372_v1  ;;  %v3763_v10 = vpop.f32.mrb[5].mxu0  ;;  %v5373_v12 = vpop.f32.mrb[6].mxu1 }
 0x264   : > { %v5708_v20 = vadd.f32 %v3763_v10, %v1961_v4  ;;  %v5661_v33 = vpop.f32.mrb[6].mxu0  ;;  %v1964_v26 = vpop.f32.mrb[7].mxu1 }
 0x265   : > { %v5710_v13 = vadd.f32 %v5661_v33, %v5373_v12  ;;  %v3766_v15 = vpop.f32.mrb[7].mxu0 }
 0x266   : > { %v5712_v30 = vadd.f32 %v3766_v15, %v1964_v26 }
 0x279   : > { %v5684_v39 = vpop.f32.mrb[8].mxu1 }
 0x27a   : > { %v5680_v2 = vpop.f32.mrb[0].mxu0  ;;  %v5707_v21 = vadd.f32 %v5706_v7, %v5684_v39  ;;  %v3913_v8 = vpop.f32.mrb[9].mxu1 }
 0x27b   : > { %v5702_v22 = vadd.f32 %v5680_v2, %v5368_v57  ;;  %v3897_v25 = vpop.f32.mrb[1].mxu0  ;;  %v5709_v47 = vadd.f32 %v5708_v20, %v3913_v8  ;;  %v5685_v28 = vpop.f32.mrb[10].mxu1 }
 0x27c   : > { %v3949_v11 = vmul.f32 %v5707_v21, %v4781_v18  ;;  %v5703_v59 = vadd.f32 %v3897_v25, %v1945_v3  ;;  %v5681_v32 = vpop.f32.mrb[2].mxu0  ;;  %v5711_v9 = vadd.f32 %v5710_v13, %v5685_v28  ;;  %v3916_v34 = vpop.f32.mrb[11].mxu1 }
 0x27d   : > { %v3945_v43 = vmul.f32 %v5702_v22, %v4781_v18  ;;  %v3947_v63 = vmul.f32 %v5709_v47, %v4781_v18  ;;  %v5704_v5 = vadd.f32 %v5681_v32, %v5369_v48  ;;  %v3900_v55 = vpop.f32.mrb[3].mxu0  ;;  %v5713_v17 = vadd.f32 %v5712_v30, %v3916_v34 }
 0x27e   : > { %v3964_v37 = vadd.f32 %v4782_v23, %v3949_v11  ;;  %v3943_v42 = vmul.f32 %v5703_v59, %v4781_v18  ;;  %v3950_v44 = vmul.f32 %v5711_v9, %v4781_v18  ;;  %v5705_v45 = vadd.f32 %v3900_v55, %v1948_v16 }
 0x27f   : > { %v3960_v46 = vadd.f32 %v4782_v23, %v3945_v43  ;;  %v3962_v29 = vadd.f32 %v4782_v23, %v3947_v63  ;;  %v3946_v51 = vmul.f32 %v5704_v5, %v4781_v18  ;;  %v3948_v6 = vmul.f32 %v5713_v17, %v4781_v18 }
 0x280   : > { %3972 = vst [vmem:[%s197_s16 + $0x30] sm:$0xff] %v3964_v37  ;;  %v3958_v53 = vadd.f32 %v4782_v23, %v3943_v42  ;;  %v3965_v19 = vadd.f32 %v4782_v23, %v3950_v44  ;;  %v3944_v14 = vmul.f32 %v5705_v45, %v4781_v18 }
 0x281   : > { %3968 = vst [vmem:[%s197_s16 + $0x10] sm:$0xff] %v3960_v46  ;;  %3970 = vst [vmem:[%s197_s16 + $0x20] sm:$0xff] %v3962_v29  ;;  %v3961_v54 = vadd.f32 %v4782_v23, %v3946_v51  ;;  %v3963_v24 = vadd.f32 %v4782_v23, %v3948_v6 }
 0x282   : > { %3966 = vst [vmem:[%s197_s16] sm:$0xff] %v3958_v53  ;;  %3973 = vst [vmem:[%s197_s16 + $0x38] sm:$0xff] %v3965_v19  ;;  %v3959_v35 = vadd.f32 %v4782_v23, %v3944_v14 }
 0x283   : > { %3969 = vst [vmem:[%s197_s16 + $0x18] sm:$0xff] %v3961_v54  ;;  %3971 = vst [vmem:[%s197_s16 + $0x28] sm:$0xff] %v3963_v24 }
 0x284   : > { %3967 = vst [vmem:[%s197_s16 + $0x8] sm:$0xff] %v3959_v35 }
 0x285 PF: > { %s14_s15 = sadd.s32 1, %s6112_s15  }
 0x286   : > { %p11_p4 = scmp.ge.s32.totalorder %s14_s15, 4  }
 0x288   :  { %13 = sbr.rel (!%p11_p4) target bundleno = 1 (0x1), region = 94 }

// kernel: dann_conv2d_forward.5
= control target key start
LH: loop header
LB: loop body
LE: loop exit
PB: predicated region body
PF: predicated region fallthrough
CT: control target
= control target key end

     0   :  { %s5462_s0 = inlined_call_operand.vmem [shape: f32[2,2048], index: 0, kind: input, shape index: {}]   ;;  %s5463_s1 = inlined_call_operand.vmem [shape: f32[2,2048], index: 1, kind: input, shape index: {}]   ;;  %s5464_s2 = inlined_call_operand.vmem [shape: f32[2,2048], index: 2, kind: input, shape index: {}]   ;;  %s5465_s3 = inlined_call_operand.vmem [shape: f32[2,2048], index: 3, kind: input, shape index: {}]   ;;  %s5466_s4 = inlined_call_operand.vmem [shape: bf16[2048,128], index: 4, kind: input, shape index: {}]   ;;  %s5467_s5 = inlined_call_operand.vmem [shape: f32[1,128], index: 5, kind: input, shape index: {}]   ;;  %s5468_s6 = inlined_call_operand.vmem [shape: bf16[128,64], index: 6, kind: input, shape index: {}]   ;;  %s5469_s7 = inlined_call_operand.vmem [shape: f32[1,64], index: 7, kind: input, shape index: {}]   ;;  %s5470_s8 = inlined_call_operand.vmem [shape: bf16[64,32], index: 8, kind: input, shape index: {}]   ;;  %s5471_s9 = inlined_call_operand.vmem [shape: f32[1,32], index: 9, kind: input, shape index: {}]   ;;  %s5472_s10 = inlined_call_operand.vmem [shape: bf16[32,1], index: 10, kind: input, shape index: {}]   ;;  %s5473_s11 = inlined_call_operand.<no memory space> [shape: f32[1,1], index: 11, kind: input, shape index: {}]   ;;  %s5474_s12 = inlined_call_operand.vmem [shape: bf16[2048,128], index: 12, kind: input, shape index: {}]   ;;  %s5475_s13 = inlined_call_operand.vmem [shape: f32[1,128], index: 13, kind: input, shape index: {}]   ;;  %s5476_s14 = inlined_call_operand.vmem [shape: bf16[128,2], index: 14, kind: input, shape index: {}]   ;;  %s5477_s15 = inlined_call_operand.vmem [shape: f32[1,2], index: 15, kind: input, shape index: {}]   ;;  %s5478_s16 = inlined_call_operand.vmem [shape: f32[2,1], index: 16, kind: output, shape index: {0}]   ;;  %s5479_s17 = inlined_call_operand.hbm [shape: f32[2,2], index: 17, kind: output, shape index: {1}]  }
   0x1   :  { %5482 = sst [smem:[#allocation6_spill]] %s5462_s0  ;;  %v23_v0 = vstv %s5473_s11 }
   0x2   :  { %5483 = sst [smem:[#allocation7_spill]] %s5463_s1  ;;  %24 = vst [vmem:[#allocation2] sm:$0x1] %v23_v0 }
   0x3   :  { %v4040_v1 = vld [vmem:[%s5466_s4 + $0x40] sm:$0xff]   ;;  %v4044_v5 = vld [vmem:[%s5466_s4 + $0x48] sm:$0xff]   ;;  %v4048_v9 = vld [vmem:[%s5466_s4 + $0x50] sm:$0xff]   ;;  %v99_v31 = vlaneseq  ;;  %s5484_s28 = sld [smem:[#allocation6_spill]]  ;;  %s5485_s30 = sld [smem:[#allocation7_spill]] }
   0x4   :  { %v4041_v2 = vld [vmem:[%s5466_s4 + $0xc0] sm:$0xff]   ;;  %3598 = vmatprep.subr.bf16.mxu0 %v4040_v1  ;;  %v4045_v6 = vld [vmem:[%s5466_s4 + $0xc8] sm:$0xff]   ;;  %v4049_v10 = vld [vmem:[%s5466_s4 + $0xd0] sm:$0xff]   ;;  %v4346_v39 = vmov 1983009808  }
   0x5   :  { %v4042_v3 = vld [vmem:[%s5466_s4] sm:$0xff]   ;;  %3620 = vmatprep.subr.bf16.mxu1 %v4041_v2  ;;  %v4046_v7 = vld [vmem:[%s5466_s4 + $0x8] sm:$0xff]   ;;  %v4050_v11 = vld [vmem:[%s5466_s4 + $0x10] sm:$0xff]   ;;  %v97_v40 = vunpack.c.l.s4 %v4346_v39  ;;  %v100_v41 = vshrl.u32 %v99_v31, 7 }
   0x6   :  { %v4043_v4 = vld [vmem:[%s5466_s4 + $0x80] sm:$0xff]   ;;  %3599 = vmatpush3.bf16.msra.mxu0 %v4042_v3  ;;  %v4047_v8 = vld [vmem:[%s5466_s4 + $0x88] sm:$0xff]   ;;  %v4051_v12 = vld [vmem:[%s5466_s4 + $0x90] sm:$0xff]  }
   0x7   :  { %3621 = vmatpush3.bf16.msra.mxu1 %v4043_v4  ;;  %3600 = vmatprep.subr.bf16.mxu0 %v4044_v5  ;;  %v4052_v13 = vld [vmem:[%s5466_s4 + $0x58] sm:$0xff]   ;;  %v4056_v17 = vld [vmem:[%s5466_s4 + $0x60] sm:$0xff]   ;;  %v4060_v21 = vld [vmem:[%s5466_s4 + $0x68] sm:$0xff]   ;;  %v98_v44 = vunpack.c.0.s8 %v97_v40 }
   0x8   :  { %3622 = vmatprep.subr.bf16.mxu1 %v4045_v6  ;;  %v4053_v14 = vld [vmem:[%s5466_s4 + $0xd8] sm:$0xff]   ;;  %v4057_v18 = vld [vmem:[%s5466_s4 + $0xe0] sm:$0xff]   ;;  %v4061_v22 = vld [vmem:[%s5466_s4 + $0xe8] sm:$0xff]  }
   0x9   :  { %v4054_v15 = vld [vmem:[%s5466_s4 + $0x18] sm:$0xff]   ;;  %v4058_v19 = vld [vmem:[%s5466_s4 + $0x20] sm:$0xff]   ;;  %v4062_v23 = vld [vmem:[%s5466_s4 + $0x28] sm:$0xff]   ;;  %v4557_v47 = vsub.s32 %v98_v44, %v100_v41 }
   0xa   :  { %3601 = vmatpush3.bf16.msra.mxu0 %v4046_v7  ;;  %v4055_v16 = vld [vmem:[%s5466_s4 + $0x98] sm:$0xff]   ;;  %v4059_v20 = vld [vmem:[%s5466_s4 + $0xa0] sm:$0xff]   ;;  %v4063_v24 = vld [vmem:[%s5466_s4 + $0xa8] sm:$0xff]  }
   0xb   :  { %3623 = vmatpush3.bf16.msra.mxu1 %v4047_v8  ;;  %3602 = vmatprep.subr.bf16.mxu0 %v4048_v9  ;;  %v4064_v25 = vld [vmem:[%s5466_s4 + $0x70] sm:$0xff]   ;;  %v4068_v29 = vld [vmem:[%s5466_s4 + $0x78] sm:$0xff]   ;;  %v59_v34 = vld [vmem:[%s5484_s28] sm:$0xff] }
   0xc   :  { %3624 = vmatprep.subr.bf16.mxu1 %v4049_v10  ;;  %v4065_v26 = vld [vmem:[%s5466_s4 + $0xf0] sm:$0xff]   ;;  %v4069_v30 = vld [vmem:[%s5466_s4 + $0xf8] sm:$0xff]   ;;  %v63_v35 = vld [vmem:[%s5485_s30] sm:$0xff] }
   0xd   :  { %v4066_v27 = vld [vmem:[%s5466_s4 + $0x30] sm:$0xff]   ;;  %v4070_v32 = vld [vmem:[%s5466_s4 + $0x38] sm:$0xff]   ;;  %v71_v36 = vld [vmem:[%s5464_s2] sm:$0xff]  ;;  %v67_v37 = vmax.f32 %v59_v34, %v63_v35 }
   0xe   :  { %3603 = vmatpush3.bf16.msra.mxu0 %v4050_v11  ;;  %v4067_v28 = vld [vmem:[%s5466_s4 + $0xb0] sm:$0xff]   ;;  %v4071_v33 = vld [vmem:[%s5466_s4 + $0xb8] sm:$0xff]   ;;  %v75_v38 = vld [vmem:[%s5465_s3] sm:$0xff] }
   0xf   :  { %3625 = vmatpush3.bf16.msra.mxu1 %v4051_v12  ;;  %3604 = vmatprep.subr.bf16.mxu0 %v4052_v13  ;;  %v79_v42 = vmax.f32 %v71_v36, %v75_v38  ;;  %v4072_v43 = vld [vmem:[%s5466_s4 + $0x140] sm:$0xff]   ;;  %v4076_v59 = vld [vmem:[%s5466_s4 + $0x148] sm:$0xff]   ;;  %v4080_v0 = vld [vmem:[%s5466_s4 + $0x150] sm:$0xff]  }
  0x10   :  { %3626 = vmatprep.subr.bf16.mxu1 %v4053_v14  ;;  %v4073_v45 = vld [vmem:[%s5466_s4 + $0x1c0] sm:$0xff]   ;;  %v4077_v61 = vld [vmem:[%s5466_s4 + $0x1c8] sm:$0xff]   ;;  %v4081_v1 = vld [vmem:[%s5466_s4 + $0x1d0] sm:$0xff]  }
  0x11   :  { %v83_v46 = vmax.f32 %v67_v37, %v79_v42  ;;  %v4074_v54 = vld [vmem:[%s5466_s4 + $0x100] sm:$0xff]   ;;  %v4078_v62 = vld [vmem:[%s5466_s4 + $0x108] sm:$0xff]   ;;  %v4082_v2 = vld [vmem:[%s5466_s4 + $0x110] sm:$0xff]  }
  0x12   :  { %3605 = vmatpush3.bf16.msra.mxu0 %v4054_v15  ;;  %v4075_v57 = vld [vmem:[%s5466_s4 + $0x180] sm:$0xff]   ;;  %v4079_v63 = vld [vmem:[%s5466_s4 + $0x188] sm:$0xff]   ;;  %v4083_v3 = vld [vmem:[%s5466_s4 + $0x190] sm:$0xff]  }
  0x13   :  { %3627 = vmatpush3.bf16.msra.mxu1 %v4055_v16  ;;  %3606 = vmatprep.subr.bf16.mxu0 %v4056_v17  ;;  %v87_v48 = vmax.f32 %v83_v46, 0.0  ;;  %v4084_v4 = vld [vmem:[%s5466_s4 + $0x158] sm:$0xff]   ;;  %v4088_v8 = vld [vmem:[%s5466_s4 + $0x160] sm:$0xff]   ;;  %v4092_v12 = vld [vmem:[%s5466_s4 + $0x168] sm:$0xff]  }
  0x14   :  { %3628 = vmatprep.subr.bf16.mxu1 %v4057_v18  ;;  %v4085_v5 = vld [vmem:[%s5466_s4 + $0x1d8] sm:$0xff]   ;;  %v4089_v9 = vld [vmem:[%s5466_s4 + $0x1e0] sm:$0xff]   ;;  %v4093_v13 = vld [vmem:[%s5466_s4 + $0x1e8] sm:$0xff]  }
  0x15   :  { %v102_v49 = vrot.slane %v87_v48, %v4557_v47  ;;  %v95_v50 = vcombine.high %v87_v48, %v87_v48  ;;  %v4086_v6 = vld [vmem:[%s5466_s4 + $0x118] sm:$0xff]   ;;  %v4090_v10 = vld [vmem:[%s5466_s4 + $0x120] sm:$0xff]   ;;  %v4094_v14 = vld [vmem:[%s5466_s4 + $0x128] sm:$0xff]  }
  0x16   :  { %3607 = vmatpush3.bf16.msra.mxu0 %v4058_v19  ;;  %v4087_v7 = vld [vmem:[%s5466_s4 + $0x198] sm:$0xff]   ;;  %v4091_v11 = vld [vmem:[%s5466_s4 + $0x1a0] sm:$0xff]   ;;  %v4095_v15 = vld [vmem:[%s5466_s4 + $0x1a8] sm:$0xff]  }
  0x17   :  { %3629 = vmatpush3.bf16.msra.mxu1 %v4059_v20  ;;  %3608 = vmatprep.subr.bf16.mxu0 %v4060_v21  ;;  %v110_v51 = vcombine.high %v102_v49, %v102_v49  ;;  %v109_v52 = vrot.slane %v95_v50, %v4557_v47  ;;  %v4561_v53 = vpack.c.bf16 %v102_v49, %v102_v49  ;;  %v4096_v16 = vld [vmem:[%s5466_s4 + $0x170] sm:$0xff]   ;;  %v60_v17 = vld [vmem:[%s5484_s28 + $0x8] sm:$0xff]  ;;  %v4103_v34 = vld [vmem:[%s5466_s4 + $0x1b8] sm:$0xff]  }
  0x18   :  { %3630 = vmatprep.subr.bf16.mxu1 %v4061_v22  ;;  %v64_v18 = vld [vmem:[%s5485_s30 + $0x8] sm:$0xff]  ;;  %v4097_v22 = vld [vmem:[%s5466_s4 + $0x1f0] sm:$0xff]   ;;  %v4105_v37 = vld [vmem:[%s5466_s4 + $0x2c0] sm:$0xff]  }
  0x19   :  { %v4566_v55 = vpack.c.bf16 %v110_v51, %v110_v51  ;;  %v111_v56 = vcombine.high %v109_v52, %v109_v52  ;;  %v4571_v58 = vpack.c.bf16 %v109_v52, %v109_v52  ;;  %v68_v19 = vmax.f32 %v60_v17, %v64_v18  ;;  %v72_v20 = vld [vmem:[%s5464_s2 + $0x8] sm:$0xff]  ;;  %v4106_v39 = vld [vmem:[%s5466_s4 + $0x200] sm:$0xff]   ;;  %v4112_v50 = vld [vmem:[%s5466_s4 + $0x250] sm:$0xff]  }
  0x1a   :  { %3609 = vmatpush3.bf16.msra.mxu0 %v4062_v23  ;;  %v76_v21 = vld [vmem:[%s5465_s3 + $0x8] sm:$0xff]  ;;  %v4107_v42 = vld [vmem:[%s5466_s4 + $0x280] sm:$0xff]   ;;  %v4113_v51 = vld [vmem:[%s5466_s4 + $0x2d0] sm:$0xff]  }
  0x1b   :  { %3631 = vmatpush3.bf16.msra.mxu1 %v4063_v24  ;;  %3610 = vmatprep.subr.bf16.mxu0 %v4064_v25  ;;  %v4577_v60 = vpack.c.bf16 %v111_v56, %v111_v56  ;;  %v80_v23 = vmax.f32 %v72_v20, %v76_v21  ;;  %v4098_v24 = vld [vmem:[%s5466_s4 + $0x130] sm:$0xff]   ;;  %v4100_v25 = vld [vmem:[%s5466_s4 + $0x178] sm:$0xff]   ;;  %v4108_v44 = vld [vmem:[%s5466_s4 + $0x248] sm:$0xff]  }
  0x1c   :  { %3632 = vmatprep.subr.bf16.mxu1 %v4065_v26  ;;  %1258 = vmatprep.mubr.bf16.mxu0 %v4566_v55  ;;  %v4109_v46 = vld [vmem:[%s5466_s4 + $0x2c8] sm:$0xff]   ;;  %v4114_v52 = vld [vmem:[%s5466_s4 + $0x210] sm:$0xff]   ;;  %v4116_v56 = vld [vmem:[%s5466_s4 + $0x258] sm:$0xff]  }
  0x1d   :  { %1298 = vmatprep.mubr.bf16.mxu1 %v4577_v60  ;;  %v84_v26 = vmax.f32 %v68_v19, %v80_v23  ;;  %v4110_v48 = vld [vmem:[%s5466_s4 + $0x208] sm:$0xff]   ;;  %v4131_v17 = vld [vmem:[%s5466_s4 + $0x2b0] sm:$0xff]   ;;  %v4133_v18 = vld [vmem:[%s5466_s4 + $0x2f8] sm:$0xff]  }
  0x1e   :  { %3611 = vmatpush3.bf16.msra.mxu0 %v4066_v27  ;;  %v4099_v27 = vld [vmem:[%s5466_s4 + $0x1b0] sm:$0xff]   ;;  %v4111_v49 = vld [vmem:[%s5466_s4 + $0x288] sm:$0xff]   ;;  %v4134_v20 = vld [vmem:[%s5466_s4 + $0x238] sm:$0xff]  }
  0x1f   :  { %3633 = vmatpush3.bf16.msra.mxu1 %v4067_v28  ;;  %3612 = vmatprep.subr.bf16.mxu0 %v4068_v29  ;;  %v4101_v28 = vld [vmem:[%s5466_s4 + $0x1f8] sm:$0xff]   ;;  %v88_v29 = vmax.f32 %v84_v26, 0.0  ;;  %v4136_v23 = vld [vmem:[%s5466_s4 + $0x340] sm:$0xff]  }
  0x20   :  { %3634 = vmatprep.subr.bf16.mxu1 %v4069_v30  ;;  %v4102_v30 = vld [vmem:[%s5466_s4 + $0x138] sm:$0xff]  }
  0x21   :  { %v119_v31 = vrot.slane %v88_v29, %v4557_v47 }
  0x22   :  { %3613 = vmatpush3.bf16.msra.mxu0 %v4070_v32  ;;  %v112_v32 = vcombine.high %v88_v29, %v88_v29  ;;  %v4138_v29 = vld [vmem:[%s5466_s4 + $0x300] sm:$0xff]  }
  0x23   :  { %3635 = vmatpush3.bf16.msra.mxu1 %v4071_v33  ;;  %3642 = vmatprep.subr.bf16.mxu0 %v4072_v43  ;;  %v4104_v33 = vld [vmem:[%s5466_s4 + $0x240] sm:$0xff]   ;;  %v127_v35 = vcombine.high %v119_v31, %v119_v31  ;;  %v4683_v38 = vpack.c.bf16 %v119_v31, %v119_v31 }
  0x24   :  { %3664 = vmatprep.subr.bf16.mxu1 %v4073_v45  ;;  %v126_v36 = vrot.slane %v112_v32, %v4557_v47  ;;  %v4139_v32 = vld [vmem:[%s5466_s4 + $0x380] sm:$0xff]  }
  0x25   :  { %1259 = vmatmul.mubr.bf16.vlgmr.msra.gmra.mrb[0].mxu0 %v4561_v53  ;;  %v4688_v40 = vpack.c.bf16 %v127_v35, %v127_v35 }
  0x26   :  { %3643 = vmatpush3.bf16.msra.mxu0 %v4074_v54  ;;  %1299 = vmatmul.mubr.bf16.vlgmr.msra.gmra.mrb[0].mxu1 %v4571_v58  ;;  %v128_v41 = vcombine.high %v126_v36, %v126_v36  ;;  %v4693_v43 = vpack.c.bf16 %v126_v36, %v126_v36  ;;  %v4115_v54 = vld [vmem:[%s5466_s4 + $0x290] sm:$0xff]   ;;  %v4141_v36 = vld [vmem:[%s5466_s4 + $0x3c8] sm:$0xff]  }
  0x27   :  { %3644 = vmatprep.subr.bf16.mxu0 %v4076_v59  ;;  %3665 = vmatpush3.bf16.msra.mxu1 %v4075_v57  ;;  %v4117_v57 = vld [vmem:[%s5466_s4 + $0x2d8] sm:$0xff]  }
  0x28   :  { %3666 = vmatprep.subr.bf16.mxu1 %v4077_v61  ;;  %1338 = vmatprep.mubr.bf16.mxu0 %v4688_v40  ;;  %v4699_v45 = vpack.c.bf16 %v128_v41, %v128_v41  ;;  %v4118_v59 = vld [vmem:[%s5466_s4 + $0x218] sm:$0xff]   ;;  %v4144_v41 = vld [vmem:[%s5466_s4 + $0x350] sm:$0xff]  }
  0x29   :  { %v4119_v61 = vld [vmem:[%s5466_s4 + $0x298] sm:$0xff]  }
  0x2a   :  { %3645 = vmatpush3.bf16.msra.mxu0 %v4078_v62  ;;  %1378 = vmatprep.mubr.bf16.mxu1 %v4699_v45  ;;  %v4120_v62 = vld [vmem:[%s5466_s4 + $0x260] sm:$0xff]  }
  0x2b   :  { %3646 = vmatprep.subr.bf16.mxu0 %v4080_v0  ;;  %3667 = vmatpush3.bf16.msra.mxu1 %v4079_v63  ;;  %v4121_v63 = vld [vmem:[%s5466_s4 + $0x2e0] sm:$0xff]  }
  0x2c   :  { %3668 = vmatprep.subr.bf16.mxu1 %v4081_v1  ;;  %v4122_v0 = vld [vmem:[%s5466_s4 + $0x220] sm:$0xff]  }
  0x2d   :  { %v4123_v1 = vld [vmem:[%s5466_s4 + $0x2a0] sm:$0xff]  }
  0x2e   :  { %3647 = vmatpush3.bf16.msra.mxu0 %v4082_v2  ;;  %v4124_v2 = vld [vmem:[%s5466_s4 + $0x268] sm:$0xff]  }
  0x2f   :  { %3648 = vmatprep.subr.bf16.mxu0 %v4084_v4  ;;  %3669 = vmatpush3.bf16.msra.mxu1 %v4083_v3  ;;  %v4125_v3 = vld [vmem:[%s5466_s4 + $0x2e8] sm:$0xff]  }
  0x30   :  { %3670 = vmatprep.subr.bf16.mxu1 %v4085_v5  ;;  %v4126_v4 = vld [vmem:[%s5466_s4 + $0x228] sm:$0xff]  }
  0x31   :  { %v4127_v5 = vld [vmem:[%s5466_s4 + $0x2a8] sm:$0xff]  }
  0x32   :  { %3649 = vmatpush3.bf16.msra.mxu0 %v4086_v6  ;;  %v4128_v6 = vld [vmem:[%s5466_s4 + $0x270] sm:$0xff]  }
  0x33   :  { %3650 = vmatprep.subr.bf16.mxu0 %v4088_v8  ;;  %3671 = vmatpush3.bf16.msra.mxu1 %v4087_v7  ;;  %v61_v7 = vld [vmem:[%s5484_s28 + $0x10] sm:$0xff] }
  0x34   :  { %3672 = vmatprep.subr.bf16.mxu1 %v4089_v9  ;;  %v65_v8 = vld [vmem:[%s5485_s30 + $0x10] sm:$0xff] }
  0x35   :  { %v73_v9 = vld [vmem:[%s5464_s2 + $0x10] sm:$0xff] }
  0x36   :  { %3651 = vmatpush3.bf16.msra.mxu0 %v4090_v10  ;;  %v77_v10 = vld [vmem:[%s5465_s3 + $0x10] sm:$0xff] }
  0x37   :  { %3652 = vmatprep.subr.bf16.mxu0 %v4092_v12  ;;  %3673 = vmatpush3.bf16.msra.mxu1 %v4091_v11  ;;  %v4129_v11 = vld [vmem:[%s5466_s4 + $0x2f0] sm:$0xff]   ;;  %v69_v12 = vmax.f32 %v61_v7, %v65_v8  ;;  %v78_v8 = vld [vmem:[%s5465_s3 + $0x18] sm:$0xff] }
  0x38   :  { %3674 = vmatprep.subr.bf16.mxu1 %v4093_v13  ;;  %v81_v13 = vmax.f32 %v73_v9, %v77_v10  ;;  %v4163_v9 = vld [vmem:[%s5466_s4 + $0x3b0] sm:$0xff]  }
  0x3a   :  { %3653 = vmatpush3.bf16.msra.mxu0 %v4094_v14  ;;  %v4130_v14 = vld [vmem:[%s5466_s4 + $0x230] sm:$0xff]  }
  0x3b   :  { %3654 = vmatprep.subr.bf16.mxu0 %v4096_v16  ;;  %3675 = vmatpush3.bf16.msra.mxu1 %v4095_v15  ;;  %v4132_v15 = vld [vmem:[%s5466_s4 + $0x278] sm:$0xff]   ;;  %v85_v16 = vmax.f32 %v69_v12, %v81_v13 }
  0x3c   :  { %3676 = vmatprep.subr.bf16.mxu1 %v4097_v22  ;;  %v4166_v12 = vld [vmem:[%s5466_s4 + $0x338] sm:$0xff]  }
  0x3d   :  { %v89_v19 = vmax.f32 %v85_v16, 0.0 }
  0x3e   :  { %3655 = vmatpush3.bf16.msra.mxu0 %v4098_v24  ;;  %v4135_v24 = vld [vmem:[%s5466_s4 + $0x2b8] sm:$0xff]  }
  0x3f   :  { %3656 = vmatprep.subr.bf16.mxu0 %v4100_v25  ;;  %3677 = vmatpush3.bf16.msra.mxu1 %v4099_v27  ;;  %v136_v21 = vrot.slane %v89_v19, %v4557_v47  ;;  %v129_v22 = vcombine.high %v89_v19, %v89_v19  ;;  %v4137_v27 = vld [vmem:[%s5466_s4 + $0x3c0] sm:$0xff]  }
  0x40   :  { %3678 = vmatprep.subr.bf16.mxu1 %v4101_v28 }
  0x41   :  { %v144_v25 = vcombine.high %v136_v21, %v136_v21  ;;  %v143_v26 = vrot.slane %v129_v22, %v4557_v47  ;;  %v4805_v28 = vpack.c.bf16 %v136_v21, %v136_v21 }
  0x42   :  { %3657 = vmatpush3.bf16.msra.mxu0 %v4102_v30 }
  0x43   :  { %3686 = vmatprep.subr.bf16.mxu0 %v4104_v33  ;;  %3679 = vmatpush3.bf16.msra.mxu1 %v4103_v34  ;;  %v4810_v30 = vpack.c.bf16 %v144_v25, %v144_v25  ;;  %v145_v31 = vcombine.high %v143_v26, %v143_v26  ;;  %v4815_v33 = vpack.c.bf16 %v143_v26, %v143_v26  ;;  %v4140_v34 = vld [vmem:[%s5466_s4 + $0x348] sm:$0xff]   ;;  %v4347_v25 = vmov 0.0  }
  0x44   :  { %3708 = vmatprep.subr.bf16.mxu1 %v4105_v37  ;;  %v4142_v37 = vld [vmem:[%s5466_s4 + $0x308] sm:$0xff]  }
  0x45   :  { %1339 = vmatmul.mubr.bf16.vlgmr.msra.gmra.mrb[4].mxu0 %v4683_v38  ;;  %v4821_v35 = vpack.c.bf16 %v145_v31, %v145_v31  ;;  %v4169_v26 = vld [vmem:[%s5468_s6 + $0x8] sm:$0xff]   ;;  %v4172_v31 = vld [vmem:[%s5468_s6 + $0x20] sm:$0xff]  }
  0x46   :  { %3687 = vmatpush3.bf16.msra.mxu0 %v4106_v39  ;;  %1379 = vmatmul.mubr.bf16.vlgmr.msra.gmra.mrb[4].mxu1 %v4693_v43  ;;  %v4143_v39 = vld [vmem:[%s5466_s4 + $0x388] sm:$0xff]  }
  0x47   :  { %3688 = vmatprep.subr.bf16.mxu0 %v4108_v44  ;;  %3709 = vmatpush3.bf16.msra.mxu1 %v4107_v42  ;;  %v4145_v42 = vld [vmem:[%s5466_s4 + $0x3d0] sm:$0xff]  }
  0x48   :  { %3710 = vmatprep.subr.bf16.mxu1 %v4109_v46  ;;  %1418 = vmatprep.mubr.bf16.mxu0 %v4810_v30  ;;  %v4146_v44 = vld [vmem:[%s5466_s4 + $0x310] sm:$0xff]  }
  0x49   :  { %1458 = vmatprep.mubr.bf16.mxu1 %v4821_v35  ;;  %v4147_v46 = vld [vmem:[%s5466_s4 + $0x390] sm:$0xff]  }
  0x4a   :  { %3689 = vmatpush3.bf16.msra.mxu0 %v4110_v48  ;;  %v4148_v48 = vld [vmem:[%s5466_s4 + $0x358] sm:$0xff]  }
  0x4b   :  { %3690 = vmatprep.subr.bf16.mxu0 %v4112_v50  ;;  %3711 = vmatpush3.bf16.msra.mxu1 %v4111_v49  ;;  %v4149_v49 = vld [vmem:[%s5466_s4 + $0x3d8] sm:$0xff]  }
  0x4c   :  { %3712 = vmatprep.subr.bf16.mxu1 %v4113_v51  ;;  %v4150_v50 = vld [vmem:[%s5466_s4 + $0x318] sm:$0xff]  }
  0x4d   :  { %v4151_v51 = vld [vmem:[%s5466_s4 + $0x398] sm:$0xff]  }
  0x4e   :  { %3691 = vmatpush3.bf16.msra.mxu0 %v4114_v52  ;;  %v4152_v52 = vld [vmem:[%s5466_s4 + $0x360] sm:$0xff]  }
  0x4f   :  { %3692 = vmatprep.subr.bf16.mxu0 %v4116_v56  ;;  %3713 = vmatpush3.bf16.msra.mxu1 %v4115_v54  ;;  %v4153_v54 = vld [vmem:[%s5466_s4 + $0x3e0] sm:$0xff]  }
  0x50   :  { %3714 = vmatprep.subr.bf16.mxu1 %v4117_v57  ;;  %v4154_v56 = vld [vmem:[%s5466_s4 + $0x320] sm:$0xff]  }
  0x51   :  { %v4155_v57 = vld [vmem:[%s5466_s4 + $0x3a0] sm:$0xff]  }
  0x52   :  { %3693 = vmatpush3.bf16.msra.mxu0 %v4118_v59  ;;  %v4156_v59 = vld [vmem:[%s5466_s4 + $0x368] sm:$0xff]  }
  0x53   :  { %3694 = vmatprep.subr.bf16.mxu0 %v4120_v62  ;;  %3715 = vmatpush3.bf16.msra.mxu1 %v4119_v61  ;;  %v4157_v61 = vld [vmem:[%s5466_s4 + $0x3e8] sm:$0xff]  }
  0x54   :  { %3716 = vmatprep.subr.bf16.mxu1 %v4121_v63  ;;  %v4158_v62 = vld [vmem:[%s5466_s4 + $0x328] sm:$0xff]  }
  0x55   :  { %v4159_v63 = vld [vmem:[%s5466_s4 + $0x3a8] sm:$0xff]  }
  0x56   :  { %3695 = vmatpush3.bf16.msra.mxu0 %v4122_v0  ;;  %v4160_v0 = vld [vmem:[%s5466_s4 + $0x370] sm:$0xff]  }
  0x57   :  { %3696 = vmatprep.subr.bf16.mxu0 %v4124_v2  ;;  %3717 = vmatpush3.bf16.msra.mxu1 %v4123_v1  ;;  %v4161_v1 = vld [vmem:[%s5466_s4 + $0x3f0] sm:$0xff]  }
  0x58   :  { %3718 = vmatprep.subr.bf16.mxu1 %v4125_v3  ;;  %v4162_v2 = vld [vmem:[%s5466_s4 + $0x330] sm:$0xff]   ;;  %v62_v3 = vld [vmem:[%s5484_s28 + $0x18] sm:$0xff] }
  0x5a   :  { %3697 = vmatpush3.bf16.msra.mxu0 %v4126_v4  ;;  %v66_v4 = vld [vmem:[%s5485_s30 + $0x18] sm:$0xff] }
  0x5b   :  { %3698 = vmatprep.subr.bf16.mxu0 %v4128_v6  ;;  %3719 = vmatpush3.bf16.msra.mxu1 %v4127_v5  ;;  %v74_v5 = vld [vmem:[%s5464_s2 + $0x18] sm:$0xff]  ;;  %v70_v7 = vmax.f32 %v62_v3, %v66_v4 }
  0x5c   :  { %3720 = vmatprep.subr.bf16.mxu1 %v4129_v11  ;;  %v4164_v6 = vld [vmem:[%s5466_s4 + $0x378] sm:$0xff]   ;;  %v82_v10 = vmax.f32 %v74_v5, %v78_v8 }
  0x5d   :  { %v4165_v11 = vld [vmem:[%s5466_s4 + $0x3f8] sm:$0xff]  }
  0x5e   :  { %3699 = vmatpush3.bf16.msra.mxu0 %v4130_v14  ;;  %v86_v13 = vmax.f32 %v70_v7, %v82_v10  ;;  %v4167_v14 = vld [vmem:[%s5466_s4 + $0x3b8] sm:$0xff]  }
  0x5f   :  { %3700 = vmatprep.subr.bf16.mxu0 %v4132_v15  ;;  %3721 = vmatpush3.bf16.msra.mxu1 %v4131_v17 }
  0x60   :  { %3722 = vmatprep.subr.bf16.mxu1 %v4133_v18  ;;  %v90_v15 = vmax.f32 %v86_v13, 0.0 }
  0x62   :  { %3701 = vmatpush3.bf16.msra.mxu0 %v4134_v20  ;;  %v153_v16 = vrot.slane %v90_v15, %v4557_v47  ;;  %v146_v17 = vcombine.high %v90_v15, %v90_v15 }
  0x63   :  { %3730 = vmatprep.subr.bf16.mxu0 %v4136_v23  ;;  %3723 = vmatpush3.bf16.msra.mxu1 %v4135_v24 }
  0x64   :  { %3752 = vmatprep.subr.bf16.mxu1 %v4137_v27  ;;  %v161_v18 = vcombine.high %v153_v16, %v153_v16  ;;  %v160_v19 = vrot.slane %v146_v17, %v4557_v47  ;;  %v4921_v20 = vpack.c.bf16 %v153_v16, %v153_v16  ;;  %v4168_v47 = vld [vmem:[%s5468_s6] sm:$0xff]   ;;  %v4170_v27 = vld [vmem:[%s5468_s6 + $0x10] sm:$0xff]  }
  0x65   :  { %1419 = vmatmul.mubr.bf16.vlgmr.msra.gmra.mrb[8].mxu0 %v4805_v28 }
  0x66   :  { %3731 = vmatpush3.bf16.msra.mxu0 %v4138_v29  ;;  %1459 = vmatmul.mubr.bf16.vlgmr.msra.gmra.mrb[8].mxu1 %v4815_v33  ;;  %v4923_v21 = vpack.c.bf16 %v161_v18, %v161_v18  ;;  %v162_v22 = vcombine.high %v160_v19, %v160_v19  ;;  %v4925_v23 = vpack.c.bf16 %v160_v19, %v160_v19  ;;  %v4171_v29 = vld [vmem:[%s5468_s6 + $0x18] sm:$0xff]  }
  0x67   :  { %3732 = vmatprep.subr.bf16.mxu0 %v4140_v34  ;;  %3753 = vmatpush3.bf16.msra.mxu1 %v4139_v32  ;;  %v4173_v32 = vld [vmem:[%s5468_s6 + $0x28] sm:$0xff]   ;;  %v4174_v34 = vld [vmem:[%s5468_s6 + $0x30] sm:$0xff]  }
  0x68   :  { %3754 = vmatprep.subr.bf16.mxu1 %v4141_v36  ;;  %1498 = vmatprep.mubr.bf16.mxu0 %v4923_v21  ;;  %v4928_v24 = vpack.c.bf16 %v162_v22, %v162_v22 }
  0x6a   :  { %3733 = vmatpush3.bf16.msra.mxu0 %v4142_v37  ;;  %1538 = vmatprep.mubr.bf16.mxu1 %v4928_v24 }
  0x6b   :  { %3734 = vmatprep.subr.bf16.mxu0 %v4144_v41  ;;  %3755 = vmatpush3.bf16.msra.mxu1 %v4143_v39 }
  0x6c   :  { %3756 = vmatprep.subr.bf16.mxu1 %v4145_v42 }
  0x6e   :  { %3735 = vmatpush3.bf16.msra.mxu0 %v4146_v44 }
  0x6f   :  { %3736 = vmatprep.subr.bf16.mxu0 %v4148_v48  ;;  %3757 = vmatpush3.bf16.msra.mxu1 %v4147_v46 }
  0x70   :  { %3758 = vmatprep.subr.bf16.mxu1 %v4149_v49 }
  0x72   :  { %3737 = vmatpush3.bf16.msra.mxu0 %v4150_v50 }
  0x73   :  { %3738 = vmatprep.subr.bf16.mxu0 %v4152_v52  ;;  %3759 = vmatpush3.bf16.msra.mxu1 %v4151_v51 }
  0x74   :  { %3760 = vmatprep.subr.bf16.mxu1 %v4153_v54 }
  0x76   :  { %3739 = vmatpush3.bf16.msra.mxu0 %v4154_v56 }
  0x77   :  { %3740 = vmatprep.subr.bf16.mxu0 %v4156_v59  ;;  %3761 = vmatpush3.bf16.msra.mxu1 %v4155_v57 }
  0x78   :  { %3762 = vmatprep.subr.bf16.mxu1 %v4157_v61 }
  0x7a   :  { %3741 = vmatpush3.bf16.msra.mxu0 %v4158_v62 }
  0x7b   :  { %3742 = vmatprep.subr.bf16.mxu0 %v4160_v0  ;;  %3763 = vmatpush3.bf16.msra.mxu1 %v4159_v63 }
  0x7c   :  { %3764 = vmatprep.subr.bf16.mxu1 %v4161_v1 }
  0x7e   :  { %3743 = vmatpush3.bf16.msra.mxu0 %v4162_v2 }
  0x7f   :  { %3744 = vmatprep.subr.bf16.mxu0 %v4164_v6  ;;  %3765 = vmatpush3.bf16.msra.mxu1 %v4163_v9 }
  0x80   :  { %3766 = vmatprep.subr.bf16.mxu1 %v4165_v11 }
  0x82   :  { %3745 = vmatpush3.bf16.msra.mxu0 %v4166_v12 }
  0x83   :  { %3767 = vmatpush3.bf16.msra.mxu1 %v4167_v14  ;;  %3976 = vmatprep.subr.bf16.mxu0 %v4347_v25 }
  0x84   :  { %4008 = vmatprep.subr.bf16.mxu1 %v4347_v25 }
  0x85   :  { %1499 = vmatmul.mubr.bf16.vlgmr.msra.gmra.mrb[12].mxu0 %v4921_v20 }
  0x86   :  { %1539 = vmatmul.mubr.bf16.vlgmr.msra.gmra.mrb[12].mxu1 %v4925_v23  ;;  %3977 = vmatpush3.bf16.msra.mxu0 %v4168_v47 }
  0x87   :  { %3978 = vmatprep.subr.bf16.mxu0 %v4347_v25 }
  0x8a   :  { %3979 = vmatpush3.bf16.msra.mxu0 %v4169_v26 }
  0x8b   :  { %3980 = vmatprep.subr.bf16.mxu0 %v4347_v25 }
  0x8e   :  { %3981 = vmatpush3.bf16.msra.mxu0 %v4170_v27 }
  0x8f   :  { %3982 = vmatprep.subr.bf16.mxu0 %v4347_v25 }
  0x92   :  { %3983 = vmatpush3.bf16.msra.mxu0 %v4171_v29 }
  0x93   :  { %3984 = vmatprep.subr.bf16.mxu0 %v4347_v25 }
  0x96   :  { %3985 = vmatpush3.bf16.msra.mxu0 %v4172_v31 }
  0x97   :  { %3986 = vmatprep.subr.bf16.mxu0 %v4347_v25 }
  0x9a   :  { %3987 = vmatpush3.bf16.msra.mxu0 %v4173_v32 }
  0x9b   :  { %3988 = vmatprep.subr.bf16.mxu0 %v4347_v25 }
  0x9c   :  { %25 = vsyncpa [#allocation4], 0  ;;  %v4175_v36 = vld [vmem:[%s5468_s6 + $0x38] sm:$0xff]   ;;  %vm4348_vm0 = vmmov 0   ;;  %v3312_v39 = vld [vmem:[%s5467_s5] ss:$0 sm:$0xff] }
  0x9d   :  { %3992 = vmatprep.mubr.msk.bf16.mxu0 %vm4348_vm0, %v4347_v25  ;;  %4012 = vmatprep.mubr.msk.bf16.mxu1 %vm4348_vm0, %v4347_v25  ;;  %vm1700_vm1 = vcmask 523264   ;;  %vm1769_vm2 = vcmask 261120   ;;  %vm1813_vm3 = vcmask 1024   ;;  %vm3279_vm4 = vcmask 9216  }
  0x9e   :  { %3989 = vmatpush3.bf16.msra.mxu0 %v4174_v34 }
  0x9f   :  { %3990 = vmatprep.subr.bf16.mxu0 %v4347_v25 }
  0xa2   :  { %3991 = vmatpush3.bf16.msra.mxu0 %v4175_v36 }
  0xa3   :  { %3996 = vmatprep.subr.bf16.mxu0 %v4347_v25 }
  0xf8   :  { %v3614_v37 = vpop.f32.mrb[0].mxu0 }
  0xf9   :  { %v3615_v41 = vpop.f32.mrb[1].mxu0  ;;  %v3636_v42 = vpop.f32.mrb[0].mxu1 }
  0xfa   :  { %v3616_v44 = vadd.f32 %v3615_v41, %v3614_v37  ;;  %v3617_v46 = vpop.f32.mrb[2].mxu0  ;;  %v3637_v48 = vpop.f32.mrb[1].mxu1 }
  0xfb   :  { %v3618_v49 = vpop.f32.mrb[3].mxu0  ;;  %v3638_v51 = vadd.f32 %v3637_v48, %v3636_v42  ;;  %v3639_v52 = vpop.f32.mrb[2].mxu1  ;;  %v4176_v42 = vld [vmem:[%s5470_s8] sm:$0xff]   ;;  %v4177_v46 = vld [vmem:[%s5470_s8 + $0x8] sm:$0xff]   ;;  %v4178_v48 = vld [vmem:[%s5470_s8 + $0x10] sm:$0xff]  }
  0xfc   :  { %v1261_v50 = vadd.f32 %v3616_v44, %v3312_v39  ;;  %v3640_v54 = vpop.f32.mrb[3].mxu1  ;;  %v4179_v49 = vld [vmem:[%s5470_s8 + $0x18] sm:$0xff]  }
  0xfe   :  { %v1301_v56 = vadd.f32 %v3638_v51, %v1261_v50  ;;  %v4180_v50 = vld [vmem:[%s5472_s10] sm:$0xff]  }
  0xff   :  { %4009 = vmatpush3.bf16.msra.mxu1 %v4180_v50  ;;  %v3441_v51 = vld [vmem:[%s5469_s7] ss:$0 sm:$0xff] }
 0x100   :  { %4010 = vmatprep.subr.bf16.mxu1 %v4347_v25  ;;  %v4264_v50 = vld [vmem:[%s5474_s12 + $0x2a0] sm:$0xff]  }
 0x118   :  { %v3658_v57 = vpop.f32.mrb[4].mxu0 }
 0x119   :  { %v3659_v59 = vpop.f32.mrb[5].mxu0  ;;  %v3680_v61 = vpop.f32.mrb[4].mxu1 }
 0x11a   :  { %v3660_v62 = vadd.f32 %v3659_v59, %v3658_v57  ;;  %v3661_v63 = vpop.f32.mrb[6].mxu0  ;;  %v3681_v0 = vpop.f32.mrb[5].mxu1 }
 0x11b   :  { %v3662_v1 = vpop.f32.mrb[7].mxu0  ;;  %v3682_v3 = vadd.f32 %v3681_v0, %v3680_v61  ;;  %v3683_v4 = vpop.f32.mrb[6].mxu1  ;;  %v4181_v63 = vld [vmem:[%s5472_s10 + $0x8] sm:$0xff]   ;;  %v4182_v0 = vld [vmem:[%s5474_s12 + $0xc0] sm:$0xff]  }
 0x11c   :  { %v1341_v2 = vadd.f32 %v3660_v62, %v1301_v56  ;;  %v3684_v5 = vpop.f32.mrb[7].mxu1  ;;  %4011 = vmatpush3.bf16.msra.mxu1 %v4181_v63  ;;  %v4183_v1 = vld [vmem:[%s5474_s12 + $0x40] sm:$0xff]   ;;  %v4190_v4 = vld [vmem:[%s5474_s12 + $0xd0] sm:$0xff]   ;;  %v4282_v63 = vld [vmem:[%s5474_s12 + $0x3c8] sm:$0xff]  }
 0x11d   :  { %3791 = vmatprep.subr.bf16.mxu1 %v4183_v1  ;;  %v4192_v5 = vld [vmem:[%s5474_s12 + $0x90] sm:$0xff]  }
 0x11e   :  { %v1381_v6 = vadd.f32 %v3682_v3, %v1341_v2  ;;  %v4184_v2 = vld [vmem:[%s5474_s12 + $0x80] sm:$0xff]   ;;  %v4188_v3 = vld [vmem:[%s5474_s12 + $0x88] sm:$0xff]   ;;  %v4286_v1 = vld [vmem:[%s5474_s12 + $0x3d0] sm:$0xff]  }
 0x138   :  { %v3702_v7 = vpop.f32.mrb[8].mxu0 }
 0x139   :  { %v3703_v8 = vpop.f32.mrb[9].mxu0  ;;  %v3724_v9 = vpop.f32.mrb[8].mxu1 }
 0x13a   :  { %v3704_v10 = vadd.f32 %v3703_v8, %v3702_v7  ;;  %v3705_v11 = vpop.f32.mrb[10].mxu0  ;;  %v3725_v12 = vpop.f32.mrb[9].mxu1  ;;  %v4196_v7 = vld [vmem:[%s5474_s12 + $0x98] sm:$0xff]   ;;  %v4198_v8 = vld [vmem:[%s5474_s12 + $0xe0] sm:$0xff]  }
 0x13b   :  { %v3706_v13 = vpop.f32.mrb[11].mxu0  ;;  %v3726_v15 = vadd.f32 %v3725_v12, %v3724_v9  ;;  %v3727_v16 = vpop.f32.mrb[10].mxu1  ;;  %v4200_v9 = vld [vmem:[%s5474_s12 + $0xa0] sm:$0xff]   ;;  %v4204_v11 = vld [vmem:[%s5474_s12 + $0xa8] sm:$0xff]   ;;  %v4206_v12 = vld [vmem:[%s5474_s12 + $0xf0] sm:$0xff]  }
 0x13c   :  { %v1421_v14 = vadd.f32 %v3704_v10, %v1381_v6  ;;  %v3728_v17 = vpop.f32.mrb[11].mxu1  ;;  %v4194_v6 = vld [vmem:[%s5474_s12 + $0xd8] sm:$0xff]   ;;  %v4202_v10 = vld [vmem:[%s5474_s12 + $0xe8] sm:$0xff]   ;;  %v4208_v13 = vld [vmem:[%s5474_s12 + $0xb0] sm:$0xff]  }
 0x13d   :  { %v4214_v16 = vld [vmem:[%s5474_s12 + $0x1c0] sm:$0xff]  }
 0x13e   :  { %v1461_v18 = vadd.f32 %v3726_v15, %v1421_v14  ;;  %v4210_v14 = vld [vmem:[%s5474_s12 + $0xf8] sm:$0xff]   ;;  %v4216_v17 = vld [vmem:[%s5474_s12 + $0x180] sm:$0xff]  }
 0x13f   :  { %v4212_v15 = vld [vmem:[%s5474_s12 + $0xb8] sm:$0xff]  }
 0x158   :  { %v3746_v19 = vpop.f32.mrb[12].mxu0 }
 0x159   :  { %v3747_v22 = vpop.f32.mrb[13].mxu0  ;;  %v3768_v47 = vpop.f32.mrb[12].mxu1 }
 0x15a   :  { %v3748_v26 = vadd.f32 %v3747_v22, %v3746_v19  ;;  %v3749_v27 = vpop.f32.mrb[14].mxu0  ;;  %v3769_v29 = vpop.f32.mrb[13].mxu1  ;;  %v4220_v19 = vld [vmem:[%s5474_s12 + $0x188] sm:$0xff]   ;;  %v4222_v22 = vld [vmem:[%s5474_s12 + $0x1d0] sm:$0xff]  }
 0x15b   :  { %v3750_v31 = vpop.f32.mrb[15].mxu0  ;;  %v3770_v34 = vadd.f32 %v3769_v29, %v3768_v47  ;;  %v3771_v36 = vpop.f32.mrb[14].mxu1  ;;  %v4228_v47 = vld [vmem:[%s5474_s12 + $0x198] sm:$0xff]   ;;  %v4232_v27 = vld [vmem:[%s5474_s12 + $0x1a0] sm:$0xff]   ;;  %v4234_v29 = vld [vmem:[%s5474_s12 + $0x1e8] sm:$0xff]  }
 0x15c   :  { %v1501_v32 = vadd.f32 %v3748_v26, %v1461_v18  ;;  %v3772_v37 = vpop.f32.mrb[15].mxu1  ;;  %v4218_v18 = vld [vmem:[%s5474_s12 + $0x1c8] sm:$0xff]   ;;  %v4230_v26 = vld [vmem:[%s5474_s12 + $0x1e0] sm:$0xff]   ;;  %v4242_v36 = vld [vmem:[%s5474_s12 + $0x1f8] sm:$0xff]  }
 0x15d   :  { %v4236_v31 = vld [vmem:[%s5474_s12 + $0x1a8] sm:$0xff]   ;;  %v4244_v37 = vld [vmem:[%s5474_s12 + $0x1b8] sm:$0xff]  }
 0x15e   :  { %v1541_v39 = vadd.f32 %v3770_v34, %v1501_v32  ;;  %v4238_v32 = vld [vmem:[%s5474_s12 + $0x1f0] sm:$0xff]  }
 0x15f   :  { %v4240_v34 = vld [vmem:[%s5474_s12 + $0x1b0] sm:$0xff]  }
 0x160   :  { %v1546_v41 = vmax.f32 %v1541_v39, 0.0  ;;  %v4246_v39 = vld [vmem:[%s5474_s12 + $0x2c0] sm:$0xff]  }
 0x162   :  { %v1547_v44 = vpack.c.bf16 %v1546_v41, %v1546_v41  ;;  %v4248_v41 = vld [vmem:[%s5474_s12 + $0x280] sm:$0xff]  }
 0x164   :  { %3993 = vmatmul.mubr.bf16.vlgmr.msra.gmra.mrb[16].mxu0 %v1547_v44  ;;  %v4252_v44 = vld [vmem:[%s5474_s12 + $0x288] sm:$0xff]  }
 0x165   :  { %3997 = vmatpush3.bf16.msra.mxu0 %v4176_v42  ;;  %4004 = vmatprep.mubr.msk.bf16.mxu0 %vm4348_vm0, %v4347_v25  ;;  %v4250_v42 = vld [vmem:[%s5474_s12 + $0x2c8] sm:$0xff]  }
 0x166   :  { %3998 = vmatprep.subr.bf16.mxu0 %v4347_v25 }
 0x169   :  { %3999 = vmatpush3.bf16.msra.mxu0 %v4177_v46  ;;  %v4254_v46 = vld [vmem:[%s5474_s12 + $0x2d0] sm:$0xff]  }
 0x16a   :  { %4000 = vmatprep.subr.bf16.mxu0 %v4347_v25 }
 0x16d   :  { %4001 = vmatpush3.bf16.msra.mxu0 %v4178_v48  ;;  %v4260_v48 = vld [vmem:[%s5474_s12 + $0x298] sm:$0xff]  }
 0x16e   :  { %4002 = vmatprep.subr.bf16.mxu0 %v4347_v25 }
 0x171   :  { %4003 = vmatpush3.bf16.msra.mxu0 %v4179_v49  ;;  %v4262_v49 = vld [vmem:[%s5474_s12 + $0x2e0] sm:$0xff]  }
 0x172   :  { %3813 = vmatprep.subr.bf16.mxu0 %v4182_v0  ;;  %v4284_v0 = vld [vmem:[%s5474_s12 + $0x388] sm:$0xff]  }
 0x237   :  { %v1653_v52 = vpop.f32.mrb[16].mxu0 }
 0x238   :  { %v1654_v54 = vadd.f32 %v3441_v51, %v1653_v52  ;;  %v3994_v56 = vpop.f32.mrb[17].mxu0  ;;  %v4266_v51 = vld [vmem:[%s5474_s12 + $0x2e8] sm:$0xff]  }
 0x239   :  { %v1656_v57 = vpop.f32.mrb[18].mxu0  ;;  %v4268_v52 = vld [vmem:[%s5474_s12 + $0x2a8] sm:$0xff]   ;;  %v4272_v56 = vld [vmem:[%s5474_s12 + $0x2b0] sm:$0xff]  }
 0x23a   :  { %v1659_v59 = vmax.f32 %v1654_v54, 0.0  ;;  %v3995_v61 = vpop.f32.mrb[19].mxu0  ;;  %v4270_v54 = vld [vmem:[%s5474_s12 + $0x2f0] sm:$0xff]   ;;  %v4274_v57 = vld [vmem:[%s5474_s12 + $0x2f8] sm:$0xff]  }
 0x23b   :  { %v4278_v61 = vld [vmem:[%s5474_s12 + $0x3c0] sm:$0xff]  }
 0x23c   :  { %v1660_v62 = vpack.c.bf16 %v1659_v59, %v1659_v59  ;;  %v4276_v59 = vld [vmem:[%s5474_s12 + $0x2b8] sm:$0xff]  }
 0x23e   :  { %4005 = vmatmul.mubr.msk.bf16.vlgmr.msra.gmra.mrb[20].mxu0 %vm1700_vm1, %v1660_v62  ;;  %v4280_v62 = vld [vmem:[%s5474_s12 + $0x380] sm:$0xff]  }
 0x23f   :  { %2918 = vmatprep.mubr.bf16.mxu0 %v4577_v60  ;;  %3814 = vmatpush3.bf16.msra.mxu0 %v4184_v2  ;;  %v4186_v60 = vld [vmem:[%s5474_s12 + $0xc8] sm:$0xff]   ;;  %v4292_v2 = vld [vmem:[%s5474_s12 + $0x398] sm:$0xff]  }
 0x240   :  { %3815 = vmatprep.subr.bf16.mxu0 %v4186_v60  ;;  %v4294_v60 = vld [vmem:[%s5474_s12 + $0x3e0] sm:$0xff]  }
 0x243   :  { %3816 = vmatpush3.bf16.msra.mxu0 %v4188_v3  ;;  %v4296_v3 = vld [vmem:[%s5474_s12 + $0x3a0] sm:$0xff]  }
 0x244   :  { %3817 = vmatprep.subr.bf16.mxu0 %v4190_v4  ;;  %v4298_v4 = vld [vmem:[%s5474_s12 + $0x3e8] sm:$0xff]  }
 0x247   :  { %3818 = vmatpush3.bf16.msra.mxu0 %v4192_v5  ;;  %v4300_v5 = vld [vmem:[%s5474_s12 + $0x3a8] sm:$0xff]  }
 0x248   :  { %3819 = vmatprep.subr.bf16.mxu0 %v4194_v6  ;;  %v4302_v6 = vld [vmem:[%s5474_s12 + $0x3f0] sm:$0xff]  }
 0x24b   :  { %3820 = vmatpush3.bf16.msra.mxu0 %v4196_v7  ;;  %v4304_v7 = vld [vmem:[%s5474_s12 + $0x3b0] sm:$0xff]  }
 0x24c   :  { %3821 = vmatprep.subr.bf16.mxu0 %v4198_v8  ;;  %v3450_v8 = vld [vmem:[%s5471_s9] ss:$0 sm:$0xff] }
 0x24f   :  { %3822 = vmatpush3.bf16.msra.mxu0 %v4200_v9 }
 0x250   :  { %3823 = vmatprep.subr.bf16.mxu0 %v4202_v10  ;;  %v4306_v10 = vld [vmem:[%s5474_s12 + $0x3f8] sm:$0xff]  }
 0x253   :  { %3824 = vmatpush3.bf16.msra.mxu0 %v4204_v11 }
 0x254   :  { %3825 = vmatprep.subr.bf16.mxu0 %v4206_v12 }
 0x257   :  { %3826 = vmatpush3.bf16.msra.mxu0 %v4208_v13  ;;  %v4308_v13 = vld [vmem:[%s5474_s12 + $0x3b8] sm:$0xff]  }
 0x258   :  { %3827 = vmatprep.subr.bf16.mxu0 %v4210_v14 }
 0x25b   :  { %3828 = vmatpush3.bf16.msra.mxu0 %v4212_v15 }
 0x25c   :  { %3857 = vmatprep.subr.bf16.mxu0 %v4214_v16 }
 0x25e   :  { %2919 = vmatmul.mubr.bf16.vlgmr.msra.gmra.mrb[24].mxu0 %v4571_v58  ;;  %v4224_v58 = vld [vmem:[%s5474_s12 + $0x190] sm:$0xff]  }
 0x25f   :  { %3858 = vmatpush3.bf16.msra.mxu0 %v4216_v17  ;;  %2998 = vmatprep.mubr.bf16.mxu0 %v4699_v45  ;;  %v4226_v45 = vld [vmem:[%s5474_s12 + $0x1d8] sm:$0xff]   ;;  %v4185_v17 = vld [vmem:[%s5474_s12] sm:$0xff]  }
 0x260   :  { %3859 = vmatprep.subr.bf16.mxu0 %v4218_v18 }
 0x263   :  { %3860 = vmatpush3.bf16.msra.mxu0 %v4220_v19  ;;  %v4187_v19 = vld [vmem:[%s5474_s12 + $0x48] sm:$0xff]  }
 0x264   :  { %3861 = vmatprep.subr.bf16.mxu0 %v4222_v22  ;;  %v4189_v22 = vld [vmem:[%s5474_s12 + $0x8] sm:$0xff]  }
 0x267   :  { %3862 = vmatpush3.bf16.msra.mxu0 %v4224_v58  ;;  %v4191_v58 = vld [vmem:[%s5474_s12 + $0x50] sm:$0xff]  }
 0x268   :  { %3863 = vmatprep.subr.bf16.mxu0 %v4226_v45  ;;  %v4193_v45 = vld [vmem:[%s5474_s12 + $0x10] sm:$0xff]  }
 0x26b   :  { %3864 = vmatpush3.bf16.msra.mxu0 %v4228_v47  ;;  %v4199_v47 = vld [vmem:[%s5474_s12 + $0x60] sm:$0xff]  }
 0x26c   :  { %3865 = vmatprep.subr.bf16.mxu0 %v4230_v26  ;;  %v4201_v26 = vld [vmem:[%s5474_s12 + $0x20] sm:$0xff]  }
 0x26f   :  { %3866 = vmatpush3.bf16.msra.mxu0 %v4232_v27  ;;  %v4203_v27 = vld [vmem:[%s5474_s12 + $0x68] sm:$0xff]  }
 0x270   :  { %3867 = vmatprep.subr.bf16.mxu0 %v4234_v29  ;;  %v4205_v29 = vld [vmem:[%s5474_s12 + $0x28] sm:$0xff]  }
 0x273   :  { %3868 = vmatpush3.bf16.msra.mxu0 %v4236_v31  ;;  %v4207_v31 = vld [vmem:[%s5474_s12 + $0x70] sm:$0xff]  }
 0x274   :  { %3869 = vmatprep.subr.bf16.mxu0 %v4238_v32  ;;  %v4209_v32 = vld [vmem:[%s5474_s12 + $0x30] sm:$0xff]  }
 0x277   :  { %3870 = vmatpush3.bf16.msra.mxu0 %v4240_v34  ;;  %v4211_v34 = vld [vmem:[%s5474_s12 + $0x78] sm:$0xff]  }
 0x278   :  { %3871 = vmatprep.subr.bf16.mxu0 %v4242_v36  ;;  %v4213_v36 = vld [vmem:[%s5474_s12 + $0x38] sm:$0xff]  }
 0x27b   :  { %3872 = vmatpush3.bf16.msra.mxu0 %v4244_v37  ;;  %v4215_v37 = vld [vmem:[%s5474_s12 + $0x140] sm:$0xff]  }
 0x27c   :  { %3901 = vmatprep.subr.bf16.mxu0 %v4246_v39  ;;  %v4217_v39 = vld [vmem:[%s5474_s12 + $0x100] sm:$0xff]  }
 0x27e   :  { %2999 = vmatmul.mubr.bf16.vlgmr.msra.gmra.mrb[28].mxu0 %v4693_v43  ;;  %v4256_v43 = vld [vmem:[%s5474_s12 + $0x290] sm:$0xff]  }
 0x27f   :  { %3902 = vmatpush3.bf16.msra.mxu0 %v4248_v41  ;;  %3078 = vmatprep.mubr.bf16.mxu0 %v4821_v35  ;;  %v4258_v35 = vld [vmem:[%s5474_s12 + $0x2d8] sm:$0xff]   ;;  %v4219_v41 = vld [vmem:[%s5474_s12 + $0x148] sm:$0xff]  }
 0x280   :  { %3903 = vmatprep.subr.bf16.mxu0 %v4250_v42  ;;  %v4221_v42 = vld [vmem:[%s5474_s12 + $0x108] sm:$0xff]  }
 0x283   :  { %3904 = vmatpush3.bf16.msra.mxu0 %v4252_v44  ;;  %v4223_v44 = vld [vmem:[%s5474_s12 + $0x150] sm:$0xff]  }
 0x284   :  { %3905 = vmatprep.subr.bf16.mxu0 %v4254_v46  ;;  %v4225_v46 = vld [vmem:[%s5474_s12 + $0x110] sm:$0xff]  }
 0x287   :  { %3906 = vmatpush3.bf16.msra.mxu0 %v4256_v43  ;;  %v4231_v43 = vld [vmem:[%s5474_s12 + $0x160] sm:$0xff]  }
 0x288   :  { %3907 = vmatprep.subr.bf16.mxu0 %v4258_v35  ;;  %v4233_v35 = vld [vmem:[%s5474_s12 + $0x120] sm:$0xff]  }
 0x28b   :  { %3908 = vmatpush3.bf16.msra.mxu0 %v4260_v48  ;;  %v4235_v48 = vld [vmem:[%s5474_s12 + $0x168] sm:$0xff]  }
 0x28c   :  { %3909 = vmatprep.subr.bf16.mxu0 %v4262_v49  ;;  %v4237_v49 = vld [vmem:[%s5474_s12 + $0x128] sm:$0xff]  }
 0x28f   :  { %3910 = vmatpush3.bf16.msra.mxu0 %v4264_v50  ;;  %v4239_v50 = vld [vmem:[%s5474_s12 + $0x170] sm:$0xff]  }
 0x290   :  { %3911 = vmatprep.subr.bf16.mxu0 %v4266_v51  ;;  %v4241_v51 = vld [vmem:[%s5474_s12 + $0x130] sm:$0xff]  }
 0x293   :  { %3912 = vmatpush3.bf16.msra.mxu0 %v4268_v52  ;;  %v4243_v52 = vld [vmem:[%s5474_s12 + $0x178] sm:$0xff]  }
 0x294   :  { %3913 = vmatprep.subr.bf16.mxu0 %v4270_v54  ;;  %v4245_v54 = vld [vmem:[%s5474_s12 + $0x138] sm:$0xff]  }
 0x297   :  { %3914 = vmatpush3.bf16.msra.mxu0 %v4272_v56  ;;  %v4247_v56 = vld [vmem:[%s5474_s12 + $0x240] sm:$0xff]  }
 0x298   :  { %3915 = vmatprep.subr.bf16.mxu0 %v4274_v57  ;;  %v4249_v57 = vld [vmem:[%s5474_s12 + $0x200] sm:$0xff]  }
 0x29b   :  { %3916 = vmatpush3.bf16.msra.mxu0 %v4276_v59  ;;  %v4251_v59 = vld [vmem:[%s5474_s12 + $0x248] sm:$0xff]  }
 0x29c   :  { %3945 = vmatprep.subr.bf16.mxu0 %v4278_v61  ;;  %v4253_v61 = vld [vmem:[%s5474_s12 + $0x208] sm:$0xff]  }
 0x29e   :  { %3079 = vmatmul.mubr.bf16.vlgmr.msra.gmra.mrb[32].mxu0 %v4815_v33  ;;  %v4288_v33 = vld [vmem:[%s5474_s12 + $0x390] sm:$0xff]  }
 0x29f   :  { %3946 = vmatpush3.bf16.msra.mxu0 %v4280_v62  ;;  %3158 = vmatprep.mubr.bf16.mxu0 %v4928_v24  ;;  %v4290_v24 = vld [vmem:[%s5474_s12 + $0x3d8] sm:$0xff]   ;;  %v4255_v62 = vld [vmem:[%s5474_s12 + $0x250] sm:$0xff]  }
 0x2a0   :  { %3947 = vmatprep.subr.bf16.mxu0 %v4282_v63  ;;  %v4257_v63 = vld [vmem:[%s5474_s12 + $0x210] sm:$0xff]  }
 0x2a3   :  { %3948 = vmatpush3.bf16.msra.mxu0 %v4284_v0  ;;  %v4263_v0 = vld [vmem:[%s5474_s12 + $0x260] sm:$0xff]  }
 0x2a4   :  { %3949 = vmatprep.subr.bf16.mxu0 %v4286_v1  ;;  %v4265_v1 = vld [vmem:[%s5474_s12 + $0x220] sm:$0xff]  }
 0x2a7   :  { %3950 = vmatpush3.bf16.msra.mxu0 %v4288_v33  ;;  %v4267_v33 = vld [vmem:[%s5474_s12 + $0x268] sm:$0xff]  }
 0x2a8   :  { %3951 = vmatprep.subr.bf16.mxu0 %v4290_v24  ;;  %v4269_v24 = vld [vmem:[%s5474_s12 + $0x228] sm:$0xff]  }
 0x2ab   :  { %3952 = vmatpush3.bf16.msra.mxu0 %v4292_v2  ;;  %v4271_v2 = vld [vmem:[%s5474_s12 + $0x270] sm:$0xff]  }
 0x2ac   :  { %3953 = vmatprep.subr.bf16.mxu0 %v4294_v60  ;;  %v4273_v60 = vld [vmem:[%s5474_s12 + $0x230] sm:$0xff]  }
 0x2af   :  { %3954 = vmatpush3.bf16.msra.mxu0 %v4296_v3  ;;  %v4275_v3 = vld [vmem:[%s5474_s12 + $0x278] sm:$0xff]  }
 0x2b0   :  { %3955 = vmatprep.subr.bf16.mxu0 %v4298_v4  ;;  %v4277_v4 = vld [vmem:[%s5474_s12 + $0x238] sm:$0xff]  }
 0x2b3   :  { %3956 = vmatpush3.bf16.msra.mxu0 %v4300_v5  ;;  %v4279_v5 = vld [vmem:[%s5474_s12 + $0x340] sm:$0xff]  }
 0x2b4   :  { %3957 = vmatprep.subr.bf16.mxu0 %v4302_v6  ;;  %v4281_v6 = vld [vmem:[%s5474_s12 + $0x300] sm:$0xff]  }
 0x2b7   :  { %3958 = vmatpush3.bf16.msra.mxu0 %v4304_v7  ;;  %v4283_v7 = vld [vmem:[%s5474_s12 + $0x348] sm:$0xff]  }
 0x2b8   :  { %3959 = vmatprep.subr.bf16.mxu0 %v4306_v10  ;;  %v4289_v10 = vld [vmem:[%s5474_s12 + $0x310] sm:$0xff]  }
 0x2bb   :  { %3960 = vmatpush3.bf16.msra.mxu0 %v4308_v13  ;;  %v4299_v13 = vld [vmem:[%s5474_s12 + $0x368] sm:$0xff]  }
 0x2be   :  { %3159 = vmatmul.mubr.bf16.vlgmr.msra.gmra.mrb[36].mxu0 %v4925_v23  ;;  %v4195_v23 = vld [vmem:[%s5474_s12 + $0x58] sm:$0xff]  }
 0x311   :  { %v1738_v9 = vpop.f32.mrb[20].mxu0 }
 0x312   :  { %v1739_v11 = vadd.f32 %v3450_v8, %v1738_v9  ;;  %v4006_v12 = vpop.f32.mrb[21].mxu0  ;;  %v4285_v8 = vld [vmem:[%s5474_s12 + $0x308] sm:$0xff]   ;;  %v4287_v9 = vld [vmem:[%s5474_s12 + $0x350] sm:$0xff]  }
 0x313   :  { %v1741_v14 = vpop.f32.mrb[22].mxu0  ;;  %v4297_v12 = vld [vmem:[%s5474_s12 + $0x320] sm:$0xff]  }
 0x314   :  { %v1744_v15 = vmax.f32 %v1739_v11, 0.0  ;;  %v4007_v16 = vpop.f32.mrb[23].mxu0  ;;  %v4295_v11 = vld [vmem:[%s5474_s12 + $0x360] sm:$0xff]   ;;  %v4301_v14 = vld [vmem:[%s5474_s12 + $0x328] sm:$0xff]  }
 0x316   :  { %v1745_v18 = vpack.c.bf16 %v1744_v15, %v1744_v15  ;;  %v4303_v15 = vld [vmem:[%s5474_s12 + $0x370] sm:$0xff]  }
 0x318   :  { %4013 = vmatmul.mubr.msk.bf16.vlgmr.msra.gmra.mrb[16].mxu1 %vm1769_vm2, %v1745_v18 }
 0x319   :  { %3792 = vmatpush3.bf16.msra.mxu1 %v4185_v17  ;;  %2878 = vmatprep.mubr.bf16.mxu1 %v4566_v55  ;;  %v4197_v55 = vld [vmem:[%s5474_s12 + $0x18] sm:$0xff]   ;;  %v4305_v17 = vld [vmem:[%s5474_s12 + $0x330] sm:$0xff]  }
 0x31a   :  { %3793 = vmatprep.subr.bf16.mxu1 %v4187_v19  ;;  %v4307_v19 = vld [vmem:[%s5474_s12 + $0x378] sm:$0xff]  }
 0x31d   :  { %3794 = vmatpush3.bf16.msra.mxu1 %v4189_v22 }
 0x31e   :  { %3795 = vmatprep.subr.bf16.mxu1 %v4191_v58 }
 0x321   :  { %3796 = vmatpush3.bf16.msra.mxu1 %v4193_v45 }
 0x322   :  { %3797 = vmatprep.subr.bf16.mxu1 %v4195_v23  ;;  %v4309_v23 = vld [vmem:[%s5474_s12 + $0x338] sm:$0xff]  }
 0x325   :  { %3798 = vmatpush3.bf16.msra.mxu1 %v4197_v55 }
 0x326   :  { %3799 = vmatprep.subr.bf16.mxu1 %v4199_v47 }
 0x329   :  { %3800 = vmatpush3.bf16.msra.mxu1 %v4201_v26 }
 0x32a   :  { %3801 = vmatprep.subr.bf16.mxu1 %v4203_v27 }
 0x32d   :  { %3802 = vmatpush3.bf16.msra.mxu1 %v4205_v29 }
 0x32e   :  { %3803 = vmatprep.subr.bf16.mxu1 %v4207_v31 }
 0x331   :  { %3804 = vmatpush3.bf16.msra.mxu1 %v4209_v32  ;;  %v3829_v16 = vpop.f32.mrb[24].mxu0 }
 0x332   :  { %3805 = vmatprep.subr.bf16.mxu1 %v4211_v34  ;;  %v3830_v18 = vpop.f32.mrb[25].mxu0 }
 0x333   :  { %v3832_v22 = vpop.f32.mrb[26].mxu0  ;;  %v3831_v58 = vadd.f32 %v3830_v18, %v3829_v16 }
 0x334   :  { %v3833_v45 = vpop.f32.mrb[27].mxu0  ;;  %v3589_v22 = vld [vmem:[%s5477_s15] ss:$0 sm:$0xff]  ;;  %s4349_s15 = smov [#allocation3]  }
 0x335   :  { %3806 = vmatpush3.bf16.msra.mxu1 %v4213_v36 }
 0x336   :  { %3835 = vmatprep.subr.bf16.mxu1 %v4215_v37 }
 0x338   :  { %2879 = vmatmul.mubr.bf16.vlgmr.msra.gmra.mrb[20].mxu1 %v4561_v53  ;;  %v4227_v53 = vld [vmem:[%s5474_s12 + $0x158] sm:$0xff]  }
 0x339   :  { %3836 = vmatpush3.bf16.msra.mxu1 %v4217_v39  ;;  %2958 = vmatprep.mubr.bf16.mxu1 %v4688_v40  ;;  %v4229_v40 = vld [vmem:[%s5474_s12 + $0x118] sm:$0xff]   ;;  %v4310_v39 = vld [vmem:[%s5476_s14] sm:$0xff]  }
 0x33a   :  { %3837 = vmatprep.subr.bf16.mxu1 %v4219_v41  ;;  %v4312_v41 = vld [vmem:[%s5476_s14 + $0x10] sm:$0xff]  }
 0x33d   :  { %3838 = vmatpush3.bf16.msra.mxu1 %v4221_v42  ;;  %v4313_v42 = vld [vmem:[%s5476_s14 + $0x18] sm:$0xff]  }
 0x33e   :  { %3839 = vmatprep.subr.bf16.mxu1 %v4223_v44  ;;  %v4314_v44 = vld [vmem:[%s5476_s14 + $0x20] sm:$0xff]  }
 0x341   :  { %3840 = vmatpush3.bf16.msra.mxu1 %v4225_v46  ;;  %v3456_v46 = vld [vmem:[#allocation2] ss:$0 sm:$0xff] }
 0x342   :  { %3841 = vmatprep.subr.bf16.mxu1 %v4227_v53 }
 0x345   :  { %3842 = vmatpush3.bf16.msra.mxu1 %v4229_v40 }
 0x346   :  { %3843 = vmatprep.subr.bf16.mxu1 %v4231_v43  ;;  %v4315_v43 = vld [vmem:[%s5476_s14 + $0x28] sm:$0xff]  }
 0x349   :  { %3844 = vmatpush3.bf16.msra.mxu1 %v4233_v35 }
 0x34a   :  { %3845 = vmatprep.subr.bf16.mxu1 %v4235_v48 }
 0x34d   :  { %3846 = vmatpush3.bf16.msra.mxu1 %v4237_v49 }
 0x34e   :  { %3847 = vmatprep.subr.bf16.mxu1 %v4239_v50 }
 0x351   :  { %3848 = vmatpush3.bf16.msra.mxu1 %v4241_v51  ;;  %v3873_v55 = vpop.f32.mrb[28].mxu0 }
 0x352   :  { %3849 = vmatprep.subr.bf16.mxu1 %v4243_v52  ;;  %v3874_v47 = vpop.f32.mrb[29].mxu0 }
 0x353   :  { %v3876_v26 = vpop.f32.mrb[30].mxu0  ;;  %v3875_v27 = vadd.f32 %v3874_v47, %v3873_v55 }
 0x354   :  { %v3877_v29 = vpop.f32.mrb[31].mxu0 }
 0x355   :  { %3850 = vmatpush3.bf16.msra.mxu1 %v4245_v54 }
 0x356   :  { %3879 = vmatprep.subr.bf16.mxu1 %v4247_v56 }
 0x358   :  { %2959 = vmatmul.mubr.bf16.vlgmr.msra.gmra.mrb[24].mxu1 %v4683_v38  ;;  %v4259_v38 = vld [vmem:[%s5474_s12 + $0x258] sm:$0xff]  }
 0x359   :  { %3880 = vmatpush3.bf16.msra.mxu1 %v4249_v57  ;;  %3038 = vmatprep.mubr.bf16.mxu1 %v4810_v30  ;;  %v4261_v30 = vld [vmem:[%s5474_s12 + $0x218] sm:$0xff]   ;;  %v4316_v57 = vld [vmem:[%s5476_s14 + $0x30] sm:$0xff]  }
 0x35a   :  { %3881 = vmatprep.subr.bf16.mxu1 %v4251_v59  ;;  %v4317_v59 = vld [vmem:[%s5476_s14 + $0x38] sm:$0xff]  }
 0x35d   :  { %3882 = vmatpush3.bf16.msra.mxu1 %v4253_v61 }
 0x35e   :  { %3883 = vmatprep.subr.bf16.mxu1 %v4255_v62  ;;  %v3460_v62 = vld [vmem:[%s5475_s13] ss:$0 sm:$0xff] }
 0x361   :  { %3884 = vmatpush3.bf16.msra.mxu1 %v4257_v63 }
 0x362   :  { %3885 = vmatprep.subr.bf16.mxu1 %v4259_v38 }
 0x365   :  { %3886 = vmatpush3.bf16.msra.mxu1 %v4261_v30 }
 0x366   :  { %3887 = vmatprep.subr.bf16.mxu1 %v4263_v0 }
 0x369   :  { %3888 = vmatpush3.bf16.msra.mxu1 %v4265_v1 }
 0x36a   :  { %3889 = vmatprep.subr.bf16.mxu1 %v4267_v33 }
 0x36d   :  { %3890 = vmatpush3.bf16.msra.mxu1 %v4269_v24 }
 0x36e   :  { %3891 = vmatprep.subr.bf16.mxu1 %v4271_v2 }
 0x371   :  { %3892 = vmatpush3.bf16.msra.mxu1 %v4273_v60  ;;  %v3917_v31 = vpop.f32.mrb[32].mxu0 }
 0x372   :  { %3893 = vmatprep.subr.bf16.mxu1 %v4275_v3  ;;  %v3918_v32 = vpop.f32.mrb[33].mxu0 }
 0x373   :  { %v3920_v34 = vpop.f32.mrb[34].mxu0  ;;  %v3919_v36 = vadd.f32 %v3918_v32, %v3917_v31 }
 0x374   :  { %v3921_v37 = vpop.f32.mrb[35].mxu0 }
 0x375   :  { %3894 = vmatpush3.bf16.msra.mxu1 %v4277_v4 }
 0x376   :  { %3923 = vmatprep.subr.bf16.mxu1 %v4279_v5 }
 0x378   :  { %3039 = vmatmul.mubr.bf16.vlgmr.msra.gmra.mrb[28].mxu1 %v4805_v28  ;;  %v4291_v28 = vld [vmem:[%s5474_s12 + $0x358] sm:$0xff]  }
 0x379   :  { %3924 = vmatpush3.bf16.msra.mxu1 %v4281_v6  ;;  %3118 = vmatprep.mubr.bf16.mxu1 %v4923_v21  ;;  %v4293_v21 = vld [vmem:[%s5474_s12 + $0x318] sm:$0xff]  }
 0x37a   :  { %3925 = vmatprep.subr.bf16.mxu1 %v4283_v7 }
 0x37d   :  { %3926 = vmatpush3.bf16.msra.mxu1 %v4285_v8 }
 0x37e   :  { %3927 = vmatprep.subr.bf16.mxu1 %v4287_v9 }
 0x381   :  { %3928 = vmatpush3.bf16.msra.mxu1 %v4289_v10 }
 0x382   :  { %3929 = vmatprep.subr.bf16.mxu1 %v4291_v28 }
 0x385   :  { %3930 = vmatpush3.bf16.msra.mxu1 %v4293_v21 }
 0x386   :  { %3931 = vmatprep.subr.bf16.mxu1 %v4295_v11 }
 0x389   :  { %3932 = vmatpush3.bf16.msra.mxu1 %v4297_v12 }
 0x38a   :  { %3933 = vmatprep.subr.bf16.mxu1 %v4299_v13 }
 0x38d   :  { %3934 = vmatpush3.bf16.msra.mxu1 %v4301_v14 }
 0x38e   :  { %3935 = vmatprep.subr.bf16.mxu1 %v4303_v15 }
 0x391   :  { %3936 = vmatpush3.bf16.msra.mxu1 %v4305_v17  ;;  %v3961_v40 = vpop.f32.mrb[36].mxu0 }
 0x392   :  { %3937 = vmatprep.subr.bf16.mxu1 %v4307_v19  ;;  %v3962_v49 = vpop.f32.mrb[37].mxu0 }
 0x393   :  { %v3963_v51 = vadd.f32 %v3962_v49, %v3961_v40  ;;  %v3964_v52 = vpop.f32.mrb[38].mxu0 }
 0x394   :  { %v3965_v56 = vpop.f32.mrb[39].mxu0 }
 0x395   :  { %3938 = vmatpush3.bf16.msra.mxu1 %v4309_v23 }
 0x396   :  { %4016 = vmatprep.subr.bf16.mxu1 %v4347_v25 }
 0x398   :  { %3119 = vmatmul.mubr.bf16.vlgmr.msra.gmra.mrb[32].mxu1 %v4921_v20  ;;  %v4311_v20 = vld [vmem:[%s5476_s14 + $0x8] sm:$0xff]  }
 0x399   :  { %4032 = vmatprep.mubr.msk.bf16.mxu1 %vm4348_vm0, %v4347_v25  ;;  %4017 = vmatpush3.bf16.msra.mxu1 %v4310_v39 }
 0x39a   :  { %4018 = vmatprep.subr.bf16.mxu1 %v4347_v25 }
 0x39d   :  { %4019 = vmatpush3.bf16.msra.mxu1 %v4311_v20 }
 0x39e   :  { %4020 = vmatprep.subr.bf16.mxu1 %v4347_v25 }
 0x3a1   :  { %4021 = vmatpush3.bf16.msra.mxu1 %v4312_v41 }
 0x3a2   :  { %4022 = vmatprep.subr.bf16.mxu1 %v4347_v25 }
 0x3a5   :  { %4023 = vmatpush3.bf16.msra.mxu1 %v4313_v42 }
 0x3a6   :  { %4024 = vmatprep.subr.bf16.mxu1 %v4347_v25 }
 0x3a9   :  { %4025 = vmatpush3.bf16.msra.mxu1 %v4314_v44 }
 0x3aa   :  { %4026 = vmatprep.subr.bf16.mxu1 %v4347_v25 }
 0x3ad   :  { %4027 = vmatpush3.bf16.msra.mxu1 %v4315_v43 }
 0x3ae   :  { %4028 = vmatprep.subr.bf16.mxu1 %v4347_v25 }
 0x3b1   :  { %4029 = vmatpush3.bf16.msra.mxu1 %v4316_v57 }
 0x3b2   :  { %4030 = vmatprep.subr.bf16.mxu1 %v4347_v25 }
 0x3b5   :  { %4031 = vmatpush3.bf16.msra.mxu1 %v4317_v59 }
 0x3eb   :  { %v1807_v53 = vpop.f32.mrb[16].mxu1 }
 0x3ec   :  { %v1808_v35 = vadd.f32 %v3456_v46, %v1807_v53  ;;  %v4014_v48 = vpop.f32.mrb[17].mxu1 }
 0x3ed   :  { %v1810_v50 = vpop.f32.mrb[18].mxu1 }
 0x3ee   :  { %1814 = vst.msk [vmem:[%s5478_s16] sm:$0x3] %vm1813_vm3, %v1808_v35  ;;  %v4015_v54 = vpop.f32.mrb[19].mxu1  ;;  %s3302_s16 = sshll.u32 %s4349_s15, 4  ;;  %s3303_s16 = int_to_ptr.vmem [resolvable:$true] %s3302_s16 }
 0x3ef   :  { %s4322_s20 = scalar_lea.vmem %s3303_s16, 32  ;;  %p4327_p1 = scmp.lt.s32.totalorder %s3303_s16, %s3303_s16 }
 0x3f0   :  { %p4323_p0 = scmp.ne.s32.totalorder %s3303_s16, %s4322_s20  ;;  %p4328_p2 = scmp.lt.s32.totalorder %s4322_s20, %s4322_s20 }
 0x3f2   :  { %p4329_p3 = por %p4328_p2, %p4327_p1 }
 0x3f4   :  { %p4330_p4 = pnand %p4329_p3, %p4323_p0 }
 0x40b   :  { %v3807_v61 = vpop.f32.mrb[20].mxu1 }
 0x40c   :  { %v3808_v63 = vpop.f32.mrb[21].mxu1 }
 0x40d   :  { %v3809_v38 = vadd.f32 %v3808_v63, %v3807_v61  ;;  %v3810_v30 = vpop.f32.mrb[22].mxu1 }
 0x40e   :  { %v3811_v0 = vpop.f32.mrb[23].mxu1 }
 0x40f   :  { %v2881_v1 = vadd.f32 %v3809_v38, %v3460_v62 }
 0x411   :  { %v2921_v33 = vadd.f32 %v3831_v58, %v2881_v1 }
 0x42b   :  { %v3851_v24 = vpop.f32.mrb[24].mxu1 }
 0x42c   :  { %v3852_v2 = vpop.f32.mrb[25].mxu1 }
 0x42d   :  { %v3853_v60 = vadd.f32 %v3852_v2, %v3851_v24  ;;  %v3854_v25 = vpop.f32.mrb[26].mxu1 }
 0x42e   :  { %v3855_v3 = vpop.f32.mrb[27].mxu1 }
 0x42f   :  { %v2961_v4 = vadd.f32 %v3853_v60, %v2921_v33 }
 0x431   :  { %v3001_v5 = vadd.f32 %v3875_v27, %v2961_v4 }
 0x44b   :  { %v3895_v6 = vpop.f32.mrb[28].mxu1 }
 0x44c   :  { %v3896_v7 = vpop.f32.mrb[29].mxu1 }
 0x44d   :  { %v3897_v8 = vadd.f32 %v3896_v7, %v3895_v6  ;;  %v3898_v9 = vpop.f32.mrb[30].mxu1 }
 0x44e   :  { %v3899_v10 = vpop.f32.mrb[31].mxu1 }
 0x44f   :  { %v3041_v28 = vadd.f32 %v3897_v8, %v3001_v5 }
 0x451   :  { %v3081_v21 = vadd.f32 %v3919_v36, %v3041_v28 }
 0x46b   :  { %v3939_v11 = vpop.f32.mrb[32].mxu1 }
 0x46c   :  { %v3940_v12 = vpop.f32.mrb[33].mxu1 }
 0x46d   :  { %v3941_v13 = vadd.f32 %v3940_v12, %v3939_v11  ;;  %v3942_v14 = vpop.f32.mrb[34].mxu1 }
 0x46e   :  { %v3943_v15 = vpop.f32.mrb[35].mxu1 }
 0x46f   :  { %v3121_v16 = vadd.f32 %v3941_v13, %v3081_v21 }
 0x471   :  { %v3161_v17 = vadd.f32 %v3963_v51, %v3121_v16 }
 0x473   :  { %v3166_v18 = vmax.f32 %v3161_v17, 0.0 }
 0x475   :  { %v3167_v19 = vpack.c.bf16 %v3166_v18, %v3166_v18 }
 0x477   :  { %4033 = vmatmul.mubr.bf16.vlgmr.msra.gmra.mrb[36].mxu1 %v3167_v19 }
 0x54a   :  { %v3273_v58 = vpop.f32.mrb[36].mxu1 }
 0x54b   :  { %v3274_v45 = vadd.f32 %v3589_v22, %v3273_v58  ;;  %v4034_v23 = vpop.f32.mrb[37].mxu1 }
 0x54c   :  { %v3276_v55 = vpop.f32.mrb[38].mxu1 }
 0x54d   :  { %v4035_v47 = vpop.f32.mrb[39].mxu1  ;;  %v3280_v26 = vsel %vm3279_vm4, %v3274_v45, -inf }
 0x54e   :  { %3281 = vmax.xlane.f32.xlu0 %v3280_v26 }
 0x5db   :  { %v3282_v27 = vpop.xlane.xlu0 %3281 }
 0x5dc   :  { %v3283_v29 = vsub.f32 %v3274_v45, %v3282_v27 }
 0x5de   :  { %v3284_v31 = vmul.f32 1.442695, %v3283_v29 }
 0x5e0   :  { %4318 = vpow2.f32 %v3284_v31 }
 0x5ea   :  { %v4319_v32 = vpop.eup %4318 }
 0x5eb   :  { %v3286_v34 = vsel %vm3279_vm4, %v4319_v32, 0.0 }
 0x5ec   :  { %3287 = vadd.xlane.f32.xlu0 %v3286_v34 }
 0x679   :  { %v3288_v36 = vpop.xlane.xlu0 %3287 }
 0x67a   :  { %4320 = vlog2.f32 %v3288_v36 }
 0x684   :  { %v4321_v37 = vpop.eup %4320 }
 0x685   :  { %v3290_v39 = vmul.f32 0.6931472, %v4321_v37 }
 0x687   :  { %v3291_v20 = vadd.f32 %v3290_v39, %v3282_v27 }
 0x689   :  { %v3292_v41 = vsub.f32 %v3274_v45, %v3291_v20 }
 0x68b   :  { %3293 = vst.msk [vmem:[#allocation3] sm:$0x3] %vm3279_vm4, %v3292_v41 }
 0x68c   :  { %4333 = shalt.err (!%p4330_p4)
}
 0x68d   :  { %s4334_s5 = scalar_lea.hbm %s5479_s17, 32 }
 0x68e   :  { %p4335_p5 = scmp.ne.s32.totalorder %s5479_s17, %s4334_s5  ;;  %p4338_p6 = scmp.lt.u32.totalorder %s4334_s5, %s5479_s17 }
 0x690   :  { %p4340_p7 = pnand %p4338_p6, %p4335_p5 }
 0x692   :  { %4343 = shalt.err (!%p4340_p7)
}
 0x693   :  { %3305 = dma.vmem_to_hbm [thread:$0]  %s3303_s16, 32, %s5479_s17, [#allocation4]  }
 0x694   :  { %4344 = dma.done.wait [#allocation4], 32  }
 0x695   :  { %4345 = vsyncadd [#allocation4], 4294967264 }
 0x696   :  { %3311 = vsyncpa [#allocation4], 1 }

</bundles_post_ra>
